<compile_context>
chip_gen: v7x
topology: tpu7x:2x2x1
jax: 0.10.0
libtpu: 0.0.40
codegen_flags: <defaults>
</compile_context>

<pallas_src>
import numpy as np
import jax
import jax.numpy as jnp
from jax.experimental import pallas as pl
from jax.experimental.pallas import tpu as pltpu


def _rff_kernel(x_ref, w_ref, o_ref):
    # x_ref: (tm, d_pad)  -- column D is a constant 1.0 bias lane
    # w_ref: (d_pad, tf)  -- row D holds the sin/cos phase offsets
    # o_ref: (tm, tf)
    p = jnp.dot(x_ref[...], w_ref[...], preferred_element_type=jnp.float32)
    o_ref[...] = jnp.sin(p).astype(o_ref.dtype)


def _round_up(v, m):
    return ((v + m - 1) // m) * m


def _choose_tiles(m, d_pad, f_pad, tm_req, tf_req, vmem_budget_bytes):
    """Pick (tm, tf) so the double-buffered VMEM footprint fits the budget."""
    tf = min(_round_up(tf_req, 128), f_pad)
    # Keep >= 4 row-grid steps (>= 2 per TensorCore on v7x) when M allows it.
    quarter_rows = _round_up(max(8, pl.cdiv(m, 4)), 8)
    tm = max(8, min(_round_up(tm_req, 8), quarter_rows))

    def footprint(tm_, tf_):
        # x tile is lane-padded from d_pad -> 128 lanes in VMEM ((8,128) tiling).
        x_b = tm_ * _round_up(d_pad, 128) * 4
        w_b = d_pad * tf_ * 4
        o_b = tm_ * tf_ * 4
        return 2 * (x_b + w_b + o_b)  # double-buffered inputs/outputs

    while footprint(tm, tf) > vmem_budget_bytes and tm > 8:
        tm = max(8, _round_up(tm // 2, 8))
    while footprint(tm, tf) > vmem_budget_bytes and tf > 128:
        tf = max(128, _round_up(tf // 2, 128))
    return tm, tf


def rotated_fourier_features(x, frequencies, magnitudes, *, tm=1024, tf=2048):
    """x: (..., D), frequencies: (D, F), magnitudes: (F,) -> (..., 2F) float32."""
    lead_shape = x.shape[:-1]
    D = x.shape[-1]
    d_w, num_f = frequencies.shape
    assert D == d_w
    out_f = 2 * num_f
    f_pad = _round_up(out_f, 128)          # lane-dense output columns
    d_pad = _round_up(D + 1, 8)            # +1 bias row for the phase fold

    x2 = x.reshape(-1, D).astype(jnp.float32)
    M = x2.shape[0]

    # ---- one-time parameter prep (outside the grid loop) --------------------
    freqs = frequencies.astype(jnp.float32)
    # eps-clamped column L2 norm (matches torch.nn.functional.normalize eps=1e-12).
    norm = jnp.maximum(jnp.linalg.norm(freqs, axis=0, keepdims=True), 1e-12)
    w = freqs / norm
    w = w * magnitudes.astype(jnp.float32)[None, :] * (2.0 * np.pi)  # fold 2*pi of x
    w2 = jnp.repeat(w, 2, axis=1)                         # (D, 2F) duplicated columns
    # cos(z) == sin(z + pi/2): phase folded into the matmul via the bias lane.
    # NOTE: for very large |p| the f32 pi/2 offset can drift slightly vs true cos.
    phase = jnp.tile(jnp.array([0.0, np.pi / 2.0], jnp.float32), num_f)   # (2F,)

    # ---- tile sizing ---------------------------------------------------------
    tm_eff, tf_eff = _choose_tiles(M, d_pad, f_pad, tm, tf,
                                   vmem_budget_bytes=12 * 1024 * 1024)
    grid_m = pl.cdiv(M, tm_eff)
    grid_f = pl.cdiv(f_pad, tf_eff)
    m_pad = grid_m * tm_eff
    f_alloc = grid_f * tf_eff               # fully padded feature width

    # ---- weights: (d_pad, f_alloc), bias row D = phase -----------------------
    w_full = jnp.zeros((d_pad, f_alloc), jnp.float32)
    w_full = w_full.at[:D, :out_f].set(w2)
    w_full = w_full.at[D, :out_f].set(phase)

    # ---- single input pad: bias column, then one pad for rows + sublanes -----
    ones = jnp.ones((M, 1), jnp.float32)
    x2 = jnp.concatenate([x2, ones], axis=1)                    # (M, D+1)
    x2 = jnp.pad(x2, ((0, m_pad - M), (0, d_pad - (D + 1))))    # (m_pad, d_pad)

    cost = pl.CostEstimate(
        flops=2 * m_pad * d_pad * f_alloc,
        transcendentals=m_pad * f_alloc,
        bytes_accessed=4 * (m_pad * d_pad + d_pad * f_alloc + m_pad * f_alloc),
    )

    out = pl.pallas_call(
        _rff_kernel,
        out_shape=jax.ShapeDtypeStruct((m_pad, f_alloc), jnp.float32),
        grid_spec=pltpu.PrefetchScalarGridSpec(
            num_scalar_prefetch=0,
            grid=(grid_m, grid_f),
            in_specs=[
                pl.BlockSpec((tm_eff, d_pad), lambda i, j: (i, 0)),   # x row tile
                pl.BlockSpec((d_pad, tf_eff), lambda i, j: (0, j)),   # folded weights
            ],
            out_specs=pl.BlockSpec((tm_eff, tf_eff), lambda i, j: (i, j)),
        ),
        compiler_params=pltpu.CompilerParams(
            dimension_semantics=("parallel", "parallel"),
            vmem_limit_bytes=32 * 1024 * 1024,
        ),
        cost_estimate=cost,
    )(x2, w_full)

    out = out[:M, :out_f]
    return out.reshape(*lead_shape, out_f)


def init_rff_params(key, domain_dim, num_frequencies, std):
    """Replicates RotatedFourierFeatures.__init__ parameter construction."""
    kf, km = jax.random.split(key)
    freqs = jax.random.normal(kf, (domain_dim, num_frequencies), jnp.float32)
    freqs = freqs / jnp.maximum(
        jnp.linalg.norm(freqs, axis=0, keepdims=True), 1e-12)
    # TODO(synk): init_magnitudes is abstract in the PyTorch spec; using a
    # Gaussian N(0, std^2) magnitude init as a concrete choice.
    mags = jax.random.normal(km, (num_frequencies,), jnp.float32) * std
    return freqs, mags


def _reference(x, frequencies, magnitudes):
    """Pure-JAX reference following the PyTorch forward exactly."""
    lead = x.shape[:-1]
    D = x.shape[-1]
    num_f = frequencies.shape[1]
    xf = x.reshape(-1, D).astype(jnp.float32) * (2.0 * np.pi)
    norm = jnp.maximum(jnp.linalg.norm(frequencies, axis=0, keepdims=True), 1e-12)
    wn = frequencies / norm * magnitudes[None, :]
    p = xf @ wn
    return jnp.stack([jnp.sin(p), jnp.cos(p)], axis=2).reshape(*lead, 2 * num_f)


if __name__ == "__main__":
    key = jax.random.PRNGKey(0)
    k1, k2, k3, k4 = jax.random.split(key, 4)

    # Config 1: video-interpolation-like coordinate grid, lane-dense 2F=128.
    batch, height, width, domain_dim = 4, 16, 16, 3
    num_frequencies, std = 64, 1.0
    x = jax.random.uniform(k1, (batch, height, width, domain_dim),
                           jnp.float32, -1.0, 1.0)
    freqs, mags = init_rff_params(k2, domain_dim, num_frequencies, std)
    out = jax.block_until_ready(rotated_fourier_features(x, freqs, mags))
    assert out.shape == (batch, height, width, 2 * num_frequencies)
    np.testing.assert_allclose(np.asarray(out),
                               np.asarray(_reference(x, freqs, mags)),
                               rtol=2e-5, atol=2e-5)

    # Config 2: ragged rows (M=126) and feature padding (2F=80 -> 128) paths.
    b2, h2, w2, d2, nf2 = 2, 7, 9, 2, 40
    xb = jax.random.uniform(k3, (b2, h2, w2, d2), jnp.float32, -1.0, 1.0)
    freqs2, mags2 = init_rff_params(k4, d2, nf2, 0.5)
    out2 = jax.block_until_ready(rotated_fourier_features(xb, freqs2, mags2))
    assert out2.shape == (b2, h2, w2, 2 * nf2)
    np.testing.assert_allclose(np.asarray(out2),
                               np.asarray(_reference(xb, freqs2, mags2)),
                               rtol=2e-5, atol=2e-5)

    print("KERNEL_OK")
</pallas_src>

<mosaic_0001>
module attributes {stable_mosaic.version = 11 : i64} {
  func.func @_rff_kernel(%arg0: i32, %arg1: i32, %arg2: memref<256x8xf32, #tpu.memory_space<vmem>>, %arg3: memref<8x128xf32, #tpu.memory_space<vmem>>, %arg4: memref<256x128xf32, #tpu.memory_space<vmem>>) attributes {dimension_semantics = [#tpu.dimension_semantics<parallel>, #tpu.dimension_semantics<parallel>], iteration_bounds = array<i64: 4, 1>, scalar_prefetch = 0 : i64, scratch_operands = 0 : i64, tpu.core_type = #tpu.core_type<tc>, window_params = [{transform_indices = @transform_0, window_bounds = array<i64: 256, 8>}, {transform_indices = @transform_1, window_bounds = array<i64: 8, 128>}, {transform_indices = @transform_2, window_bounds = array<i64: 256, 128>}]} {
    %c0 = arith.constant 0 : index
    %c0_0 = arith.constant 0 : index
    %0 = vector.load %arg2[%c0, %c0_0] : memref<256x8xf32, #tpu.memory_space<vmem>>, vector<256x8xf32>
    %c0_1 = arith.constant 0 : index
    %c0_2 = arith.constant 0 : index
    %1 = vector.load %arg3[%c0_1, %c0_2] : memref<8x128xf32, #tpu.memory_space<vmem>>, vector<8x128xf32>
    %cst = arith.constant dense<0.000000e+00> : vector<256x128xf32>
    %2 = tpu.matmul %0, %1, %cst {dimension_numbers = #tpu.dot_dimension_numbers<[1], [0], [0], [1], [0, 0, 1, 1], [], []>} : vector<256x8xf32>, vector<8x128xf32>, vector<256x128xf32> -> vector<256x128xf32>
    %3 = math.sin %2 : vector<256x128xf32>
    %c0_3 = arith.constant 0 : index
    %c0_4 = arith.constant 0 : index
    %4 = vector.load %arg4[%c0_3, %c0_4] : memref<256x128xf32, #tpu.memory_space<vmem>>, vector<256x128xf32>
    tpu.vector_store %arg4[%c0_3, %c0_4], %3 {strides = array<i32>} : memref<256x128xf32, #tpu.memory_space<vmem>>, vector<256x128xf32>,
    return
  }
  func.func @transform_0(%arg0: i32, %arg1: i32) -> (i32, i32) {
    %c0_i32 = arith.constant 0 : i32
    %c0_i32_0 = arith.constant 0 : i32
    return %arg0, %c0_i32 : i32, i32
  }
  func.func @transform_1(%arg0: i32, %arg1: i32) -> (i32, i32) {
    %c0_i32 = arith.constant 0 : i32
    %c0_i32_0 = arith.constant 0 : i32
    return %c0_i32, %arg1 : i32, i32
  }
  func.func @transform_2(%arg0: i32, %arg1: i32) -> (i32, i32) {
    %c0_i32 = arith.constant 0 : i32
    return %arg0, %arg1 : i32, i32
  }
}

</mosaic_0001>

<bundles_post_ra>
// kernel: tpu_custom_call.1
= control target key start
LH: loop header
LB: loop body
LE: loop exit
PB: predicated region body
PF: predicated region fallthrough
CT: control target
= control target key end

     0   :  { %7 = vsyncpa [#allocation3], 0  ;;  %s7511_s0 = inlined_call_operand.vmem [shape: f32[1024,8], index: 0, kind: input, shape index: {}]   ;;  %s7512_s1 = inlined_call_operand.vmem [shape: f32[8,128], index: 1, kind: input, shape index: {}]   ;;  %s7513_s2 = inlined_call_operand.hbm [shape: f32[1024,128], index: 2, kind: output, shape index: {}]  }
   0x1   :  { %9 = vsyncpa [#allocation3 + $0x1], 0  ;;  %s4676_s9 = smov 0   ;;  %s4678_s10 = smov 0  }
   0x2   :  { %s4680_s11 = smov 0   ;;  %s4682_s12 = smov 0  }
   0x3   :  { %s4684_s13 = smov 0   ;;  %s4686_s14 = smov 0  }
   0x4 LB: > { %s3993_s15 = sadd.s32 4294967295, %s4650_s14   ;;  %s3994_s16 = sadd.s32 4294967294, %s4650_s14   ;;  %s4650_s14 = sphi %s4686_s14, %s15_s14   ;;  %s4646_s13 = sphi %s4684_s13, %s7580_s13   ;;  %s4642_s12 = sphi %s4682_s12, %s7579_s12   ;;  %s4638_s11 = sphi %s4680_s11, %s7578_s11   ;;  %s4634_s10 = sphi %s4678_s10, %s7577_s10   ;;  %s4630_s9 = sphi %s4676_s9, %s7576_s9  }
   0x5   : > { %s27_s17 = sadd.s32 1, %s4646_s13  ;;  %s88_s18 = sadd.s32 1, %s4638_s11 }
   0x6   : > { %p29_p0 = scmp.ge.s32.totalorder %s27_s17, 4  ;;  %p98_p1 = scmp.ne.s32.totalorder %s4638_s11, %s4634_s10 }
   0x7   : > { %p99_p2 = scmp.eq.s32.totalorder %s3993_s15, 3  ;;  %p104_p3 = scmp.ne.s32.totalorder %s4634_s10, %s4630_s9 }
   0x8   : > { %s7582_s17 = smov (%p29_p0, %s27_s17), 0  ;;  %p105_p5 = scmp.eq.s32.totalorder %s3994_s16, 3 }
   0x9   : > { %p4716_p4 = por %p99_p2, %p98_p1  ;;  %s83_s20 = ssub.s32 %s4646_s13, %s7582_s17 }
   0xa   : > { %p3998_p6 = scmp.ge.s32.totalorder %s4650_s14, 1  ;;  %p86_p7 = scmp.eq.s32.totalorder %s83_s20, 0 }
   0xb   : > { %p4723_p8 = por %p105_p5, %p104_p3  ;;  %p139_p9 = scmp.lt.s32.totalorder %s4650_s14, 5 }
   0xc   : > { %s4729_s22 = scalar_select %p86_p7, %s4638_s11, %s88_s18  }
   0xd   : > { %p140_p10 = pnand %p3998_p6, %p139_p9 }
   0xe   : > { %v208_v0 = vld [vmem:[%s7512_s1] sm:$0xff] (!%p140_p10)  ;;  %s4000_s25 = sshll.u32 (!%p140_p10), %s4642_s12, 5  ;;  %vm209_vm0 = vcmask (!%p140_p10), 64512   ;;  %s162_s30 = sand.u32 (!%p140_p10), 1, %s4634_s10  }
   0xf   : > { %143 = sbr.rel (%p140_p10) target bundleno = 1075 (0x433), region = 28  ;;  %4201 = vmatprep.subr.mxu0 (!%p140_p10), %v208_v0  ;;  %4251 = vmatprep.subr.mxu1 (!%p140_p10), %v208_v0  ;;  %p166_p11 = scmp.lt.s32.totalorder (!%p140_p10), %s4000_s25, 127 }
  0x10   : > { %4202 = vmatpush3.msra.mxu0 (!%p140_p10), %v208_v0  ;;  %4252 = vmatpush3.msra.mxu1 (!%p140_p10), %v208_v0  ;;  %s3999_s3 = sshll.u32 (!%p140_p10), %s162_s30, 8  ;;  %s4167_s5 = sshll.u32 (!%p140_p10), %s4642_s12, 12 }
  0x11   : > { %s5126_s4 = scalar_lea.vmem (!%p140_p10), [#allocation2], %s3999_s3  ;;  %s7457_s15 = scalar_lea.hbm (!%p140_p10), %s7513_s2, %s4167_s5 }
  0x12   : > { %s3906_s6 = sshll.u32 (!%p140_p10), %s5126_s4, 4  ;;  %s7465_s12 = scalar_lea.sflag (!%p140_p10), [#allocation3], %s162_s30  ;;  %s7459_s6 = int_to_ptr.vmem [resolvable:$true] %s3906_s6 }
  0x13   : > { %s4572_s16 = scalar_lea.vmem (!%p140_p10), %s7459_s6, 4096  ;;  %s4658_s18 = smov (!%p140_p10), [#allocation2]  }
  0x14   : > { %p4573_p12 = scmp.ne.s32.totalorder (!%p140_p10), %s7459_s6, %s4572_s16  ;;  %s4576_s20 = sshll.u32 (!%p140_p10), %s4658_s18, 4  ;;  %s4577_s20 = int_to_ptr.vmem [resolvable:$false] %s4576_s20 }
  0x15   : > { %s4578_s23 = scalar_lea.vmem (!%p140_p10), %s4577_s20, 8192  ;;  %p4579_p1 = scmp.lt.s32.totalorder (!%p140_p10), %s7459_s6, %s4577_s20 }
  0x16   : > { %s7584_s25 = smov (!%p166_p11, %s4000_s25), 127  ;;  %p4574_p13 = pnand %p4573_p12, %p4716_p4 }
  0x17   : > { %s4001_s26 = sshll.u32 %s7584_s25, 3  ;;  %p4580_p2 = scmp.lt.s32.totalorder %s4578_s23, %s4572_s16 }
  0x18   : > { %s4738_s29 = scalar_lea.vmem %s7511_s0, %s4001_s26  ;;  %p4575_p0 = pneg %p4574_p13 }
  0x19   : > { %v176_v1 = vld [vmem:[%s4738_s29] sm:$0xff]  ;;  %v177_v3 = vld [vmem:[%s4738_s29 + $0x8] sm:$0xff]  ;;  %v178_v5 = vld [vmem:[%s4738_s29 + $0x10] sm:$0xff]  ;;  %p4581_p3 = por %p4580_p2, %p4579_p1 }
  0x1a   : > { %v192_v2 = vld [vmem:[%s4738_s29 + $0x80] sm:$0xff]  ;;  %4203 = vmatprep.mubr.msk.f32.mxu0 %vm209_vm0, %v176_v1  ;;  %v193_v4 = vld [vmem:[%s4738_s29 + $0x88] sm:$0xff]  ;;  %v194_v6 = vld [vmem:[%s4738_s29 + $0x90] sm:$0xff] }
  0x1b   : > { %4227 = vmatprep.mubr.msk.f32.mxu1 %vm209_vm0, %v192_v2  ;;  %4204 = vmatmul.mubr.msk.f32.vlgmr.msra.gmra.mrb[0].mxu0 %vm209_vm0, %v177_v3  ;;  %v179_v7 = vld [vmem:[%s4738_s29 + $0x18] sm:$0xff]  ;;  %v180_v9 = vld [vmem:[%s4738_s29 + $0x20] sm:$0xff]  ;;  %v181_v11 = vld [vmem:[%s4738_s29 + $0x28] sm:$0xff]  ;;  %p4582_p5 = pnand %p4581_p3, %p4575_p0 }
  0x1c   : > { %4228 = vmatmul.mubr.msk.f32.vlgmr.msra.gmra.mrb[0].mxu1 %vm209_vm0, %v193_v4  ;;  %4206 = vmatprep.mubr.msk.f32.mxu0 %vm209_vm0, %v178_v5  ;;  %v195_v8 = vld [vmem:[%s4738_s29 + $0x98] sm:$0xff]  ;;  %v196_v10 = vld [vmem:[%s4738_s29 + $0xa0] sm:$0xff]  ;;  %v197_v12 = vld [vmem:[%s4738_s29 + $0xa8] sm:$0xff]  ;;  %v4652_v5 = vmov 683565275  }
  0x1d   : > { %4230 = vmatprep.mubr.msk.f32.mxu1 %vm209_vm0, %v194_v6  ;;  %v182_v13 = vld [vmem:[%s4738_s29 + $0x30] sm:$0xff]  ;;  %v183_v15 = vld [vmem:[%s4738_s29 + $0x38] sm:$0xff]  ;;  %v184_v17 = vld [vmem:[%s4738_s29 + $0x40] sm:$0xff] }
  0x1e   : > { %v198_v14 = vld [vmem:[%s4738_s29 + $0xb0] sm:$0xff]  ;;  %v199_v16 = vld [vmem:[%s4738_s29 + $0xb8] sm:$0xff]  ;;  %v200_v18 = vld [vmem:[%s4738_s29 + $0xc0] sm:$0xff] }
  0x1f   : > { %4207 = vmatmul.mubr.msk.f32.gmra.mrb[2].mxu0 %vm209_vm0, %v179_v7  ;;  %v185_v19 = vld [vmem:[%s4738_s29 + $0x48] sm:$0xff]  ;;  %v186_v21 = vld [vmem:[%s4738_s29 + $0x50] sm:$0xff]  ;;  %v187_v23 = vld [vmem:[%s4738_s29 + $0x58] sm:$0xff] }
  0x20   : > { %4231 = vmatmul.mubr.msk.f32.gmra.mrb[2].mxu1 %vm209_vm0, %v195_v8  ;;  %4209 = vmatprep.mubr.msk.f32.mxu0 %vm209_vm0, %v180_v9  ;;  %v201_v20 = vld [vmem:[%s4738_s29 + $0xc8] sm:$0xff]  ;;  %v202_v22 = vld [vmem:[%s4738_s29 + $0xd0] sm:$0xff]  ;;  %v203_v24 = vld [vmem:[%s4738_s29 + $0xd8] sm:$0xff]  ;;  %v4653_v9 = vmov 2475754826  }
  0x21   : > { %4233 = vmatprep.mubr.msk.f32.mxu1 %vm209_vm0, %v196_v10  ;;  %v188_v25 = vld [vmem:[%s4738_s29 + $0x60] sm:$0xff]  ;;  %v189_v27 = vld [vmem:[%s4738_s29 + $0x68] sm:$0xff]  ;;  %v190_v29 = vld [vmem:[%s4738_s29 + $0x70] sm:$0xff] }
  0x22   : > { %v204_v26 = vld [vmem:[%s4738_s29 + $0xe0] sm:$0xff]  ;;  %v205_v28 = vld [vmem:[%s4738_s29 + $0xe8] sm:$0xff]  ;;  %v206_v30 = vld [vmem:[%s4738_s29 + $0xf0] sm:$0xff] }
  0x23   : > { %4210 = vmatmul.mubr.msk.f32.gmra.mrb[4].mxu0 %vm209_vm0, %v181_v11  ;;  %v191_v31 = vld [vmem:[%s4738_s29 + $0x78] sm:$0xff]  ;;  %v4654_v11 = vmov 2131351028  }
  0x24   : > { %4234 = vmatmul.mubr.msk.f32.gmra.mrb[4].mxu1 %vm209_vm0, %v197_v12  ;;  %4212 = vmatprep.mubr.msk.f32.mxu0 %vm209_vm0, %v182_v13  ;;  %v207_v32 = vld [vmem:[%s4738_s29 + $0xf8] sm:$0xff]  ;;  %v4655_v13 = vmov 2102212464  }
  0x25   : > { %4236 = vmatprep.mubr.msk.f32.mxu1 %vm209_vm0, %v198_v14 }
  0x27   : > { %4213 = vmatmul.mubr.msk.f32.gmra.mrb[6].mxu0 %vm209_vm0, %v183_v15  ;;  %v4656_v15 = vmov 920167782  }
  0x28   : > { %4237 = vmatmul.mubr.msk.f32.gmra.mrb[6].mxu1 %vm209_vm0, %v199_v16  ;;  %4215 = vmatprep.mubr.msk.f32.mxu0 %vm209_vm0, %v184_v17 }
  0x29   : > { %4239 = vmatprep.mubr.msk.f32.mxu1 %vm209_vm0, %v200_v18 }
  0x2b   : > { %4216 = vmatmul.mubr.msk.f32.gmra.mrb[8].mxu0 %vm209_vm0, %v185_v19 }
  0x2c   : > { %4240 = vmatmul.mubr.msk.f32.gmra.mrb[8].mxu1 %vm209_vm0, %v201_v20  ;;  %4218 = vmatprep.mubr.msk.f32.mxu0 %vm209_vm0, %v186_v21 }
  0x2d   : > { %4242 = vmatprep.mubr.msk.f32.mxu1 %vm209_vm0, %v202_v22  ;;  %v4657_v22 = vmov 1326507024  }
  0x2f   : > { %4219 = vmatmul.mubr.msk.f32.gmra.mrb[10].mxu0 %vm209_vm0, %v187_v23 }
  0x30   : > { %4243 = vmatmul.mubr.msk.f32.gmra.mrb[10].mxu1 %vm209_vm0, %v203_v24  ;;  %4221 = vmatprep.mubr.msk.f32.mxu0 %vm209_vm0, %v188_v25 }
  0x31   : > { %4245 = vmatprep.mubr.msk.f32.mxu1 %vm209_vm0, %v204_v26 }
  0x33   : > { %4222 = vmatmul.mubr.msk.f32.gmra.mrb[12].mxu0 %vm209_vm0, %v189_v27 }
  0x34   : > { %4246 = vmatmul.mubr.msk.f32.gmra.mrb[12].mxu1 %vm209_vm0, %v205_v28  ;;  %4224 = vmatprep.mubr.msk.f32.mxu0 %vm209_vm0, %v190_v29 }
  0x35   : > { %4248 = vmatprep.mubr.msk.f32.mxu1 %vm209_vm0, %v206_v30 }
  0x37   : > { %4225 = vmatmul.mubr.msk.f32.gmra.mrb[14].mxu0 %vm209_vm0, %v191_v31 }
  0x38   : > { %4249 = vmatmul.mubr.msk.f32.gmra.mrb[14].mxu1 %vm209_vm0, %v207_v32 }
  0xee   : > { %v4804_v33 = vpop.f32.mrb[0].mxu0 }
  0xef   : > { %v4806_v34 = vpop.f32.mrb[0].mxu1  ;;  %v635_v35 = vand.u32 2147483647, %v4804_v33  ;;  %v638_v36 = vand.u32 2139095040, %v4804_v33  ;;  %v4810_v37 = vpop.f32.mrb[1].mxu0  ;;  %vm637_vm14 = vcmp.lt.s32.totalorder %v4804_v33, 0 }
  0xf0   : > { %v4812_v38 = vpop.f32.mrb[1].mxu1  ;;  %v2299_v39 = vand.u32 2147483647, %v4806_v34  ;;  %v2302_v40 = vand.u32 2139095040, %v4806_v34  ;;  %v534_v45 = vand.u32 2139095040, %v4810_v37 }
  0xf1   : > { %v639_v41 = vshrl.u32 %v638_v36, 23  ;;  %v642_v42 = vand.u32 8388607, %v635_v35  ;;  %v531_v56 = vand.u32 2147483647, %v4810_v37  ;;  %v2198_v3 = vand.u32 2139095040, %v4812_v38 }
  0xf2   : > { %v2303_v43 = vshrl.u32 %v2302_v40, 23  ;;  %v2306_v44 = vand.u32 8388607, %v2299_v39  ;;  %v4821_v47 = vpop.f32.mrb[2].mxu0  ;;  %v535_v50 = vshrl.u32 %v534_v45, 23 }
  0xf3   : > { %v4038_v46 = vadd.s32 4294967169, %v639_v41  ;;  %v4823_v48 = vpop.f32.mrb[2].mxu1  ;;  %v4825_v51 = vpop.f32.mrb[3].mxu0  ;;  %v643_v52 = vor.u32 8388608, %v642_v42  ;;  %v4836_v1 = vand.u32 8388607, %v531_v56 }
  0xf4   : > { %v4102_v49 = vadd.s32 4294967169, %v2303_v43  ;;  %v2307_v54 = vor.u32 8388608, %v2306_v44  ;;  %v4034_v57 = vadd.s32 4294967169, %v535_v50  ;;  %v4828_v58 = vpop.f32.mrb[3].mxu1  ;;  %vm4928_vm15 = vcmp.le.f32.partialorder %v635_v35, 0.7853982 }
  0xf5   : > { %v645_v53 = vadd.s32 1, %v4038_v46  ;;  %v4830_v62 = vshll.u32 %v643_v52, 8 }
  0xf6   : > { %v2309_v55 = vadd.s32 1, %v4102_v49  ;;  %v4832_v0 = vshll.u32 %v2307_v54, 8  ;;  %v4838_v2 = vadd.s32 1, %v4034_v57 }
  0xf7   : > { %vm646_vm1 = vcmp.gt.s32.totalorder %v645_v53, 0 }
  0xf8   : > { %v647_v59 = vsel %vm646_vm1, %v645_v53, 0  ;;  %vm2310_vm2 = vcmp.gt.s32.totalorder %v2309_v55, 0  ;;  %vm542_vm7 = vcmp.gt.s32.totalorder %v4838_v2, 0 }
  0xf9   : > { %v648_v60 = vshrl.u32 %v647_v59, 5  ;;  %v649_v61 = vand.u32 31, %v647_v59  ;;  %v2311_v63 = vsel %vm2310_vm2, %v2309_v55, 0 }
  0xfa   : > { %v4842_v7 = vshrl.u32 %v2311_v63, 5  ;;  %v2313_v8 = vand.u32 31, %v2311_v63 }
  0xfb   : > { %v650_v4 = vsub.s32 32, %v649_v61  ;;  %v652_v6 = vshll.u32 %v4652_v5, %v649_v61  ;;  %v655_v10 = vshll.u32 %v4653_v9, %v649_v61  ;;  %v658_v12 = vshll.u32 %v4654_v11, %v649_v61 }
  0xfc   : > { %v661_v14 = vshll.u32 %v4655_v13, %v649_v61  ;;  %v664_v16 = vshll.u32 %v4656_v15, %v649_v61  ;;  %vm667_vm3 = vcmp.lt.s32.totalorder %v648_v60, 1  ;;  %vm668_vm4 = vcmp.lt.s32.totalorder %v648_v60, 2 }
  0xfd   : > { %v653_v17 = vshrl.u32 %v4653_v9, %v650_v4  ;;  %v656_v18 = vshrl.u32 %v4654_v11, %v650_v4  ;;  %v659_v19 = vshrl.u32 %v4655_v13, %v650_v4  ;;  %v651_v20 = vshrl.u32 %v4652_v5, %v650_v4 }
  0xfe   : > { %v662_v21 = vshrl.u32 %v4656_v15, %v650_v4  ;;  %v665_v23 = vshrl.u32 %v4657_v22, %v650_v4  ;;  %v2314_v27 = vsub.s32 32, %v2313_v8  ;;  %vm669_vm5 = vcmp.lt.s32.totalorder %v648_v60, 3 }
  0xff   : > { %v654_v24 = vor.u32 %v653_v17, %v652_v6  ;;  %v657_v25 = vor.u32 %v656_v18, %v655_v10  ;;  %v660_v26 = vor.u32 %v659_v19, %v658_v12  ;;  %vm670_vm6 = vcmp.lt.s32.totalorder %v648_v60, 4 }
 0x100   : > { %v663_v28 = vor.u32 %v662_v21, %v661_v14  ;;  %v666_v29 = vor.u32 %v665_v23, %v664_v16  ;;  %v2316_v43 = vshll.u32 %v4652_v5, %v2313_v8  ;;  %v2317_v46 = vshrl.u32 %v4653_v9, %v2314_v27 }
 0x101   : > { %v671_v30 = vsel %vm667_vm3, %v651_v20, %v654_v24  ;;  %v672_v31 = vsel %vm670_vm6, %v660_v26, 2102212464  ;;  %v675_v32 = vsel %vm667_vm3, %v654_v24, %v657_v25  ;;  %v679_v36 = vsel %vm667_vm3, %v657_v25, %v660_v26 }
 0x102   : > { %v673_v40 = vsel %vm669_vm5, %v657_v25, %v672_v31  ;;  %v676_v41 = vsel %vm670_vm6, %v663_v28, 920167782  ;;  %v680_v42 = vsel %vm670_vm6, %v666_v29, 1326507024  ;;  %v2319_v49 = vshll.u32 %v4653_v9, %v2313_v8 }
 0x103   : > { %v677_v44 = vsel %vm669_vm5, %v660_v26, %v676_v41  ;;  %v681_v45 = vsel %vm669_vm5, %v663_v28, %v680_v42  ;;  %v674_v50 = vsel %vm668_vm4, %v671_v30, %v673_v40  ;;  %v2320_v54 = vshrl.u32 %v4654_v11, %v2314_v27 }
 0x104   : > { %v678_v52 = vsel %vm668_vm4, %v675_v32, %v677_v44  ;;  %v682_v53 = vsel %vm668_vm4, %v679_v36, %v681_v45  ;;  %v2318_v63 = vor.u32 %v2317_v46, %v2316_v43  ;;  %v2322_v6 = vshll.u32 %v4654_v11, %v2313_v8 }
 0x105   : > { %v4866_v55 = vmul.u32.u64.low %v4830_v62, %v682_v53  ;;  %v4867_v57 = vmul.u32.u64.high %v4830_v62, %v682_v53, %v4866_v55  ;;  %v4870_v59 = vmul.u32.u64.low %v4830_v62, %v678_v52  ;;  %v4871_v61 = vmul.u32.u64.high %v4830_v62, %v678_v52, %v4870_v59 }
 0x106   : > { %v2321_v4 = vor.u32 %v2320_v54, %v2319_v49  ;;  %v2323_v10 = vshrl.u32 %v4655_v13, %v2314_v27  ;;  %v2315_v12 = vshrl.u32 %v4652_v5, %v2314_v27  ;;  %v2325_v60 = vshll.u32 %v4655_v13, %v2313_v8  ;;  %v4908_v54 = vpop.f32.mrb[4].mxu0 }
 0x107   : > { %v2326_v14 = vshrl.u32 %v4656_v15, %v2314_v27  ;;  %v2329_v16 = vshrl.u32 %v4657_v22, %v2314_v27  ;;  %v690_v17 = vmul.u32 %v4830_v62, %v674_v50  ;;  %v2328_v19 = vshll.u32 %v4656_v15, %v2313_v8 }
 0x108   : > { %v2324_v18 = vor.u32 %v2323_v10, %v2322_v6  ;;  %vm2331_vm8 = vcmp.lt.s32.totalorder %v4842_v7, 1  ;;  %vm692_vm9 = vc.u32 %v4867_v57, %v4870_v59  ;;  %v693_v20 = vadd.s32 1, %v4871_v61 }
 0x109   : > { %v2327_v21 = vor.u32 %v2326_v14, %v2325_v60  ;;  %vm2332_vm10 = vcmp.lt.s32.totalorder %v4842_v7, 2  ;;  %v2330_v23 = vor.u32 %v2329_v16, %v2328_v19  ;;  %vm2333_vm11 = vcmp.lt.s32.totalorder %v4842_v7, 3 }
 0x10a   : > { %vm2334_vm12 = vcmp.lt.s32.totalorder %v4842_v7, 4  ;;  %v2339_v24 = vsel %vm2331_vm8, %v2318_v63, %v2321_v4  ;;  %v694_v62 = vsel %vm692_vm9, %v693_v20, %v4871_v61  ;;  %v2343_v8 = vsel %vm2331_vm8, %v2321_v4, %v2324_v18 }
 0x10b   : > { %v2336_v25 = vsel %vm2334_vm12, %v2324_v18, 2102212464  ;;  %v2340_v26 = vsel %vm2334_vm12, %v2327_v21, 920167782  ;;  %v695_v27 = vadd.s32 %v694_v62, %v690_v17  ;;  %v2335_v28 = vsel %vm2331_vm8, %v2315_v12, %v2318_v63 }
 0x10c   : > { %v2341_v29 = vsel %vm2333_vm11, %v2324_v18, %v2340_v26  ;;  %v2344_v30 = vsel %vm2334_vm12, %v2330_v23, 1326507024  ;;  %v2337_v31 = vsel %vm2333_vm11, %v2321_v4, %v2336_v25  ;;  %v543_v40 = vsel %vm542_vm7, %v4838_v2, 0 }
 0x10d   : > { %v2342_v32 = vsel %vm2332_vm10, %v2339_v24, %v2341_v29  ;;  %v2345_v36 = vsel %vm2333_vm11, %v2327_v21, %v2344_v30  ;;  %v696_v41 = vadd.s32 536870912, %v695_v27  ;;  %v2195_v49 = vand.u32 2147483647, %v4812_v38 }
 0x10e   : > { %v2346_v42 = vsel %vm2332_vm10, %v2343_v8, %v2345_v36  ;;  %v4896_v43 = vmul.u32.u64.low %v4832_v0, %v2342_v32  ;;  %v4897_v44 = vmul.u32.u64.high %v4832_v0, %v2342_v32, %v4896_v43  ;;  %v2338_v52 = vsel %vm2332_vm10, %v2335_v28, %v2337_v31 }
 0x10f   : > { %v4901_v45 = vmul.u32.u64.low %v4832_v0, %v2346_v42  ;;  %v4902_v46 = vmul.u32.u64.high %v4832_v0, %v2346_v42, %v4901_v45  ;;  %v697_v50 = vshrl.u32 %v696_v41, 30  ;;  %v539_v2 = vor.u32 8388608, %v4836_v1 }
 0x110   : > { %v545_v53 = vand.u32 31, %v543_v40  ;;  %v2357_v61 = vadd.s32 1, %v4897_v44  ;;  %v2199_v4 = vshrl.u32 %v2198_v3, 23  ;;  %v2354_v6 = vmul.u32 %v4832_v0, %v2338_v52 }
 0x111   : > { %v698_v55 = vshll.u32 %v697_v50, 30  ;;  %vm2356_vm13 = vc.u32 %v4902_v46, %v4896_v43  ;;  %v4918_v7 = vand.u32 8388607, %v2195_v49  ;;  %v4924_v12 = vshll.u32 %v539_v2, 8 }
 0x112   : > { %v546_v63 = vsub.s32 32, %v545_v53  ;;  %v2358_v10 = vsel %vm2356_vm13, %v2357_v61, %v4897_v44  ;;  %v691_v0 = vadd.s32 %v4870_v59, %v4867_v57  ;;  %v4933_v14 = vshrl.u32 %v543_v40, 5 }
 0x113   : > { %v4921_v1 = vsub.s32 %v695_v27, %v698_v55  ;;  %v2359_v60 = vadd.s32 %v2358_v10, %v2354_v6  ;;  %v4098_v20 = vadd.s32 4294967169, %v2199_v4  ;;  %v721_v21 = vsub.s32 4, %v697_v50 }
 0x114   : > { %v549_v16 = vshrl.u32 %v4653_v9, %v546_v63  ;;  %v552_v18 = vshrl.u32 %v4654_v11, %v546_v63  ;;  %v555_v19 = vshrl.u32 %v4655_v13, %v546_v63  ;;  %v548_v35 = vshll.u32 %v4652_v5, %v545_v53 }
 0x115   : > { %v701_v17 = vsub.s32 0, %v4921_v1  ;;  %v2360_v23 = vadd.s32 536870912, %v2359_v60  ;;  %v2203_v24 = vor.u32 8388608, %v4918_v7  ;;  %v551_v59 = vshll.u32 %v4653_v9, %v545_v53 }
 0x116   : > { %v554_v62 = vshll.u32 %v4654_v11, %v545_v53  ;;  %v558_v25 = vshrl.u32 %v4656_v15, %v546_v63  ;;  %v550_v8 = vor.u32 %v549_v16, %v548_v35  ;;  %v557_v27 = vshll.u32 %v4655_v13, %v545_v53 }
 0x117   : > { %v4039_v57 = vmin.u32 %v701_v17, %v4921_v1  ;;  %v2361_v26 = vshrl.u32 %v2360_v23, 30  ;;  %v561_v28 = vshrl.u32 %v4657_v22, %v546_v63  ;;  %v553_v30 = vor.u32 %v552_v18, %v551_v59 }
 0x118   : > { %v556_v31 = vor.u32 %v555_v19, %v554_v62  ;;  %v560_v32 = vshll.u32 %v4656_v15, %v545_v53  ;;  %v722_v36 = vsel %vm637_vm14, %v721_v21, %v697_v50  ;;  %v559_v41 = vor.u32 %v558_v25, %v557_v27 }
 0x119   : > { %v703_v29 = vclz %v4039_v57  ;;  %v2362_v40 = vshll.u32 %v2361_v26, 30  ;;  %vm563_vm0 = vcmp.lt.s32.totalorder %v4933_v14, 1  ;;  %vm564_vm1 = vcmp.lt.s32.totalorder %v4933_v14, 2 }
 0x11a   : > { %v562_v44 = vor.u32 %v561_v28, %v560_v32  ;;  %vm566_vm2 = vcmp.lt.s32.totalorder %v4933_v14, 4  ;;  %vm2301_vm3 = vcmp.lt.s32.totalorder %v4806_v34, 0  ;;  %v547_v52 = vshrl.u32 %v4652_v5, %v546_v63 }
 0x11b   : > { %v4040_v42 = vadd.s32 4294967294, %v703_v29  ;;  %v4954_v45 = vsub.s32 %v2359_v60, %v2362_v40  ;;  %vm565_vm4 = vcmp.lt.s32.totalorder %v4933_v14, 3  ;;  %v572_v50 = vsel %vm566_vm2, %v559_v41, 920167782 }
 0x11c   : > { %v724_v2 = vsel %vm4928_vm15, 0, %v722_v36  ;;  %v571_v53 = vsel %vm563_vm0, %v550_v8, %v553_v30  ;;  %v573_v55 = vsel %vm565_vm4, %v556_v31, %v572_v50  ;;  %v2385_v6 = vsub.s32 4, %v2361_v26 }
 0x11d   : > { %vm4041_vm5 = vcmp.lt.s32.totalorder %v4040_v42, 0  ;;  %v2365_v4 = vsub.s32 0, %v4954_v45  ;;  %v575_v63 = vsel %vm563_vm0, %v553_v30, %v556_v31  ;;  %vm4971_vm6 = vcmp.le.f32.partialorder %v2299_v39, 0.7853982 }
 0x11e   : > { %v706_v61 = vsel %vm4041_vm5, 0, %v4040_v42  ;;  %v568_v17 = vsel %vm566_vm2, %v556_v31, 2102212464  ;;  %v576_v18 = vsel %vm566_vm2, %v562_v44, 1326507024  ;;  %v574_v23 = vsel %vm564_vm1, %v571_v53, %v573_v55  ;;  %v5004_v44 = vpop.f32.mrb[4].mxu1 }
 0x11f   : > { %v707_v10 = vsub.s32 32, %v706_v61  ;;  %v711_v60 = vsub.s32 4294967266, %v706_v61  ;;  %v708_v19 = vshll.u32 %v4921_v1, %v706_v61  ;;  %v4103_v21 = vmin.u32 %v2365_v4, %v4954_v45 }
 0x120   : > { %v577_v35 = vsel %vm565_vm4, %v559_v41, %v576_v18  ;;  %v2205_v62 = vadd.s32 1, %v4098_v20  ;;  %v728_v25 = vadd.s32 3, %v724_v2  ;;  %v567_v28 = vsel %vm563_vm0, %v547_v52, %v550_v8 }
 0x121   : > { %v709_v39 = vshrl.u32 %v691_v0, %v707_v10  ;;  %v712_v57 = vadd.s32 127, %v711_v60  ;;  %v578_v59 = vsel %vm564_vm1, %v575_v63, %v577_v35  ;;  %v2367_v27 = vclz %v4103_v21 }
 0x122   : > { %v569_v1 = vsel %vm565_vm4, %v553_v30, %v568_v17  ;;  %v4992_v32 = vmul.u32.u64.low %v4924_v12, %v578_v59  ;;  %v4993_v36 = vmul.u32.u64.high %v4924_v12, %v578_v59, %v4992_v32  ;;  %vm2206_vm7 = vcmp.gt.s32.totalorder %v2205_v62, 0 }
 0x123   : > { %v710_v29 = vor.u32 %v709_v39, %v708_v19  ;;  %v713_v31 = vshll.u32 %v712_v57, 23  ;;  %v4104_v0 = vadd.s32 4294967294, %v2367_v27  ;;  %v2355_v8 = vadd.s32 %v4896_v43, %v4902_v46 }
 0x124   : > { %v4996_v40 = vmul.u32.u64.low %v4924_v12, %v574_v23  ;;  %v4997_v41 = vmul.u32.u64.high %v4924_v12, %v574_v23, %v4996_v40  ;;  %v2386_v30 = vsel %vm2301_vm3, %v2385_v6, %v2361_v26  ;;  %v2207_v42 = vsel %vm2206_vm7, %v2205_v62, 0 }
 0x125   : > { %v714_v20 = vor.u32 4788187, %v713_v31  ;;  %v5006_v52 = vand.u32 3, %v728_v25  ;;  %vm4105_vm8 = vcmp.lt.s32.totalorder %v4104_v0, 0  ;;  %v570_v50 = vsel %vm564_vm1, %v567_v28, %v569_v1 }
 0x126   : > { %v2209_v2 = vand.u32 31, %v2207_v42  ;;  %v717_v55 = vcvt.s32.f32 %v710_v29  ;;  %v2370_v61 = vsel %vm4105_vm8, 0, %v4104_v0  ;;  %vm588_vm9 = vc.u32 %v4993_v36, %v4996_v40 }
 0x127   : > { %v715_v53 = vand.u32 2147483647, %v714_v20  ;;  %v2371_v43 = vsub.s32 32, %v2370_v61  ;;  %v2375_v46 = vsub.s32 4294967266, %v2370_v61  ;;  %v2388_v26 = vsel %vm4971_vm6, 0, %v2386_v30 }
 0x128   : > { %v589_v4 = vadd.s32 1, %v4997_v41  ;;  %v586_v63 = vmul.u32 %v4924_v12, %v570_v50  ;;  %v5016_v10 = vshrl.u32 %v2207_v42, 5  ;;  %v2210_v14 = vsub.s32 32, %v2209_v2 }
 0x129   : > { %v718_v6 = vmul.f32 %v717_v55, %v715_v53  ;;  %v2372_v60 = vshll.u32 %v4954_v45, %v2370_v61  ;;  %v2373_v17 = vshrl.u32 %v2355_v8, %v2371_v43  ;;  %v2376_v18 = vadd.s32 127, %v2375_v46 }
 0x12a   : > { %v590_v19 = vsel %vm588_vm9, %v589_v4, %v4997_v41  ;;  %v2212_v35 = vshll.u32 %v4652_v5, %v2209_v2  ;;  %v2213_v39 = vshrl.u32 %v4653_v9, %v2210_v14  ;;  %v2215_v62 = vshll.u32 %v4653_v9, %v2209_v2 }
 0x12b   : > { %v719_v21 = vxor.u32 2147483648, %v718_v6  ;;  %v591_v23 = vadd.s32 %v590_v19, %v586_v63  ;;  %v2374_v57 = vor.u32 %v2373_v17, %v2372_v60  ;;  %v2377_v59 = vshll.u32 %v2376_v18, 23 }
 0x12c   : > { %v2216_v12 = vshrl.u32 %v4654_v11, %v2210_v14  ;;  %v2218_v27 = vshll.u32 %v4654_v11, %v2209_v2  ;;  %v2219_v28 = vshrl.u32 %v4655_v13, %v2210_v14  ;;  %v2214_v31 = vor.u32 %v2213_v39, %v2212_v35 }
 0x12d   : > { %v720_v25 = vsel %vm637_vm14, %v719_v21, %v718_v6  ;;  %v592_v45 = vadd.s32 536870912, %v591_v23  ;;  %v2378_v29 = vor.u32 4788187, %v2377_v59  ;;  %v2221_v32 = vshll.u32 %v4655_v13, %v2209_v2 }
 0x12e   : > { %v723_v1 = vsel %vm4928_vm15, %v4804_v33, %v720_v25  ;;  %v2381_v0 = vcvt.s32.f32 %v2374_v57  ;;  %v2222_v20 = vshrl.u32 %v4656_v15, %v2210_v14  ;;  %v2217_v30 = vor.u32 %v2216_v12, %v2215_v62 }
 0x12f   : > { %4444 = vcosq.f32 %v723_v1  ;;  %v5032_v41 = vshrl.u32 %v592_v45, 30  ;;  %v2379_v8 = vand.u32 2147483647, %v2378_v29  ;;  %v2225_v42 = vshrl.u32 %v4657_v22, %v2210_v14 }
 0x130   : > { %4446 = vsinq.f32 %v723_v1  ;;  %v2223_v53 = vor.u32 %v2222_v20, %v2221_v32  ;;  %v2220_v55 = vor.u32 %v2219_v28, %v2218_v27  ;;  %v2224_v61 = vshll.u32 %v4656_v15, %v2209_v2 }
 0x131   : > { %v594_v50 = vshll.u32 %v5032_v41, 30  ;;  %v2382_v3 = vmul.f32 %v2381_v0, %v2379_v8  ;;  %v2392_v43 = vadd.s32 3, %v2388_v26  ;;  %vm2227_vm10 = vcmp.lt.s32.totalorder %v5016_v10, 1 }
 0x132   : > { %v5043_v4 = vshll.u32 %v2203_v24, 8  ;;  %vm731_vm11 = vcmp.eq.s32.totalorder %v5006_v52, 0  ;;  %v2226_v63 = vor.u32 %v2225_v42, %v2224_v61  ;;  %vm2230_vm12 = vcmp.lt.s32.totalorder %v5016_v10, 4 }
 0x133   : > { %v5038_v46 = vsub.s32 %v591_v23, %v594_v50  ;;  %v2383_v6 = vxor.u32 2147483648, %v2382_v3  ;;  %v2235_v60 = vsel %vm2227_vm10, %v2214_v31, %v2217_v30  ;;  %vm730_vm13 = vcmp.lt.s32.totalorder %v5006_v52, 2 }
 0x134   : > { %v2211_v26 = vshrl.u32 %v4652_v5, %v2210_v14  ;;  %vm2229_vm14 = vcmp.lt.s32.totalorder %v5016_v10, 3  ;;  %v2236_v7 = vsel %vm2230_vm12, %v2223_v53, 920167782  ;;  %vm727_vm15 = vweird.f32 %v4804_v33 }
 0x135   : > { %v597_v2 = vsub.s32 0, %v5038_v46  ;;  %v2384_v24 = vsel %vm2301_vm3, %v2383_v6, %v2382_v3  ;;  %vm533_vm0 = vcmp.lt.s32.totalorder %v4810_v37, 0  ;;  %vm2228_vm1 = vcmp.lt.s32.totalorder %v5016_v10, 2  ;;  %v5113_v3 = vpop.f32.mrb[5].mxu0 }
 0x136   : > { %v2232_v17 = vsel %vm2230_vm12, %v2220_v55, 2102212464  ;;  %v2237_v14 = vsel %vm2229_vm14, %v2220_v55, %v2236_v7  ;;  %v2387_v18 = vsel %vm4971_vm6, %v4806_v34, %v2384_v24  ;;  %v2239_v23 = vsel %vm2227_vm10, %v2217_v30, %v2220_v55 }
 0x137   : > { %v4035_v19 = vmin.u32 %v597_v2, %v5038_v46  ;;  %v2238_v21 = vsel %vm2228_vm1, %v2235_v60, %v2237_v14  ;;  %4448 = vcosq.f32 %v2387_v18  ;;  %v2240_v35 = vsel %vm2230_vm12, %v2226_v63, 1326507024 }
 0x138   : > { %v5076_v39 = vmul.u32.u64.low %v5043_v4, %v2238_v21  ;;  %v5077_v57 = vmul.u32.u64.high %v5043_v4, %v2238_v21, %v5076_v39  ;;  %vm734_vm2 = vcmp.eq.s32.totalorder %v5006_v52, 2  ;;  %4450 = vsinq.f32 %v2387_v18 }
 0x139   : > { %v4445_v59 = vpop.eup %4444  ;;  %v5081_v16 = vand.u32 3, %v2392_v43  ;;  %vm5085_vm3 = vcmp.le.f32.partialorder %v531_v56, 0.7853982  ;;  %v599_v12 = vclz %v4035_v19  ;;  %v2231_v27 = vsel %vm2227_vm10, %v2211_v26, %v2214_v31 }
 0x13a   : > { %v4447_v25 = vpop.eup %4446  ;;  %v735_v45 = vxor.u32 2147483648, %v4445_v59  ;;  %v2233_v28 = vsel %vm2229_vm14, %v2217_v30, %v2232_v17  ;;  %v2241_v1 = vsel %vm2229_vm14, %v2223_v53, %v2240_v35  ;;  %v617_v56 = vsub.s32 4, %v5032_v41 }
 0x13b   : > { %v732_v29 = vxor.u32 2147483648, %v4447_v25  ;;  %v4036_v32 = vadd.s32 4294967294, %v599_v12  ;;  %v2242_v0 = vsel %vm2228_vm1, %v2239_v23, %v2241_v1  ;;  %v587_v8 = vadd.s32 %v4996_v40, %v4993_v36 }
 0x13c   : > { %v736_v20 = vsel %vm734_vm2, %v735_v45, %v4447_v25  ;;  %v5105_v31 = vmul.u32.u64.low %v5043_v4, %v2242_v0  ;;  %v5106_v42 = vmul.u32.u64.high %v5043_v4, %v2242_v0, %v5105_v31  ;;  %v2234_v50 = vsel %vm2228_vm1, %v2231_v27, %v2233_v28 }
 0x13d   : > { %v733_v30 = vsel %vm731_vm11, %v4445_v59, %v732_v29  ;;  %vm4037_vm4 = vcmp.lt.s32.totalorder %v4036_v32, 0  ;;  %v2253_v53 = vadd.s32 1, %v5077_v57  ;;  %vm2394_vm5 = vcmp.lt.s32.totalorder %v5081_v16, 2 }
 0x13e   : > { %v737_v55 = vsel %vm730_vm13, %v733_v30, %v736_v20  ;;  %v602_v36 = vsel %vm4037_vm4, 0, %v4036_v32  ;;  %v843_v40 = vand.u32 2147483647, %v4821_v47  ;;  %v846_v61 = vand.u32 2139095040, %v4821_v47 }
 0x13f   : > { %v738_v43 = vsel %vm727_vm15, nan, %v737_v55  ;;  %vm2391_vm6 = vweird.f32 %v4806_v34  ;;  %v603_v10 = vsub.s32 32, %v602_v36  ;;  %v607_v6 = vsub.s32 4294967266, %v602_v36 }
 0x140   : > { %v618_v63 = vsel %vm533_vm0, %v617_v56, %v5032_v41  ;;  %3860 = vst [vmem:[%s5126_s4 + $0x8] sm:$0xff] %v738_v43  ;;  %vm2395_vm7 = vcmp.eq.s32.totalorder %v5081_v16, 0  ;;  %v2250_v52 = vmul.u32 %v5043_v4, %v2234_v50  ;;  %vm2252_vm8 = vc.u32 %v5106_v42, %v5076_v39 }
 0x141   : > { %v847_v33 = vshrl.u32 %v846_v61, 23  ;;  %v604_v60 = vshll.u32 %v5038_v46, %v602_v36  ;;  %v605_v2 = vshrl.u32 %v587_v8, %v603_v10  ;;  %v608_v26 = vadd.s32 127, %v607_v6  ;;  %v4449_v24 = vpop.eup %4448 }
 0x142   : > { %v2254_v7 = vsel %vm2252_vm8, %v2253_v53, %v5077_v57  ;;  %v620_v41 = vsel %vm5085_vm3, 0, %v618_v63  ;;  %v850_v18 = vand.u32 8388607, %v843_v40  ;;  %v4451_v4 = vpop.eup %4450  ;;  %vm2398_vm9 = vcmp.eq.s32.totalorder %v5081_v16, 2 }
 0x143   : > { %v2255_v17 = vadd.s32 %v2254_v7, %v2250_v52  ;;  %v4046_v14 = vadd.s32 4294967169, %v847_v33  ;;  %v2399_v19 = vxor.u32 2147483648, %v4449_v24  ;;  %v606_v21 = vor.u32 %v605_v2, %v604_v60 }
 0x144   : > { %v609_v23 = vshll.u32 %v608_v26, 23  ;;  %v2396_v46 = vxor.u32 2147483648, %v4451_v4  ;;  %v2507_v57 = vand.u32 2147483647, %v4823_v48  ;;  %v624_v45 = vadd.s32 3, %v620_v41 }
 0x145   : > { %v2256_v35 = vadd.s32 536870912, %v2255_v17  ;;  %v853_v59 = vadd.s32 1, %v4046_v14  ;;  %v2400_v12 = vsel %vm2398_vm9, %v2399_v19, %v4451_v4  ;;  %v2510_v27 = vand.u32 2139095040, %v4823_v48 }
 0x146   : > { %v610_v25 = vor.u32 4788187, %v609_v23  ;;  %v2397_v28 = vsel %vm2395_vm7, %v4449_v24, %v2396_v46  ;;  %v851_v29 = vor.u32 8388608, %v850_v18  ;;  %v613_v0 = vcvt.s32.f32 %v606_v21 }
 0x147   : > { %v2257_v1 = vshrl.u32 %v2256_v35, 30  ;;  %vm854_vm10 = vcmp.gt.s32.totalorder %v853_v59, 0  ;;  %v2401_v32 = vsel %vm2394_vm5, %v2397_v28, %v2400_v12  ;;  %v2511_v30 = vshrl.u32 %v2510_v27, 23 }
 0x148   : > { %v611_v56 = vand.u32 2147483647, %v610_v25  ;;  %v855_v20 = vsel %vm854_vm10, %v853_v59, 0  ;;  %v2402_v8 = vsel %vm2391_vm6, nan, %v2401_v32  ;;  %v5150_v50 = vand.u32 8388607, %v2507_v57 }
 0x149   : > { %v2258_v31 = vshll.u32 %v2257_v1, 30  ;;  %3876 = vst [vmem:[%s5126_s4 + $0x88] sm:$0xff] %v2402_v8  ;;  %v857_v55 = vand.u32 31, %v855_v20  ;;  %v5153_v36 = vand.u32 3, %v624_v45  ;;  %vm2197_vm11 = vcmp.lt.s32.totalorder %v4812_v38, 0  ;;  %v5210_v8 = vpop.f32.mrb[5].mxu1 }
 0x14a   : > { %v614_v53 = vmul.f32 %v613_v0, %v611_v56  ;;  %v2251_v16 = vadd.s32 %v5076_v39, %v5106_v42  ;;  %v2281_v43 = vsub.s32 4, %v2257_v1  ;;  %v5160_v10 = vshrl.u32 %v855_v20, 5 }
 0x14b   : > { %v5158_v61 = vsub.s32 %v2255_v17, %v2258_v31  ;;  %v858_v6 = vsub.s32 32, %v857_v55  ;;  %v5163_v52 = vshll.u32 %v851_v29, 8  ;;  %v4110_v33 = vadd.s32 4294967169, %v2511_v30 }
 0x14c   : > { %v615_v34 = vxor.u32 2147483648, %v614_v53  ;;  %v2515_v60 = vor.u32 8388608, %v5150_v50  ;;  %v860_v26 = vshll.u32 %v4652_v5, %v857_v55  ;;  %v863_v41 = vshll.u32 %v4653_v9, %v857_v55 }
 0x14d   : > { %v2261_v63 = vsub.s32 0, %v5158_v61  ;;  %v861_v39 = vshrl.u32 %v4653_v9, %v858_v6  ;;  %v864_v42 = vshrl.u32 %v4654_v11, %v858_v6  ;;  %v867_v17 = vshrl.u32 %v4655_v13, %v858_v6 }
 0x14e   : > { %v616_v2 = vsel %vm533_vm0, %v615_v34, %v614_v53  ;;  %v5179_v14 = vsel %vm2197_vm11, %v2281_v43, %v2257_v1  ;;  %v866_v18 = vshll.u32 %v4654_v11, %v857_v55  ;;  %vm875_vm12 = vcmp.lt.s32.totalorder %v5160_v10, 1 }
 0x14f   : > { %v619_v7 = vsel %vm5085_vm3, %v4810_v37, %v616_v2  ;;  %v4099_v24 = vmin.u32 %v2261_v63, %v5158_v61  ;;  %v862_v19 = vor.u32 %v861_v39, %v860_v26  ;;  %v865_v62 = vor.u32 %v864_v42, %v863_v41 }
 0x150   : > { %4452 = vcosq.f32 %v619_v7  ;;  %v859_v21 = vshrl.u32 %v4652_v5, %v858_v6  ;;  %v868_v23 = vor.u32 %v867_v17, %v866_v18  ;;  %v869_v46 = vshll.u32 %v4655_v13, %v857_v55 }
 0x151   : > { %4454 = vsinq.f32 %v619_v7  ;;  %v2263_v4 = vclz %v4099_v24  ;;  %v870_v35 = vshrl.u32 %v4656_v15, %v858_v6  ;;  %vm5188_vm13 = vcmp.le.f32.partialorder %v2195_v49, 0.7853982 }
 0x152   : > { %v872_v25 = vshll.u32 %v4656_v15, %v857_v55  ;;  %v873_v45 = vshrl.u32 %v4657_v22, %v858_v6  ;;  %vm878_vm14 = vcmp.lt.s32.totalorder %v5160_v10, 4  ;;  %vm630_vm15 = vcmp.eq.s32.totalorder %v5153_v36, 2 }
 0x153   : > { %v4100_v12 = vadd.s32 4294967294, %v2263_v4  ;;  %v871_v27 = vor.u32 %v870_v35, %v869_v46  ;;  %vm876_vm0 = vcmp.lt.s32.totalorder %v5160_v10, 2  ;;  %vm877_vm1 = vcmp.lt.s32.totalorder %v5160_v10, 3 }
 0x154   : > { %v880_v49 = vsel %vm878_vm14, %v868_v23, 2102212464  ;;  %vm627_vm2 = vcmp.eq.s32.totalorder %v5153_v36, 0  ;;  %v874_v28 = vor.u32 %v873_v45, %v872_v25  ;;  %v879_v1 = vsel %vm875_vm12, %v859_v21, %v862_v19 }
 0x155   : > { %vm4101_vm3 = vcmp.lt.s32.totalorder %v4100_v12, 0  ;;  %v883_v29 = vsel %vm875_vm12, %v862_v19, %v865_v62  ;;  %vm626_vm4 = vcmp.lt.s32.totalorder %v5153_v36, 2  ;;  %v881_v56 = vsel %vm877_vm1, %v865_v62, %v880_v49 }
 0x156   : > { %v2266_v32 = vsel %vm4101_vm3, 0, %v4100_v12  ;;  %v884_v0 = vsel %vm878_vm14, %v871_v27, 920167782  ;;  %v2517_v20 = vadd.s32 1, %v4110_v33  ;;  %vm623_vm5 = vweird.f32 %v4810_v37 }
 0x157   : > { %v2267_v31 = vsub.s32 32, %v2266_v32  ;;  %v2271_v30 = vsub.s32 4294967266, %v2266_v32  ;;  %v885_v53 = vsel %vm877_vm1, %v868_v23, %v884_v0  ;;  %v887_v55 = vsel %vm875_vm12, %v865_v62, %v868_v23 }
 0x158   : > { %v2268_v34 = vshll.u32 %v5158_v61, %v2266_v32  ;;  %v886_v43 = vsel %vm876_vm0, %v883_v29, %v885_v53  ;;  %v888_v6 = vsel %vm878_vm14, %v874_v28, 1326507024  ;;  %vm2518_vm6 = vcmp.gt.s32.totalorder %v2517_v20, 0 }
 0x159   : > { %v2269_v63 = vshrl.u32 %v2251_v16, %v2267_v31  ;;  %v2272_v33 = vadd.s32 127, %v2271_v30  ;;  %v889_v2 = vsel %vm877_vm1, %v871_v27, %v888_v6  ;;  %v2519_v26 = vsel %vm2518_vm6, %v2517_v20, 0 }
 0x15a   : > { %v4453_v39 = vpop.eup %4452  ;;  %v882_v42 = vsel %vm876_vm0, %v879_v1, %v881_v56  ;;  %v890_v61 = vsel %vm876_vm0, %v887_v55, %v889_v2  ;;  %v5229_v7 = vmul.u32.u64.low %v5163_v52, %v886_v43  ;;  %v5230_v24 = vmul.u32.u64.high %v5163_v52, %v886_v43, %v5229_v7 }
 0x15b   : > { %v4455_v41 = vpop.eup %4454  ;;  %v631_v17 = vxor.u32 2147483648, %v4453_v39  ;;  %v2270_v16 = vor.u32 %v2269_v63, %v2268_v34  ;;  %v2273_v18 = vshll.u32 %v2272_v33, 23  ;;  %v2521_v4 = vand.u32 31, %v2519_v26 }
 0x15c   : > { %v628_v19 = vxor.u32 2147483648, %v4455_v41  ;;  %v2284_v62 = vsel %vm5188_vm13, 0, %v5179_v14  ;;  %v5237_v21 = vmul.u32.u64.low %v5163_v52, %v890_v61  ;;  %v5238_v23 = vmul.u32.u64.high %v5163_v52, %v890_v61, %v5237_v21 }
 0x15d   : > { %v632_v10 = vsel %vm630_vm15, %v631_v17, %v4455_v41  ;;  %v2274_v46 = vor.u32 4788187, %v2273_v18  ;;  %v898_v35 = vmul.u32 %v5163_v52, %v882_v42  ;;  %v2522_v12 = vsub.s32 32, %v2521_v4 }
 0x15e   : > { %v629_v25 = vsel %vm627_vm2, %v4453_v39, %v628_v19  ;;  %v2277_v45 = vcvt.s32.f32 %v2270_v16  ;;  %v901_v27 = vadd.s32 1, %v5230_v24  ;;  %v2520_v49 = vshrl.u32 %v2519_v26, 5 }
 0x15f   : > { %v633_v14 = vsel %vm626_vm4, %v629_v25, %v632_v10  ;;  %v2275_v28 = vand.u32 2147483647, %v2274_v46  ;;  %v2524_v1 = vshll.u32 %v4652_v5, %v2521_v4  ;;  %v2525_v29 = vshrl.u32 %v4653_v9, %v2522_v12 }
 0x160   : > { %v634_v32 = vsel %vm623_vm5, nan, %v633_v14  ;;  %vm900_vm7 = vc.u32 %v5238_v23, %v5229_v7  ;;  %v2527_v52 = vshll.u32 %v4653_v9, %v2521_v4  ;;  %v2528_v56 = vshrl.u32 %v4654_v11, %v2522_v12 }
 0x161   : > { %3859 = vst [vmem:[%s5126_s4] sm:$0xff] %v634_v32  ;;  %v2278_v0 = vmul.f32 %v2277_v45, %v2275_v28  ;;  %v902_v36 = vsel %vm900_vm7, %v901_v27, %v5230_v24  ;;  %v2526_v20 = vor.u32 %v2525_v29, %v2524_v1  ;;  %v2530_v31 = vshll.u32 %v4654_v11, %v2521_v4 }
 0x162   : > { %v903_v30 = vadd.s32 %v902_v36, %v898_v35  ;;  %v2529_v53 = vor.u32 %v2528_v56, %v2527_v52  ;;  %v2531_v55 = vshrl.u32 %v4655_v13, %v2522_v12  ;;  %v2533_v37 = vshll.u32 %v4655_v13, %v2521_v4 }
 0x163   : > { %v2279_v34 = vxor.u32 2147483648, %v2278_v0  ;;  %v2534_v43 = vshrl.u32 %v4656_v15, %v2522_v12  ;;  %v2536_v6 = vshll.u32 %v4656_v15, %v2521_v4  ;;  %v2537_v63 = vshrl.u32 %v4657_v22, %v2522_v12 }
 0x164   : > { %v2288_v33 = vadd.s32 3, %v2284_v62  ;;  %v904_v2 = vadd.s32 536870912, %v903_v30  ;;  %v2532_v26 = vor.u32 %v2531_v55, %v2530_v31  ;;  %vm2539_vm8 = vcmp.lt.s32.totalorder %v2520_v49, 1 }
 0x165   : > { %v2280_v39 = vsel %vm2197_vm11, %v2279_v34, %v2278_v0  ;;  %v2523_v42 = vshrl.u32 %v4652_v5, %v2522_v12  ;;  %v2535_v61 = vor.u32 %v2534_v43, %v2533_v37  ;;  %v2538_v24 = vor.u32 %v2537_v63, %v2536_v6 }
 0x166   : > { %v2283_v41 = vsel %vm5188_vm13, %v4812_v38, %v2280_v39  ;;  %v905_v17 = vshrl.u32 %v904_v2, 30  ;;  %vm2540_vm9 = vcmp.lt.s32.totalorder %v2520_v49, 2  ;;  %vm2542_vm10 = vcmp.lt.s32.totalorder %v2520_v49, 4 }
 0x167   : > { %4456 = vcosq.f32 %v2283_v41  ;;  %v2544_v16 = vsel %vm2542_vm10, %v2532_v26, 2102212464  ;;  %v2547_v18 = vsel %vm2539_vm8, %v2526_v20, %v2529_v53  ;;  %v2548_v4 = vsel %vm2542_vm10, %v2535_v61, 920167782 }
 0x168   : > { %4458 = vsinq.f32 %v2283_v41  ;;  %v906_v19 = vshll.u32 %v905_v17, 30  ;;  %vm2541_vm12 = vcmp.lt.s32.totalorder %v2520_v49, 3  ;;  %v2543_v62 = vsel %vm2539_vm8, %v2523_v42, %v2526_v20 }
 0x169   : > { %v2549_v21 = vsel %vm2541_vm12, %v2532_v26, %v2548_v4  ;;  %v2551_v10 = vsel %vm2539_vm8, %v2529_v53, %v2532_v26  ;;  %v2552_v46 = vsel %vm2542_vm10, %v2538_v24, 1326507024  ;;  %v2555_v59 = vshll.u32 %v2515_v60, 8 }
 0x16a   : > { %v5275_v35 = vsub.s32 %v903_v30, %v906_v19  ;;  %v2545_v12 = vsel %vm2541_vm12, %v2529_v53, %v2544_v16  ;;  %v2550_v25 = vsel %vm2540_vm9, %v2547_v18, %v2549_v21  ;;  %v2553_v45 = vsel %vm2541_vm12, %v2535_v61, %v2552_v46 }
 0x16b   : > { %v929_v27 = vsub.s32 4, %v905_v17  ;;  %v2554_v14 = vsel %vm2540_vm9, %v2551_v10, %v2553_v45  ;;  %v5279_v28 = vmul.u32.u64.low %v2555_v59, %v2550_v25  ;;  %v5280_v1 = vmul.u32.u64.high %v2555_v59, %v2550_v25, %v5279_v28 }
 0x16c   : > { %v2289_v29 = vand.u32 3, %v2288_v33  ;;  %v909_v32 = vsub.s32 0, %v5275_v35  ;;  %v5284_v52 = vmul.u32.u64.low %v2555_v59, %v2554_v14  ;;  %v5285_v56 = vmul.u32.u64.high %v2555_v59, %v2554_v14, %v5284_v52 }
 0x16d   : > { %vm845_vm11 = vcmp.lt.s32.totalorder %v4821_v47, 0  ;;  %v2546_v60 = vsel %vm2540_vm9, %v2543_v62, %v2545_v12  ;;  %v742_v0 = vand.u32 2139095040, %v4825_v51  ;;  %vm2287_vm13 = vweird.f32 %v4812_v38 }
 0x16e   : > { %v4047_v50 = vmin.u32 %v909_v32, %v5275_v35  ;;  %v930_v36 = vsel %vm845_vm11, %v929_v27, %v905_v17  ;;  %v2565_v20 = vadd.s32 1, %v5280_v1  ;;  %v739_v31 = vand.u32 2147483647, %v4825_v51 }
 0x16f   : > { %vm2290_vm14 = vcmp.lt.s32.totalorder %v2289_v29, 2  ;;  %vm2291_vm15 = vcmp.eq.s32.totalorder %v2289_v29, 0  ;;  %vm5298_vm0 = vcmp.le.f32.partialorder %v843_v40, 0.7853982  ;;  %vm2294_vm1 = vcmp.eq.s32.totalorder %v2289_v29, 2  ;;  %v5307_v40 = vpop.f32.mrb[6].mxu0 }
 0x170   : > { %v911_v49 = vclz %v4047_v50  ;;  %v2562_v55 = vmul.u32 %v2555_v59, %v2546_v60  ;;  %vm2564_vm2 = vc.u32 %v5285_v56, %v5279_v28  ;;  %v743_v37 = vshrl.u32 %v742_v0, 23 }
 0x171   : > { %v4457_v53 = vpop.eup %4456  ;;  %v932_v63 = vsel %vm5298_vm0, 0, %v930_v36  ;;  %v2566_v33 = vsel %vm2564_vm2, %v2565_v20, %v5280_v1  ;;  %v746_v42 = vand.u32 8388607, %v739_v31  ;;  %v899_v24 = vadd.s32 %v5229_v7, %v5238_v23 }
 0x172   : > { %v4459_v34 = vpop.eup %4458  ;;  %v2295_v43 = vxor.u32 2147483648, %v4457_v53  ;;  %v4048_v6 = vadd.s32 4294967294, %v911_v49  ;;  %v2567_v26 = vadd.s32 %v2566_v33, %v2562_v55  ;;  %v4042_v39 = vadd.s32 4294967169, %v743_v37 }
 0x173   : > { %v2292_v2 = vxor.u32 2147483648, %v4459_v34  ;;  %v2406_v41 = vand.u32 2139095040, %v4828_v58  ;;  %v936_v10 = vadd.s32 3, %v932_v63  ;;  %v747_v12 = vor.u32 8388608, %v746_v42 }
 0x174   : > { %v2296_v61 = vsel %vm2294_vm1, %v2295_v43, %v4459_v34  ;;  %vm4049_vm3 = vcmp.lt.s32.totalorder %v4048_v6, 0  ;;  %v2568_v18 = vadd.s32 536870912, %v2567_v26  ;;  %v749_v4 = vadd.s32 1, %v4042_v39 }
 0x175   : > { %v2293_v17 = vsel %vm2291_vm15, %v4457_v53, %v2292_v2  ;;  %v914_v16 = vsel %vm4049_vm3, 0, %v4048_v6  ;;  %v2407_v1 = vshrl.u32 %v2406_v41, 23  ;;  %v5320_v52 = vand.u32 3, %v936_v10 }
 0x176   : > { %v2297_v19 = vsel %vm2290_vm14, %v2293_v17, %v2296_v61  ;;  %v915_v62 = vsub.s32 32, %v914_v16  ;;  %v919_v21 = vsub.s32 4294967266, %v914_v16  ;;  %v2569_v59 = vshrl.u32 %v2568_v18, 30 }
 0x177   : > { %v2298_v46 = vsel %vm2287_vm13, nan, %v2297_v19  ;;  %vm750_vm4 = vcmp.gt.s32.totalorder %v749_v4, 0  ;;  %v916_v7 = vshll.u32 %v5275_v35, %v914_v16  ;;  %vm2509_vm5 = vcmp.lt.s32.totalorder %v4823_v48, 0 }
 0x178   : > { %3875 = vst [vmem:[%s5126_s4 + $0x80] sm:$0xff] %v2298_v46  ;;  %v917_v23 = vshrl.u32 %v899_v24, %v915_v62  ;;  %v920_v25 = vadd.s32 127, %v919_v21  ;;  %v751_v45 = vsel %vm750_vm4, %v749_v4, 0  ;;  %v2570_v27 = vshll.u32 %v2569_v59, 30 }
 0x179   : > { %v753_v14 = vand.u32 31, %v751_v45  ;;  %v2563_v0 = vadd.s32 %v5279_v28, %v5285_v56  ;;  %v2593_v35 = vsub.s32 4, %v2569_v59  ;;  %v5327_v36 = vshll.u32 %v747_v12, 8 }
 0x17a   : > { %v918_v29 = vor.u32 %v917_v23, %v916_v7  ;;  %v921_v32 = vshll.u32 %v920_v25, 23  ;;  %v5323_v38 = vsub.s32 %v2567_v26, %v2570_v27  ;;  %v752_v49 = vshrl.u32 %v751_v45, 5 }
 0x17b   : > { %v754_v50 = vsub.s32 32, %v753_v14  ;;  %v4106_v55 = vadd.s32 4294967169, %v2407_v1  ;;  %v756_v33 = vshll.u32 %v4652_v5, %v753_v14  ;;  %v759_v28 = vshll.u32 %v4653_v9, %v753_v14 }
 0x17c   : > { %v922_v60 = vor.u32 4788187, %v921_v32  ;;  %v2573_v20 = vsub.s32 0, %v5323_v38  ;;  %v925_v34 = vcvt.s32.f32 %v918_v29  ;;  %v762_v56 = vshll.u32 %v4654_v11, %v753_v14 }
 0x17d   : > { %v757_v53 = vshrl.u32 %v4653_v9, %v754_v50  ;;  %v760_v43 = vshrl.u32 %v4654_v11, %v754_v50  ;;  %v763_v6 = vshrl.u32 %v4655_v13, %v754_v50  ;;  %v5339_v26 = vsel %vm2509_vm5, %v2593_v35, %v2569_v59 }
 0x17e   : > { %v923_v37 = vand.u32 2147483647, %v922_v60  ;;  %v4111_v63 = vmin.u32 %v2573_v20, %v5323_v38  ;;  %v765_v39 = vshll.u32 %v4655_v13, %v753_v14  ;;  %v766_v42 = vshrl.u32 %v4656_v15, %v754_v50  ;;  %v5360_v60 = vpop.f32.mrb[6].mxu1 }
 0x17f   : > { %v758_v24 = vor.u32 %v757_v53, %v756_v33  ;;  %v761_v41 = vor.u32 %v760_v43, %v759_v28  ;;  %v764_v17 = vor.u32 %v763_v6, %v762_v56  ;;  %v768_v4 = vshll.u32 %v4656_v15, %v753_v14 }
 0x180   : > { %v926_v2 = vmul.f32 %v925_v34, %v923_v37  ;;  %v2575_v61 = vclz %v4111_v63  ;;  %v767_v18 = vor.u32 %v766_v42, %v765_v39  ;;  %v769_v19 = vshrl.u32 %v4657_v22, %v754_v50 }
 0x181   : > { %v755_v21 = vshrl.u32 %v4652_v5, %v754_v50  ;;  %vm771_vm6 = vcmp.lt.s32.totalorder %v752_v49, 1  ;;  %vm772_vm7 = vcmp.lt.s32.totalorder %v752_v49, 2  ;;  %vm773_vm8 = vcmp.lt.s32.totalorder %v752_v49, 3 }
 0x182   : > { %v927_v16 = vxor.u32 2147483648, %v926_v2  ;;  %v4112_v62 = vadd.s32 4294967294, %v2575_v61  ;;  %v770_v46 = vor.u32 %v769_v19, %v768_v4  ;;  %vm774_vm9 = vcmp.lt.s32.totalorder %v752_v49, 4 }
 0x183   : > { %v775_v12 = vsel %vm771_vm6, %v755_v21, %v758_v24  ;;  %v776_v7 = vsel %vm774_vm9, %v764_v17, 2102212464  ;;  %v779_v25 = vsel %vm771_vm6, %v758_v24, %v761_v41  ;;  %v780_v45 = vsel %vm774_vm9, %v767_v18, 920167782 }
 0x184   : > { %v928_v10 = vsel %vm845_vm11, %v927_v16, %v926_v2  ;;  %vm4113_vm10 = vcmp.lt.s32.totalorder %v4112_v62, 0  ;;  %v777_v1 = vsel %vm773_vm8, %v761_v41, %v776_v7  ;;  %v781_v30 = vsel %vm773_vm8, %v764_v17, %v780_v45 }
 0x185   : > { %v931_v59 = vsel %vm5298_vm0, %v4821_v47, %v928_v10  ;;  %v2578_v23 = vsel %vm4113_vm10, 0, %v4112_v62  ;;  %v783_v32 = vsel %vm771_vm6, %v761_v41, %v764_v17  ;;  %v784_v50 = vsel %vm774_vm9, %v770_v46, 1326507024 }
 0x186   : > { %4460 = vcosq.f32 %v931_v59  ;;  %v2579_v27 = vsub.s32 32, %v2578_v23  ;;  %v2583_v14 = vsub.s32 4294967266, %v2578_v23  ;;  %v2580_v29 = vshll.u32 %v5323_v38, %v2578_v23 }
 0x187   : > { %4462 = vsinq.f32 %v931_v59  ;;  %v782_v53 = vsel %vm772_vm7, %v779_v25, %v781_v30  ;;  %v785_v37 = vsel %vm773_vm8, %v767_v18, %v784_v50  ;;  %v778_v34 = vsel %vm772_vm7, %v775_v12, %v777_v1 }
 0x188   : > { %v2581_v35 = vshrl.u32 %v2563_v0, %v2579_v27  ;;  %v2584_v20 = vadd.s32 127, %v2583_v14  ;;  %v786_v43 = vsel %vm772_vm7, %v783_v32, %v785_v37  ;;  %vm5377_vm12 = vcmp.le.f32.partialorder %v2507_v57, 0.7853982 }
 0x189   : > { %v5367_v38 = vmul.u32.u64.low %v5327_v36, %v782_v53  ;;  %v5368_v6 = vmul.u32.u64.high %v5327_v36, %v782_v53, %v5367_v38  ;;  %v5372_v28 = vmul.u32.u64.low %v5327_v36, %v786_v43  ;;  %v5373_v56 = vmul.u32.u64.high %v5327_v36, %v786_v43, %v5372_v28 }
 0x18a   : > { %v2582_v63 = vor.u32 %v2581_v35, %v2580_v29  ;;  %v2585_v33 = vshll.u32 %v2584_v20, 23  ;;  %v2413_v2 = vadd.s32 1, %v4106_v55  ;;  %vm935_vm11 = vweird.f32 %v4821_v47 }
 0x18b   : > { %vm938_vm13 = vcmp.lt.s32.totalorder %v5320_v52, 2  ;;  %v2403_v39 = vand.u32 2147483647, %v4828_v58  ;;  %v2596_v42 = vsel %vm5377_vm12, 0, %v5339_v26  ;;  %v794_v61 = vmul.u32 %v5327_v36, %v778_v34 }
 0x18c   : > { %v2586_v49 = vor.u32 4788187, %v2585_v33  ;;  %v797_v24 = vadd.s32 1, %v5368_v6  ;;  %vm2414_vm14 = vcmp.gt.s32.totalorder %v2413_v2, 0  ;;  %v2589_v41 = vcvt.s32.f32 %v2582_v63 }
 0x18d   : > { %vm796_vm15 = vc.u32 %v5373_v56, %v5367_v38  ;;  %v2415_v55 = vsel %vm2414_vm14, %v2413_v2, 0  ;;  %vm939_vm0 = vcmp.eq.s32.totalorder %v5320_v52, 0  ;;  %vm942_vm1 = vcmp.eq.s32.totalorder %v5320_v52, 2 }
 0x18e   : > { %v2587_v57 = vand.u32 2147483647, %v2586_v49  ;;  %v798_v16 = vsel %vm796_vm15, %v797_v24, %v5368_v6  ;;  %v2417_v18 = vand.u32 31, %v2415_v55  ;;  %v2410_v62 = vand.u32 8388607, %v2403_v39 }
 0x18f   : > { %v799_v19 = vadd.s32 %v798_v16, %v794_v61  ;;  %v2600_v10 = vadd.s32 3, %v2596_v42  ;;  %v1054_v59 = vand.u32 2139095040, %v4908_v54  ;;  %v2416_v53 = vshrl.u32 %v2415_v55, 5 }
 0x190   : > { %v4461_v17 = vpop.eup %4460  ;;  %v2590_v36 = vmul.f32 %v2589_v41, %v2587_v57  ;;  %v2418_v46 = vsub.s32 32, %v2417_v18  ;;  %v2420_v25 = vshll.u32 %v4652_v5, %v2417_v18  ;;  %v2423_v14 = vshll.u32 %v4653_v9, %v2417_v18 }
 0x191   : > { %v4463_v26 = vpop.eup %4462  ;;  %v943_v4 = vxor.u32 2147483648, %v4461_v17  ;;  %v800_v23 = vadd.s32 536870912, %v799_v19  ;;  %v2426_v37 = vshll.u32 %v4654_v11, %v2417_v18  ;;  %v2429_v63 = vshll.u32 %v4655_v13, %v2417_v18 }
 0x192   : > { %v940_v21 = vxor.u32 2147483648, %v4463_v26  ;;  %v2591_v7 = vxor.u32 2147483648, %v2590_v36  ;;  %v2421_v27 = vshrl.u32 %v4653_v9, %v2418_v46  ;;  %v2424_v1 = vshrl.u32 %v4654_v11, %v2418_v46 }
 0x193   : > { %v944_v12 = vsel %vm942_vm1, %v943_v4, %v4463_v26  ;;  %v5407_v32 = vshrl.u32 %v800_v23, 30  ;;  %v2427_v50 = vshrl.u32 %v4655_v13, %v2418_v46  ;;  %v2430_v47 = vshrl.u32 %v4656_v15, %v2418_v46 }
 0x194   : > { %v941_v45 = vsel %vm939_vm0, %v4461_v17, %v940_v21  ;;  %v2592_v30 = vsel %vm2509_vm5, %v2591_v7, %v2590_v36  ;;  %v2422_v34 = vor.u32 %v2421_v27, %v2420_v25  ;;  %v2425_v43 = vor.u32 %v2424_v1, %v2423_v14  ;;  %v5435_v7 = vpop.f32.mrb[7].mxu0 }
 0x195   : > { %v945_v29 = vsel %vm938_vm13, %v941_v45, %v944_v12  ;;  %v2595_v20 = vsel %vm5377_vm12, %v4823_v48, %v2592_v30  ;;  %v802_v52 = vshll.u32 %v5407_v32, 30  ;;  %v2428_v6 = vor.u32 %v2427_v50, %v2426_v37 }
 0x196   : > { %v946_v35 = vsel %vm935_vm11, nan, %v945_v29  ;;  %4464 = vcosq.f32 %v2595_v20  ;;  %v2601_v33 = vand.u32 3, %v2600_v10  ;;  %v2432_v0 = vshll.u32 %v4656_v15, %v2417_v18 }
 0x197   : > { %3862 = vst [vmem:[%s5126_s4 + $0x18] sm:$0xff] %v946_v35  ;;  %4466 = vsinq.f32 %v2595_v20  ;;  %v5420_v28 = vsub.s32 %v799_v19, %v802_v52  ;;  %v2433_v2 = vshrl.u32 %v4657_v22, %v2418_v46  ;;  %v2411_v49 = vor.u32 8388608, %v2410_v62 }
 0x198   : > { %v2431_v42 = vor.u32 %v2430_v47, %v2429_v63  ;;  %v1051_v61 = vand.u32 2147483647, %v4908_v54  ;;  %v1055_v24 = vshrl.u32 %v1054_v59, 23  ;;  %vm2435_vm2 = vcmp.lt.s32.totalorder %v2416_v53, 1 }
 0x199   : > { %v805_v57 = vsub.s32 0, %v5420_v28  ;;  %v2434_v41 = vor.u32 %v2433_v2, %v2432_v0  ;;  %vm2438_vm3 = vcmp.lt.s32.totalorder %v2416_v53, 4  ;;  %vm2437_vm4 = vcmp.lt.s32.totalorder %v2416_v53, 3 }
 0x19a   : > { %v2440_v55 = vsel %vm2438_vm3, %v2428_v6, 2102212464  ;;  %v2443_v17 = vsel %vm2435_vm2, %v2422_v34, %v2425_v43  ;;  %v2444_v16 = vsel %vm2438_vm3, %v2431_v42, 920167782  ;;  %vm2602_vm5 = vcmp.lt.s32.totalorder %v2601_v33, 2 }
 0x19b   : > { %v4043_v18 = vmin.u32 %v805_v57, %v5420_v28  ;;  %v2419_v26 = vshrl.u32 %v4652_v5, %v2418_v46  ;;  %vm2436_vm6 = vcmp.lt.s32.totalorder %v2416_v53, 2  ;;  %v2445_v4 = vsel %vm2437_vm4, %v2428_v6, %v2444_v16 }
 0x19c   : > { %vm2599_vm7 = vweird.f32 %v4823_v48  ;;  %v2446_v36 = vsel %vm2436_vm6, %v2443_v17, %v2445_v4  ;;  %v2447_v19 = vsel %vm2435_vm2, %v2425_v43, %v2428_v6  ;;  %v2448_v62 = vsel %vm2438_vm3, %v2434_v41, 1326507024 }
 0x19d   : > { %v2451_v21 = vshll.u32 %v2411_v49, 8  ;;  %vm2603_vm8 = vcmp.eq.s32.totalorder %v2601_v33, 0  ;;  %v807_v10 = vclz %v4043_v18  ;;  %v2439_v59 = vsel %vm2435_vm2, %v2419_v26, %v2422_v34 }
 0x19e   : > { %v2441_v12 = vsel %vm2437_vm4, %v2425_v43, %v2440_v55  ;;  %vm2606_vm9 = vcmp.eq.s32.totalorder %v2601_v33, 2  ;;  %v2449_v46 = vsel %vm2437_vm4, %v2431_v42, %v2448_v62  ;;  %v4054_v1 = vadd.s32 4294967169, %v1055_v24 }
 0x19f   : > { %v5438_v23 = vmul.u32.u64.low %v2451_v21, %v2446_v36  ;;  %v5439_v25 = vmul.u32.u64.high %v2451_v21, %v2446_v36, %v5438_v23  ;;  %v4044_v27 = vadd.s32 4294967294, %v807_v10  ;;  %v2450_v14 = vsel %vm2436_vm6, %v2447_v19, %v2449_v46 }
 0x1a0   : > { %v4465_v45 = vpop.eup %4464  ;;  %v5445_v29 = vand.u32 8388607, %v1051_v61  ;;  %v2442_v35 = vsel %vm2436_vm6, %v2439_v59, %v2441_v12  ;;  %v5448_v20 = vmul.u32.u64.low %v2451_v21, %v2450_v14  ;;  %v5449_v37 = vmul.u32.u64.high %v2451_v21, %v2450_v14, %v5448_v20 }
 0x1a1   : > { %v4467_v30 = vpop.eup %4466  ;;  %v2607_v50 = vxor.u32 2147483648, %v4465_v45  ;;  %v795_v34 = vadd.s32 %v5367_v38, %v5373_v56  ;;  %vm4045_vm10 = vcmp.lt.s32.totalorder %v4044_v27, 0  ;;  %v1061_v43 = vadd.s32 1, %v4054_v1 }
 0x1a2   : > { %v2604_v52 = vxor.u32 2147483648, %v4467_v30  ;;  %v810_v63 = vsel %vm4045_vm10, 0, %v4044_v27  ;;  %v825_v47 = vsub.s32 4, %v5407_v32  ;;  %v2461_v0 = vadd.s32 1, %v5439_v25 }
 0x1a3   : > { %v2608_v6 = vsel %vm2606_vm9, %v2607_v50, %v4467_v30  ;;  %v811_v2 = vsub.s32 32, %v810_v63  ;;  %v815_v49 = vsub.s32 4294967266, %v810_v63  ;;  %v2458_v42 = vmul.u32 %v2451_v21, %v2442_v35 }
 0x1a4   : > { %v2605_v53 = vsel %vm2603_vm8, %v4465_v45, %v2604_v52  ;;  %v812_v57 = vshll.u32 %v5420_v28, %v810_v63  ;;  %vm2460_vm12 = vc.u32 %v5449_v37, %v5438_v23  ;;  %vm1062_vm11 = vcmp.gt.s32.totalorder %v1061_v43, 0 }
 0x1a5   : > { %v2609_v24 = vsel %vm2602_vm5, %v2605_v53, %v2608_v6  ;;  %v813_v56 = vshrl.u32 %v795_v34, %v811_v2  ;;  %v816_v41 = vadd.s32 127, %v815_v49  ;;  %v2462_v55 = vsel %vm2460_vm12, %v2461_v0, %v5439_v25 }
 0x1a6   : > { %v2610_v38 = vsel %vm2599_vm7, nan, %v2609_v24  ;;  %vm741_vm13 = vcmp.lt.s32.totalorder %v4825_v51, 0  ;;  %v2463_v17 = vadd.s32 %v2462_v55, %v2458_v42  ;;  %v1063_v16 = vsel %vm1062_vm11, %v1061_v43, 0 }
 0x1a7   : > { %3878 = vst [vmem:[%s5126_s4 + $0x98] sm:$0xff] %v2610_v38  ;;  %v814_v33 = vor.u32 %v813_v56, %v812_v57  ;;  %v817_v18 = vshll.u32 %v816_v41, 23  ;;  %v826_v28 = vsel %vm741_vm13, %v825_v47, %v5407_v32  ;;  %v1065_v26 = vand.u32 31, %v1063_v16 }
 0x1a8   : > { %v2464_v4 = vadd.s32 536870912, %v2463_v17  ;;  %vm5471_vm14 = vcmp.le.f32.partialorder %v739_v31, 0.7853982  ;;  %v1059_v19 = vor.u32 8388608, %v5445_v29  ;;  %v2718_v12 = vand.u32 2139095040, %v5004_v44 }
 0x1a9   : > { %v818_v36 = vor.u32 4788187, %v817_v18  ;;  %v1066_v62 = vsub.s32 32, %v1065_v26  ;;  %v821_v21 = vcvt.s32.f32 %v814_v33  ;;  %v828_v10 = vsel %vm5471_vm14, 0, %v826_v28 }
 0x1aa   : > { %v2465_v59 = vshrl.u32 %v2464_v4, 30  ;;  %vm2405_vm15 = vcmp.lt.s32.totalorder %v4828_v58, 0  ;;  %v1068_v46 = vshll.u32 %v4652_v5, %v1065_v26  ;;  %v1071_v27 = vshll.u32 %v4653_v9, %v1065_v26 }
 0x1ab   : > { %v819_v32 = vand.u32 2147483647, %v818_v36  ;;  %v1069_v31 = vshrl.u32 %v4653_v9, %v1066_v62  ;;  %v1072_v25 = vshrl.u32 %v4654_v11, %v1066_v62  ;;  %v1075_v14 = vshrl.u32 %v4655_v13, %v1066_v62 }
 0x1ac   : > { %v2466_v45 = vshll.u32 %v2465_v59, 30  ;;  %v1078_v1 = vshrl.u32 %v4656_v15, %v1066_v62  ;;  %v1064_v30 = vshrl.u32 %v1063_v16, 5  ;;  %v1074_v50 = vshll.u32 %v4654_v11, %v1065_v26 }
 0x1ad   : > { %v822_v29 = vmul.f32 %v821_v21, %v819_v32  ;;  %v1077_v35 = vshll.u32 %v4655_v13, %v1065_v26  ;;  %v832_v20 = vadd.s32 3, %v828_v10  ;;  %v1070_v34 = vor.u32 %v1069_v31, %v1068_v46 }
 0x1ae   : > { %v5488_v52 = vsub.s32 %v2463_v17, %v2466_v45  ;;  %v1073_v43 = vor.u32 %v1072_v25, %v1071_v27  ;;  %v1076_v63 = vor.u32 %v1075_v14, %v1074_v50  ;;  %v1081_v0 = vshrl.u32 %v4657_v22, %v1066_v62 }
 0x1af   : > { %v823_v6 = vxor.u32 2147483648, %v822_v29  ;;  %v1079_v47 = vor.u32 %v1078_v1, %v1077_v35  ;;  %v2489_v2 = vsub.s32 4, %v2465_v59  ;;  %v1080_v49 = vshll.u32 %v4656_v15, %v1065_v26 }
 0x1b0   : > { %v2469_v53 = vsub.s32 0, %v5488_v52  ;;  %v5493_v42 = vshll.u32 %v1059_v19, 8  ;;  %v1067_v57 = vshrl.u32 %v4652_v5, %v1066_v62  ;;  %vm1083_vm0 = vcmp.lt.s32.totalorder %v1064_v30, 1 }
 0x1b1   : > { %v824_v24 = vsel %vm741_vm13, %v823_v6, %v822_v29  ;;  %v2719_v38 = vshrl.u32 %v2718_v12, 23  ;;  %v1082_v55 = vor.u32 %v1081_v0, %v1080_v49  ;;  %vm1086_vm1 = vcmp.lt.s32.totalorder %v1064_v30, 4 }
 0x1b2   : > { %v827_v56 = vsel %vm5471_vm14, %v4825_v51, %v824_v24  ;;  %v4107_v41 = vmin.u32 %v2469_v53, %v5488_v52  ;;  %v1088_v17 = vsel %vm1086_vm1, %v1076_v63, 2102212464  ;;  %v1091_v16 = vsel %vm1083_vm0, %v1070_v34, %v1073_v43 }
 0x1b3   : > { %4468 = vcosq.f32 %v827_v56  ;;  %v1092_v33 = vsel %vm1086_vm1, %v1079_v47, 920167782  ;;  %v2490_v28 = vsel %vm2405_vm15, %v2489_v2, %v2465_v59  ;;  %vm1085_vm2 = vcmp.lt.s32.totalorder %v1064_v30, 3 }
 0x1b4   : > { %4470 = vsinq.f32 %v827_v56  ;;  %v2471_v18 = vclz %v4107_v41  ;;  %vm1084_vm3 = vcmp.lt.s32.totalorder %v1064_v30, 2  ;;  %v1087_v26 = vsel %vm1083_vm0, %v1067_v57, %v1070_v34  ;;  %v5533_v34 = vpop.f32.mrb[7].mxu1 }
 0x1b5   : > { %v1093_v4 = vsel %vm1085_vm2, %v1076_v63, %v1092_v33  ;;  %v1095_v48 = vsel %vm1083_vm0, %v1073_v43, %v1076_v63  ;;  %v1089_v19 = vsel %vm1085_vm2, %v1073_v43, %v1088_v17  ;;  %v1096_v21 = vsel %vm1086_vm1, %v1082_v55, 1326507024 }
 0x1b6   : > { %v4108_v36 = vadd.s32 4294967294, %v2471_v18  ;;  %v1094_v62 = vsel %vm1084_vm3, %v1091_v16, %v1093_v4  ;;  %v1097_v10 = vsel %vm1085_vm2, %v1079_v47, %v1096_v21  ;;  %v4118_v59 = vadd.s32 4294967169, %v2719_v38 }
 0x1b7   : > { %v5512_v12 = vmul.u32.u64.low %v5493_v42, %v1094_v62  ;;  %v5513_v32 = vmul.u32.u64.high %v5493_v42, %v1094_v62, %v5512_v12  ;;  %vm5518_vm4 = vcmp.le.f32.partialorder %v2403_v39, 0.7853982  ;;  %v2459_v31 = vadd.s32 %v5438_v23, %v5449_v37 }
 0x1b8   : > { %vm4109_vm5 = vcmp.lt.s32.totalorder %v4108_v36, 0  ;;  %v1098_v25 = vsel %vm1084_vm3, %v1095_v48, %v1097_v10  ;;  %v2725_v1 = vadd.s32 1, %v4118_v59  ;;  %vm831_vm6 = vweird.f32 %v4825_v51 }
 0x1b9   : > { %v2474_v45 = vsel %vm4109_vm5, 0, %v4108_v36  ;;  %v5526_v27 = vmul.u32.u64.low %v5493_v42, %v1098_v25  ;;  %v5527_v14 = vmul.u32.u64.high %v5493_v42, %v1098_v25, %v5526_v27  ;;  %v2492_v39 = vsel %vm5518_vm4, 0, %v2490_v28 }
 0x1ba   : > { %v2475_v29 = vsub.s32 32, %v2474_v45  ;;  %v2479_v50 = vsub.s32 4294967266, %v2474_v45  ;;  %v1090_v35 = vsel %vm1084_vm3, %v1087_v26, %v1089_v19  ;;  %v833_v23 = vand.u32 3, %v832_v20 }
 0x1bb   : > { %v1109_v37 = vadd.s32 1, %v5513_v32  ;;  %v2715_v43 = vand.u32 2147483647, %v5004_v44  ;;  %vm2726_vm7 = vcmp.gt.s32.totalorder %v2725_v1, 0  ;;  %v2476_v6 = vshll.u32 %v5488_v52, %v2474_v45 }
 0x1bc   : > { %v2477_v63 = vshrl.u32 %v2459_v31, %v2475_v29  ;;  %v2480_v47 = vadd.s32 127, %v2479_v50  ;;  %v2727_v0 = vsel %vm2726_vm7, %v2725_v1, 0  ;;  %v2496_v2 = vadd.s32 3, %v2492_v39 }
 0x1bd   : > { %v4469_v53 = vpop.eup %4468  ;;  %v1106_v49 = vmul.u32 %v5493_v42, %v1090_v35  ;;  %vm1108_vm8 = vc.u32 %v5527_v14, %v5512_v12  ;;  %v2729_v30 = vand.u32 31, %v2727_v0  ;;  %vm838_vm9 = vcmp.eq.s32.totalorder %v833_v23, 2 }
 0x1be   : > { %v4471_v24 = vpop.eup %4470  ;;  %v839_v20 = vxor.u32 2147483648, %v4469_v53  ;;  %v2478_v57 = vor.u32 %v2477_v63, %v2476_v6  ;;  %v2481_v38 = vshll.u32 %v2480_v47, 23  ;;  %v1110_v56 = vsel %vm1108_vm8, %v1109_v37, %v5513_v32 }
 0x1bf   : > { %v836_v41 = vxor.u32 2147483648, %v4471_v24  ;;  %v1111_v52 = vadd.s32 %v1110_v56, %v1106_v49  ;;  %v2730_v55 = vsub.s32 32, %v2729_v30  ;;  %vm834_vm10 = vcmp.lt.s32.totalorder %v833_v23, 2 }
 0x1c0   : > { %vm835_vm12 = vcmp.eq.s32.totalorder %v833_v23, 0  ;;  %v840_v17 = vsel %vm838_vm9, %v839_v20, %v4471_v24  ;;  %v2482_v16 = vor.u32 4788187, %v2481_v38  ;;  %v5542_v33 = vand.u32 3, %v2496_v2 }
 0x1c1   : > { %v837_v42 = vsel %vm835_vm12, %v4469_v53, %v836_v41  ;;  %v1112_v18 = vadd.s32 536870912, %v1111_v52  ;;  %v2722_v28 = vand.u32 8388607, %v2715_v43  ;;  %v2485_v48 = vcvt.s32.f32 %v2478_v57 }
 0x1c2   : > { %v841_v26 = vsel %vm834_vm10, %v837_v42, %v840_v17  ;;  %v2483_v4 = vand.u32 2147483647, %v2482_v16  ;;  %v2733_v36 = vshrl.u32 %v4653_v9, %v2730_v55  ;;  %v2736_v21 = vshrl.u32 %v4654_v11, %v2730_v55 }
 0x1c3   : > { %v842_v19 = vsel %vm831_vm6, nan, %v841_v26  ;;  %v1113_v62 = vshrl.u32 %v1112_v18, 30  ;;  %v2739_v10 = vshrl.u32 %v4655_v13, %v2730_v55  ;;  %v2728_v59 = vshrl.u32 %v2727_v0, 5 }
 0x1c4   : > { %3861 = vst [vmem:[%s5126_s4 + $0x10] sm:$0xff] %v842_v19  ;;  %v2486_v32 = vmul.f32 %v2485_v48, %v2483_v4  ;;  %v2741_v31 = vshll.u32 %v4655_v13, %v2729_v30  ;;  %v2742_v25 = vshrl.u32 %v4656_v15, %v2730_v55  ;;  %v2732_v27 = vshll.u32 %v4652_v5, %v2729_v30 }
 0x1c5   : > { %v1114_v45 = vshll.u32 %v1113_v62, 30  ;;  %v2735_v1 = vshll.u32 %v4653_v9, %v2729_v30  ;;  %v2738_v51 = vshll.u32 %v4654_v11, %v2729_v30  ;;  %v2744_v39 = vshll.u32 %v4656_v15, %v2729_v30 }
 0x1c6   : > { %v2487_v29 = vxor.u32 2147483648, %v2486_v32  ;;  %v2743_v50 = vor.u32 %v2742_v25, %v2741_v31  ;;  %v2745_v35 = vshrl.u32 %v4657_v22, %v2730_v55  ;;  %vm1053_vm11 = vcmp.lt.s32.totalorder %v4908_v54, 0 }
 0x1c7   : > { %v5560_v23 = vsub.s32 %v1111_v52, %v1114_v45  ;;  %v2734_v37 = vor.u32 %v2733_v36, %v2732_v27  ;;  %v2737_v6 = vor.u32 %v2736_v21, %v2735_v1  ;;  %v2740_v63 = vor.u32 %v2739_v10, %v2738_v51  ;;  %v5594_v27 = vpop.f32.mrb[8].mxu0 }
 0x1c8   : > { %v2488_v47 = vsel %vm2405_vm15, %v2487_v29, %v2486_v32  ;;  %v2723_v0 = vor.u32 8388608, %v2722_v28  ;;  %v2746_v53 = vor.u32 %v2745_v35, %v2744_v39  ;;  %v950_v2 = vand.u32 2139095040, %v5113_v3 }
 0x1c9   : > { %v2491_v49 = vsel %vm5518_vm4, %v4828_v58, %v2488_v47  ;;  %v1117_v30 = vsub.s32 0, %v5560_v23  ;;  %v2731_v24 = vshrl.u32 %v4652_v5, %v2730_v55  ;;  %vm2750_vm13 = vcmp.lt.s32.totalorder %v2728_v59, 4 }
 0x1ca   : > { %4472 = vcosq.f32 %v2491_v49  ;;  %vm5572_vm14 = vcmp.le.f32.partialorder %v1051_v61, 0.7853982  ;;  %vm2747_vm15 = vcmp.lt.s32.totalorder %v2728_v59, 1  ;;  %vm2749_vm0 = vcmp.lt.s32.totalorder %v2728_v59, 3 }
 0x1cb   : > { %v2756_v57 = vsel %vm2750_vm13, %v2743_v50, 920167782  ;;  %4474 = vsinq.f32 %v2491_v49  ;;  %v4055_v38 = vmin.u32 %v1117_v30, %v5560_v23  ;;  %v2752_v46 = vsel %vm2750_vm13, %v2740_v63, 2102212464 }
 0x1cc   : > { %v2755_v56 = vsel %vm2747_vm15, %v2734_v37, %v2737_v6  ;;  %v1137_v41 = vsub.s32 4, %v1113_v62  ;;  %v2757_v52 = vsel %vm2749_vm0, %v2740_v63, %v2756_v57  ;;  %v2759_v55 = vsel %vm2747_vm15, %v2737_v6, %v2740_v63 }
 0x1cd   : > { %v2760_v17 = vsel %vm2750_vm13, %v2746_v53, 1326507024  ;;  %v1119_v16 = vclz %v4055_v38  ;;  %vm2748_vm1 = vcmp.lt.s32.totalorder %v2728_v59, 2  ;;  %v2751_v42 = vsel %vm2747_vm15, %v2731_v24, %v2734_v37 }
 0x1ce   : > { %v2763_v61 = vshll.u32 %v2723_v0, 8  ;;  %v2753_v18 = vsel %vm2749_vm0, %v2737_v6, %v2752_v46  ;;  %v2758_v28 = vsel %vm2748_vm1, %v2755_v56, %v2757_v52  ;;  %v2761_v26 = vsel %vm2749_vm0, %v2743_v50, %v2760_v17 }
 0x1cf   : > { %v951_v4 = vshrl.u32 %v950_v2, 23  ;;  %v4056_v48 = vadd.s32 4294967294, %v1119_v16  ;;  %v2762_v36 = vsel %vm2748_vm1, %v2759_v55, %v2761_v26  ;;  %v1138_v10 = vsel %vm1053_vm11, %v1137_v41, %v1113_v62 }
 0x1d0   : > { %v5582_v19 = vmul.u32.u64.low %v2763_v61, %v2758_v28  ;;  %v5583_v21 = vmul.u32.u64.high %v2763_v61, %v2758_v28, %v5582_v19  ;;  %v5588_v32 = vmul.u32.u64.low %v2763_v61, %v2762_v36  ;;  %v5589_v31 = vmul.u32.u64.high %v2763_v61, %v2762_v36, %v5588_v32 }
 0x1d1   : > { %v4050_v25 = vadd.s32 4294967169, %v951_v4  ;;  %vm2499_vm2 = vcmp.eq.s32.totalorder %v5542_v33, 0  ;;  %vm2502_vm3 = vcmp.eq.s32.totalorder %v5542_v33, 2  ;;  %vm4057_vm4 = vcmp.lt.s32.totalorder %v4056_v48, 0 }
 0x1d2   : > { %v2754_v45 = vsel %vm2748_vm1, %v2751_v42, %v2753_v18  ;;  %v1107_v1 = vadd.s32 %v5512_v12, %v5527_v14  ;;  %v1122_v51 = vsel %vm4057_vm4, 0, %v4056_v48  ;;  %v947_v29 = vand.u32 2147483647, %v5113_v3 }
 0x1d3   : > { %v957_v62 = vadd.s32 1, %v4050_v25  ;;  %v1123_v50 = vsub.s32 32, %v1122_v51  ;;  %v1127_v39 = vsub.s32 4294967266, %v1122_v51  ;;  %v1140_v35 = vsel %vm5572_vm14, 0, %v1138_v10 }
 0x1d4   : > { %v2773_v37 = vadd.s32 1, %v5583_v21  ;;  %v4473_v6 = vpop.eup %4472  ;;  %v1124_v59 = vshll.u32 %v5560_v23, %v1122_v51  ;;  %v2770_v63 = vmul.u32 %v2763_v61, %v2754_v45  ;;  %vm2772_vm5 = vc.u32 %v5589_v31, %v5582_v19 }
 0x1d5   : > { %vm958_vm6 = vcmp.gt.s32.totalorder %v957_v62, 0  ;;  %v4475_v12 = vpop.eup %4474  ;;  %v2503_v14 = vxor.u32 2147483648, %v4473_v6  ;;  %v1125_v47 = vshrl.u32 %v1107_v1, %v1123_v50  ;;  %v1128_v0 = vadd.s32 127, %v1127_v39 }
 0x1d6   : > { %v2774_v53 = vsel %vm2772_vm5, %v2773_v37, %v5583_v21  ;;  %v2500_v2 = vxor.u32 2147483648, %v4475_v12  ;;  %v1144_v49 = vadd.s32 3, %v1140_v35  ;;  %v959_v24 = vsel %vm958_vm6, %v957_v62, 0 }
 0x1d7   : > { %v2775_v30 = vadd.s32 %v2774_v53, %v2770_v63  ;;  %v2504_v57 = vsel %vm2502_vm3, %v2503_v14, %v4475_v12  ;;  %v1126_v23 = vor.u32 %v1125_v47, %v1124_v59  ;;  %v1129_v38 = vshll.u32 %v1128_v0, 23 }
 0x1d8   : > { %v954_v46 = vand.u32 8388607, %v947_v29  ;;  %vm2498_vm7 = vcmp.lt.s32.totalorder %v5542_v33, 2  ;;  %v2501_v56 = vsel %vm2499_vm2, %v4473_v6, %v2500_v2  ;;  %v961_v52 = vand.u32 31, %v959_v24 }
 0x1d9   : > { %v2776_v41 = vadd.s32 536870912, %v2775_v30  ;;  %vm2495_vm8 = vweird.f32 %v4828_v58  ;;  %v2505_v55 = vsel %vm2498_vm7, %v2501_v56, %v2504_v57  ;;  %v1130_v17 = vor.u32 4788187, %v1129_v38 }
 0x1da   : > { %v2506_v16 = vsel %vm2495_vm8, nan, %v2505_v55  ;;  %v962_v61 = vsub.s32 32, %v961_v52  ;;  %v1133_v28 = vcvt.s32.f32 %v1126_v23  ;;  %v5617_v26 = vand.u32 3, %v1144_v49 }
 0x1db   : > { %v5614_v42 = vshrl.u32 %v2776_v41, 30  ;;  %3877 = vst [vmem:[%s5126_s4 + $0x90] sm:$0xff] %v2506_v16  ;;  %v1131_v18 = vand.u32 2147483647, %v1130_v17  ;;  %v955_v4 = vor.u32 8388608, %v954_v46  ;;  %v964_v33 = vshll.u32 %v4652_v5, %v961_v52 }
 0x1dc   : > { %v965_v36 = vshrl.u32 %v4653_v9, %v962_v61  ;;  %v2614_v58 = vand.u32 2139095040, %v5210_v8  ;;  %v968_v10 = vshrl.u32 %v4654_v11, %v962_v61  ;;  %v971_v32 = vshrl.u32 %v4655_v13, %v962_v61 }
 0x1dd   : > { %v2778_v48 = vshll.u32 %v5614_v42, 30  ;;  %v1134_v21 = vmul.f32 %v1133_v28, %v1131_v18  ;;  %v974_v25 = vshrl.u32 %v4656_v15, %v962_v61  ;;  %v960_v1 = vshrl.u32 %v959_v24, 5 }
 0x1de   : > { %v967_v51 = vshll.u32 %v4653_v9, %v961_v52  ;;  %v970_v62 = vshll.u32 %v4654_v11, %v961_v52  ;;  %v966_v39 = vor.u32 %v965_v36, %v964_v33  ;;  %v973_v35 = vshll.u32 %v4655_v13, %v961_v52 }
 0x1df   : > { %v5626_v45 = vsub.s32 %v2775_v30, %v2778_v48  ;;  %v1135_v50 = vxor.u32 2147483648, %v1134_v21  ;;  %v976_v37 = vshll.u32 %v4656_v15, %v961_v52  ;;  %v977_v12 = vshrl.u32 %v4657_v22, %v962_v61 }
 0x1e0   : > { %v969_v59 = vor.u32 %v968_v10, %v967_v51  ;;  %v972_v63 = vor.u32 %v971_v32, %v970_v62  ;;  %v2771_v47 = vadd.s32 %v5582_v19, %v5589_v31  ;;  %v975_v0 = vor.u32 %v974_v25, %v973_v35  ;;  %v5655_v51 = vpop.f32.mrb[8].mxu1 }
 0x1e1   : > { %v2781_v6 = vsub.s32 0, %v5626_v45  ;;  %v1136_v14 = vsel %vm1053_vm11, %v1135_v50, %v1134_v21  ;;  %v995_v53 = vshll.u32 %v955_v4, 8  ;;  %v978_v30 = vor.u32 %v977_v12, %v976_v37 }
 0x1e2   : > { %v1139_v2 = vsel %vm5572_vm14, %v4908_v54, %v1136_v14  ;;  %v2615_v24 = vshrl.u32 %v2614_v58, 23  ;;  %v963_v57 = vshrl.u32 %v4652_v5, %v962_v61  ;;  %vm979_vm9 = vcmp.lt.s32.totalorder %v960_v1, 1 }
 0x1e3   : > { %v4119_v49 = vmin.u32 %v2781_v6, %v5626_v45  ;;  %4476 = vcosq.f32 %v1139_v2  ;;  %vm982_vm10 = vcmp.lt.s32.totalorder %v960_v1, 4  ;;  %vm2717_vm12 = vcmp.lt.s32.totalorder %v5004_v44, 0 }
 0x1e4   : > { %4478 = vsinq.f32 %v1139_v2  ;;  %v984_v19 = vsel %vm982_vm10, %v972_v63, 2102212464  ;;  %v987_v31 = vsel %vm979_vm9, %v966_v39, %v969_v59  ;;  %vm980_vm11 = vcmp.lt.s32.totalorder %v960_v1, 2 }
 0x1e5   : > { %v2783_v23 = vclz %v4119_v49  ;;  %vm981_vm13 = vcmp.lt.s32.totalorder %v960_v1, 3  ;;  %v988_v38 = vsel %vm982_vm10, %v975_v0, 920167782  ;;  %v991_v20 = vsel %vm979_vm9, %v969_v59, %v972_v63 }
 0x1e6   : > { %v983_v56 = vsel %vm979_vm9, %v963_v57, %v966_v39  ;;  %v989_v41 = vsel %vm981_vm13, %v972_v63, %v988_v38  ;;  %v992_v52 = vsel %vm982_vm10, %v978_v30, 1326507024  ;;  %v985_v55 = vsel %vm981_vm13, %v969_v59, %v984_v19 }
 0x1e7   : > { %v4120_v46 = vadd.s32 4294967294, %v2783_v23  ;;  %v990_v17 = vsel %vm980_vm11, %v987_v31, %v989_v41  ;;  %v993_v16 = vsel %vm981_vm13, %v975_v0, %v992_v52  ;;  %v4114_v61 = vadd.s32 4294967169, %v2615_v24 }
 0x1e8   : > { %v994_v18 = vsel %vm980_vm11, %v991_v20, %v993_v16  ;;  %v5646_v28 = vmul.u32.u64.low %v995_v53, %v990_v17  ;;  %v5647_v4 = vmul.u32.u64.high %v995_v53, %v990_v17, %v5646_v28  ;;  %v2801_v33 = vsub.s32 4, %v5614_v42 }
 0x1e9   : > { %vm4121_vm14 = vcmp.lt.s32.totalorder %v4120_v46, 0  ;;  %v5651_v36 = vmul.u32.u64.low %v995_v53, %v994_v18  ;;  %v5652_v58 = vmul.u32.u64.high %v995_v53, %v994_v18, %v5651_v36  ;;  %v986_v32 = vsel %vm980_vm11, %v983_v56, %v985_v55 }
 0x1ea   : > { %v2786_v48 = vsel %vm4121_vm14, 0, %v4120_v46  ;;  %v2621_v25 = vadd.s32 1, %v4114_v61  ;;  %vm1147_vm15 = vcmp.eq.s32.totalorder %v5617_v26, 0  ;;  %vm5660_vm0 = vcmp.le.f32.partialorder %v2715_v43, 0.7853982 }
 0x1eb   : > { %v2787_v21 = vsub.s32 32, %v2786_v48  ;;  %v2791_v10 = vsub.s32 4294967266, %v2786_v48  ;;  %v2788_v50 = vshll.u32 %v5626_v45, %v2786_v48  ;;  %v2611_v39 = vand.u32 2147483647, %v5210_v8 }
 0x1ec   : > { %v1005_v1 = vadd.s32 1, %v5647_v4  ;;  %vm2622_vm1 = vcmp.gt.s32.totalorder %v2621_v25, 0  ;;  %v2802_v59 = vsel %vm2717_vm12, %v2801_v33, %v5614_v42  ;;  %v1002_v63 = vmul.u32 %v995_v53, %v986_v32 }
 0x1ed   : > { %v2789_v35 = vshrl.u32 %v2771_v47, %v2787_v21  ;;  %v2792_v37 = vadd.s32 127, %v2791_v10  ;;  %v4477_v6 = vpop.eup %4476  ;;  %vm1004_vm2 = vc.u32 %v5652_v58, %v5646_v28  ;;  %v2623_v43 = vsel %vm2622_vm1, %v2621_v25, 0 }
 0x1ee   : > { %v4479_v12 = vpop.eup %4478  ;;  %v1151_v14 = vxor.u32 2147483648, %v4477_v6  ;;  %v1006_v47 = vsel %vm1004_vm2, %v1005_v1, %v5647_v4  ;;  %vm1150_vm3 = vcmp.eq.s32.totalorder %v5617_v26, 2  ;;  %v2625_v30 = vand.u32 31, %v2623_v43 }
 0x1ef   : > { %v2790_v45 = vor.u32 %v2789_v35, %v2788_v50  ;;  %v2793_v0 = vshll.u32 %v2792_v37, 23  ;;  %v1148_v2 = vxor.u32 2147483648, %v4479_v12  ;;  %v1007_v49 = vadd.s32 %v1006_v47, %v1002_v63 }
 0x1f0   : > { %v1152_v24 = vsel %vm1150_vm3, %v1151_v14, %v4479_v12  ;;  %v2804_v42 = vsel %vm5660_vm0, 0, %v2802_v59  ;;  %v2618_v53 = vand.u32 8388607, %v2611_v39  ;;  %vm1146_vm4 = vcmp.lt.s32.totalorder %v5617_v26, 2 }
 0x1f1   : > { %v2794_v57 = vor.u32 4788187, %v2793_v0  ;;  %v1149_v23 = vsel %vm1147_vm15, %v4477_v6, %v1148_v2  ;;  %v1008_v19 = vadd.s32 536870912, %v1007_v49  ;;  %v2626_v31 = vsub.s32 32, %v2625_v30 }
 0x1f2   : > { %vm1143_vm5 = vweird.f32 %v4908_v54  ;;  %v1153_v38 = vsel %vm1146_vm4, %v1149_v23, %v1152_v24  ;;  %v2797_v46 = vcvt.s32.f32 %v2790_v45  ;;  %v2808_v41 = vadd.s32 3, %v2804_v42 }
 0x1f3   : > { %v2795_v20 = vand.u32 2147483647, %v2794_v57  ;;  %v1154_v56 = vsel %vm1143_vm5, nan, %v1153_v38  ;;  %v1009_v52 = vshrl.u32 %v1008_v19, 30  ;;  %v2629_v55 = vshrl.u32 %v4653_v9, %v2626_v31 }
 0x1f4   : > { %3864 = vst [vmem:[%s5126_s4 + $0x28] sm:$0xff] %v1154_v56  ;;  %v2619_v16 = vor.u32 8388608, %v2618_v53  ;;  %v2632_v61 = vshrl.u32 %v4654_v11, %v2626_v31  ;;  %v2635_v26 = vshrl.u32 %v4655_v13, %v2626_v31  ;;  %v2628_v4 = vshll.u32 %v4652_v5, %v2625_v30 }
 0x1f5   : > { %v2798_v17 = vmul.f32 %v2797_v46, %v2795_v20  ;;  %v1010_v18 = vshll.u32 %v1009_v52, 30  ;;  %v2631_v54 = vshll.u32 %v4653_v9, %v2625_v30  ;;  %v2638_v48 = vshrl.u32 %v4656_v15, %v2626_v31 }
 0x1f6   : > { %v2624_v36 = vshrl.u32 %v2623_v43, 5  ;;  %v2634_v21 = vshll.u32 %v4654_v11, %v2625_v30  ;;  %v2637_v10 = vshll.u32 %v4655_v13, %v2625_v30  ;;  %v2630_v25 = vor.u32 %v2629_v55, %v2628_v4 }
 0x1f7   : > { %v2799_v33 = vxor.u32 2147483648, %v2798_v17  ;;  %v5691_v32 = vsub.s32 %v1007_v49, %v1010_v18  ;;  %v2633_v50 = vor.u32 %v2632_v61, %v2631_v54  ;;  %v2641_v35 = vshrl.u32 %v4657_v22, %v2626_v31  ;;  %v5721_v61 = vpop.f32.mrb[9].mxu0 }
 0x1f8   : > { %vm949_vm6 = vcmp.lt.s32.totalorder %v5113_v3, 0  ;;  %v2636_v1 = vor.u32 %v2635_v26, %v2634_v21  ;;  %v2639_v6 = vor.u32 %v2638_v48, %v2637_v10  ;;  %v2640_v59 = vshll.u32 %v4656_v15, %v2625_v30 }
 0x1f9   : > { %v2800_v37 = vsel %vm2717_vm12, %v2799_v33, %v2798_v17  ;;  %v5701_v43 = vand.u32 3, %v2808_v41  ;;  %v1013_v12 = vsub.s32 0, %v5691_v32  ;;  %v1259_v14 = vand.u32 2147483647, %v5307_v40 }
 0x1fa   : > { %v2803_v63 = vsel %vm5660_vm0, %v5004_v44, %v2800_v37  ;;  %v2627_v45 = vshrl.u32 %v4652_v5, %v2626_v31  ;;  %v2642_v0 = vor.u32 %v2641_v35, %v2640_v59  ;;  %v2659_v47 = vshll.u32 %v2619_v16, 8 }
 0x1fb   : > { %4480 = vcosq.f32 %v2803_v63  ;;  %vm5708_vm7 = vcmp.le.f32.partialorder %v947_v29, 0.7853982  ;;  %v4051_v62 = vmin.u32 %v1013_v12, %v5691_v32  ;;  %vm2643_vm8 = vcmp.lt.s32.totalorder %v2624_v36, 1 }
 0x1fc   : > { %4482 = vsinq.f32 %v2803_v63  ;;  %vm2646_vm9 = vcmp.lt.s32.totalorder %v2624_v36, 4  ;;  %v1033_v49 = vsub.s32 4, %v1009_v52  ;;  %v2651_v24 = vsel %vm2643_vm8, %v2630_v25, %v2633_v50 }
 0x1fd   : > { %v2648_v30 = vsel %vm2646_vm9, %v2636_v1, 2102212464  ;;  %v2652_v57 = vsel %vm2646_vm9, %v2639_v6, 920167782  ;;  %v1015_v42 = vclz %v4051_v62  ;;  %vm2644_vm10 = vcmp.lt.s32.totalorder %v2624_v36, 2 }
 0x1fe   : > { %vm2645_vm12 = vcmp.lt.s32.totalorder %v2624_v36, 3  ;;  %v2655_v53 = vsel %vm2643_vm8, %v2633_v50, %v2636_v1  ;;  %v2647_v23 = vsel %vm2643_vm8, %v2627_v45, %v2630_v25  ;;  %v2656_v31 = vsel %vm2646_vm9, %v2642_v0, 1326507024 }
 0x1ff   : > { %v2653_v19 = vsel %vm2645_vm12, %v2636_v1, %v2652_v57  ;;  %v1262_v29 = vand.u32 2139095040, %v5307_v40  ;;  %v4052_v38 = vadd.s32 4294967294, %v1015_v42  ;;  %v2649_v20 = vsel %vm2645_vm12, %v2633_v50, %v2648_v30 }
 0x200   : > { %v2654_v46 = vsel %vm2644_vm10, %v2651_v24, %v2653_v19  ;;  %v2657_v56 = vsel %vm2645_vm12, %v2639_v6, %v2656_v31  ;;  %vm2810_vm11 = vcmp.lt.s32.totalorder %v5701_v43, 2  ;;  %v1034_v26 = vsel %vm949_vm6, %v1033_v49, %v1009_v52 }
 0x201   : > { %v2658_v41 = vsel %vm2644_vm10, %v2655_v53, %v2657_v56  ;;  %v5717_v55 = vmul.u32.u64.low %v2659_v47, %v2654_v46  ;;  %v5718_v17 = vmul.u32.u64.high %v2659_v47, %v2654_v46, %v5717_v55  ;;  %v1263_v16 = vshrl.u32 %v1262_v29, 23 }
 0x202   : > { %vm4053_vm13 = vcmp.lt.s32.totalorder %v4052_v38, 0  ;;  %v5725_v18 = vmul.u32.u64.low %v2659_v47, %v2658_v41  ;;  %v5726_v4 = vmul.u32.u64.high %v2659_v47, %v2658_v41, %v5725_v18  ;;  %vm2811_vm14 = vcmp.eq.s32.totalorder %v5701_v43, 0 }
 0x203   : > { %vm2814_vm15 = vcmp.eq.s32.totalorder %v5701_v43, 2  ;;  %v1018_v54 = vsel %vm4053_vm13, 0, %v4052_v38  ;;  %v4062_v48 = vadd.s32 4294967169, %v1263_v16  ;;  %v1003_v33 = vadd.s32 %v5646_v28, %v5652_v58 }
 0x204   : > { %v1019_v21 = vsub.s32 32, %v1018_v54  ;;  %v1023_v10 = vsub.s32 4294967266, %v1018_v54  ;;  %v2650_v25 = vsel %vm2644_vm10, %v2647_v23, %v2649_v20  ;;  %v1036_v52 = vsel %vm5708_vm7, 0, %v1034_v26 }
 0x205   : > { %v4481_v50 = vpop.eup %4480  ;;  %v2669_v35 = vadd.s32 1, %v5718_v17  ;;  %v1266_v37 = vand.u32 8388607, %v1259_v14  ;;  %v1269_v1 = vadd.s32 1, %v4062_v48  ;;  %v1020_v63 = vshll.u32 %v5691_v32, %v1018_v54 }
 0x206   : > { %v4483_v6 = vpop.eup %4482  ;;  %v2815_v59 = vxor.u32 2147483648, %v4481_v50  ;;  %v1021_v12 = vshrl.u32 %v1003_v33, %v1019_v21  ;;  %v1024_v28 = vadd.s32 127, %v1023_v10  ;;  %v2666_v45 = vmul.u32 %v2659_v47, %v2650_v25 }
 0x207   : > { %v2812_v58 = vxor.u32 2147483648, %v4483_v6  ;;  %vm2668_vm0 = vc.u32 %v5726_v4, %v5717_v55  ;;  %vm1270_vm1 = vcmp.gt.s32.totalorder %v1269_v1, 0  ;;  %v1040_v32 = vadd.s32 3, %v1036_v52 }
 0x208   : > { %v2816_v36 = vsel %vm2814_vm15, %v2815_v59, %v4483_v6  ;;  %v1022_v0 = vor.u32 %v1021_v12, %v1020_v63  ;;  %v1025_v62 = vshll.u32 %v1024_v28, 23  ;;  %v2670_v49 = vsel %vm2668_vm0, %v2669_v35, %v5718_v17 }
 0x209   : > { %v2813_v30 = vsel %vm2811_vm14, %v4481_v50, %v2812_v58  ;;  %v2671_v24 = vadd.s32 %v2670_v49, %v2666_v45  ;;  %v1271_v57 = vsel %vm1270_vm1, %v1269_v1, 0  ;;  %vm2807_vm2 = vweird.f32 %v5004_v44 }
 0x20a   : > { %v2817_v47 = vsel %vm2810_vm11, %v2813_v30, %v2816_v36  ;;  %v1026_v42 = vor.u32 4788187, %v1025_v62  ;;  %v1267_v53 = vor.u32 8388608, %v1266_v37  ;;  %v1273_v31 = vand.u32 31, %v1271_v57 }
 0x20b   : > { %v2818_v23 = vsel %vm2807_vm2, nan, %v2817_v47  ;;  %v2672_v19 = vadd.s32 536870912, %v2671_v24  ;;  %v1029_v38 = vcvt.s32.f32 %v1022_v0  ;;  %v5750_v20 = vand.u32 3, %v1040_v32 }
 0x20c   : > { %3880 = vst [vmem:[%s5126_s4 + $0xa8] sm:$0xff] %v2818_v23  ;;  %v1027_v29 = vand.u32 2147483647, %v1026_v42  ;;  %v1274_v56 = vsub.s32 32, %v1273_v31  ;;  %v5752_v17 = vshrl.u32 %v1271_v57, 5  ;;  %v5754_v16 = vshll.u32 %v1267_v53, 8 }
 0x20d   : > { %v2673_v46 = vshrl.u32 %v2672_v19, 30  ;;  %v2926_v44 = vand.u32 2139095040, %v5360_v60  ;;  %vm2613_vm3 = vcmp.lt.s32.totalorder %v5210_v8, 0  ;;  %v1276_v26 = vshll.u32 %v4652_v5, %v1273_v31 }
 0x20e   : > { %v1030_v41 = vmul.f32 %v1029_v38, %v1027_v29  ;;  %v1277_v18 = vshrl.u32 %v4653_v9, %v1274_v56  ;;  %v1279_v54 = vshll.u32 %v4653_v9, %v1273_v31  ;;  %v1280_v33 = vshrl.u32 %v4654_v11, %v1274_v56 }
 0x20f   : > { %v2674_v43 = vshll.u32 %v2673_v46, 30  ;;  %v1283_v21 = vshrl.u32 %v4655_v13, %v1274_v56  ;;  %v1286_v10 = vshrl.u32 %v4656_v15, %v1274_v56  ;;  %v1282_v50 = vshll.u32 %v4654_v11, %v1273_v31 }
 0x210   : > { %v1031_v48 = vxor.u32 2147483648, %v1030_v41  ;;  %v1285_v52 = vshll.u32 %v4655_v13, %v1273_v31  ;;  %v1289_v35 = vshrl.u32 %v4657_v22, %v1274_v56  ;;  %v1278_v1 = vor.u32 %v1277_v18, %v1276_v26 }
 0x211   : > { %v5764_v25 = vsub.s32 %v2671_v24, %v2674_v43  ;;  %v1281_v6 = vor.u32 %v1280_v33, %v1279_v54  ;;  %v1288_v59 = vshll.u32 %v4656_v15, %v1273_v31  ;;  %v1284_v28 = vor.u32 %v1283_v21, %v1282_v50  ;;  %v5807_v33 = vpop.f32.mrb[9].mxu1 }
 0x212   : > { %v1032_v37 = vsel %vm949_vm6, %v1031_v48, %v1030_v41  ;;  %v1287_v58 = vor.u32 %v1286_v10, %v1285_v52  ;;  %v2697_v45 = vsub.s32 4, %v2673_v46  ;;  %v2927_v0 = vshrl.u32 %v2926_v44, 23 }
 0x213   : > { %v1035_v63 = vsel %vm5708_vm7, %v5113_v3, %v1032_v37  ;;  %v2677_v12 = vsub.s32 0, %v5764_v25  ;;  %v1290_v36 = vor.u32 %v1289_v35, %v1288_v59  ;;  %vm5778_vm4 = vcmp.le.f32.partialorder %v2611_v39, 0.7853982 }
 0x214   : > { %4484 = vcosq.f32 %v1035_v63  ;;  %vm1291_vm5 = vcmp.lt.s32.totalorder %v5752_v17, 1  ;;  %vm1294_vm6 = vcmp.lt.s32.totalorder %v5752_v17, 4  ;;  %vm1292_vm7 = vcmp.lt.s32.totalorder %v5752_v17, 2 }
 0x215   : > { %4486 = vsinq.f32 %v1035_v63  ;;  %v4115_v49 = vmin.u32 %v2677_v12, %v5764_v25  ;;  %vm1293_vm8 = vcmp.lt.s32.totalorder %v5752_v17, 3  ;;  %v1299_v2 = vsel %vm1291_vm5, %v1278_v1, %v1281_v6 }
 0x216   : > { %v1300_v30 = vsel %vm1294_vm6, %v1287_v58, 920167782  ;;  %v1275_v24 = vshrl.u32 %v4652_v5, %v1274_v56  ;;  %v1296_v57 = vsel %vm1294_vm6, %v1284_v28, 2102212464  ;;  %v1303_v39 = vsel %vm1291_vm5, %v1281_v6, %v1284_v28 }
 0x217   : > { %v2679_v32 = vclz %v4115_v49  ;;  %v2698_v47 = vsel %vm2613_vm3, %v2697_v45, %v2673_v46  ;;  %v1301_v42 = vsel %vm1293_vm8, %v1284_v28, %v1300_v30  ;;  %v1304_v53 = vsel %vm1294_vm6, %v1290_v36, 1326507024 }
 0x218   : > { %v4126_v23 = vadd.s32 4294967169, %v2927_v0  ;;  %v1295_v31 = vsel %vm1291_vm5, %v1275_v24, %v1278_v1  ;;  %v1302_v29 = vsel %vm1292_vm7, %v1299_v2, %v1301_v42  ;;  %v1305_v38 = vsel %vm1293_vm8, %v1287_v58, %v1304_v53 }
 0x219   : > { %v4116_v19 = vadd.s32 4294967294, %v2679_v32  ;;  %v1297_v41 = vsel %vm1293_vm8, %v1281_v6, %v1296_v57  ;;  %v1306_v44 = vsel %vm1292_vm7, %v1303_v39, %v1305_v38  ;;  %vm1043_vm10 = vcmp.eq.s32.totalorder %v5750_v20, 0 }
 0x21a   : > { %v5795_v56 = vmul.u32.u64.low %v5754_v16, %v1302_v29  ;;  %v5796_v43 = vmul.u32.u64.high %v5754_v16, %v1302_v29, %v5795_v56  ;;  %v5800_v46 = vmul.u32.u64.low %v5754_v16, %v1306_v44  ;;  %v5801_v26 = vmul.u32.u64.high %v5754_v16, %v1306_v44, %v5800_v46 }
 0x21b   : > { %vm4117_vm9 = vcmp.lt.s32.totalorder %v4116_v19, 0  ;;  %v2933_v18 = vadd.s32 1, %v4126_v23  ;;  %vm1046_vm12 = vcmp.eq.s32.totalorder %v5750_v20, 2  ;;  %v2667_v54 = vadd.s32 %v5717_v55, %v5726_v4 }
 0x21c   : > { %v2682_v48 = vsel %vm4117_vm9, 0, %v4116_v19  ;;  %v1298_v50 = vsel %vm1292_vm7, %v1295_v31, %v1297_v41  ;;  %v2700_v35 = vsel %vm5778_vm4, 0, %v2698_v47  ;;  %v1317_v37 = vadd.s32 1, %v5796_v43 }
 0x21d   : > { %v2683_v21 = vsub.s32 32, %v2682_v48  ;;  %v2687_v10 = vsub.s32 4294967266, %v2682_v48  ;;  %vm2934_vm11 = vcmp.gt.s32.totalorder %v2933_v18, 0  ;;  %v2923_v1 = vand.u32 2147483647, %v5360_v60 }
 0x21e   : > { %v4485_v52 = vpop.eup %4484  ;;  %v2935_v6 = vsel %vm2934_vm11, %v2933_v18, 0  ;;  %v2684_v4 = vshll.u32 %v5764_v25, %v2682_v48  ;;  %v1314_v17 = vmul.u32 %v5754_v16, %v1298_v50  ;;  %vm1316_vm13 = vc.u32 %v5801_v26, %v5795_v56 }
 0x21f   : > { %v4487_v59 = vpop.eup %4486  ;;  %v1047_v55 = vxor.u32 2147483648, %v4485_v52  ;;  %v2685_v63 = vshrl.u32 %v2667_v54, %v2683_v21  ;;  %v2688_v12 = vadd.s32 127, %v2687_v10  ;;  %v2937_v58 = vand.u32 31, %v2935_v6 }
 0x220   : > { %v1044_v28 = vxor.u32 2147483648, %v4487_v59  ;;  %v1318_v49 = vsel %vm1316_vm13, %v1317_v37, %v5796_v43  ;;  %vm1042_vm14 = vcmp.lt.s32.totalorder %v5750_v20, 2  ;;  %vm1039_vm15 = vweird.f32 %v5113_v3 }
 0x221   : > { %v1048_v45 = vsel %vm1046_vm12, %v1047_v55, %v4487_v59  ;;  %v2686_v36 = vor.u32 %v2685_v63, %v2684_v4  ;;  %v2689_v0 = vshll.u32 %v2688_v12, 23  ;;  %v1319_v2 = vadd.s32 %v1318_v49, %v1314_v17 }
 0x222   : > { %v1045_v25 = vsel %vm1043_vm10, %v4485_v52, %v1044_v28  ;;  %v2938_v30 = vsub.s32 32, %v2937_v58  ;;  %v2704_v24 = vadd.s32 3, %v2700_v35  ;;  %v2930_v47 = vand.u32 8388607, %v2923_v1 }
 0x223   : > { %v1049_v16 = vsel %vm1042_vm14, %v1045_v25, %v1048_v45  ;;  %v2690_v32 = vor.u32 4788187, %v2689_v0  ;;  %v1320_v39 = vadd.s32 536870912, %v1319_v2  ;;  %v2693_v23 = vcvt.s32.f32 %v2686_v36 }
 0x224   : > { %v1050_v57 = vsel %vm1039_vm15, nan, %v1049_v16  ;;  %v2941_v42 = vshrl.u32 %v4653_v9, %v2938_v30  ;;  %v2944_v20 = vshrl.u32 %v4654_v11, %v2938_v30  ;;  %v2947_v19 = vshrl.u32 %v4655_v13, %v2938_v30 }
 0x225   : > { %3863 = vst [vmem:[%s5126_s4 + $0x20] sm:$0xff] %v1050_v57  ;;  %v2691_v53 = vand.u32 2147483647, %v2690_v32  ;;  %v1321_v31 = vshrl.u32 %v1320_v39, 30  ;;  %v2940_v3 = vshll.u32 %v4652_v5, %v2937_v58  ;;  %v2943_v29 = vshll.u32 %v4653_v9, %v2937_v58 }
 0x226   : > { %v2950_v38 = vshrl.u32 %v4656_v15, %v2938_v30  ;;  %v2936_v44 = vshrl.u32 %v2935_v6, 5  ;;  %v2946_v43 = vshll.u32 %v4654_v11, %v2937_v58  ;;  %v2949_v46 = vshll.u32 %v4655_v13, %v2937_v58 }
 0x227   : > { %v2694_v41 = vmul.f32 %v2693_v23, %v2691_v53  ;;  %v1322_v18 = vshll.u32 %v1321_v31, 30  ;;  %v2942_v54 = vor.u32 %v2941_v42, %v2940_v3  ;;  %v2945_v48 = vor.u32 %v2944_v20, %v2943_v29 }
 0x228   : > { %v2953_v21 = vshrl.u32 %v4657_v22, %v2938_v30  ;;  %v2948_v50 = vor.u32 %v2947_v19, %v2946_v43  ;;  %v2951_v52 = vor.u32 %v2950_v38, %v2949_v46  ;;  %v2952_v35 = vshll.u32 %v4656_v15, %v2937_v58  ;;  %v5883_v43 = vpop.f32.mrb[10].mxu0 }
 0x229   : > { %v2695_v10 = vxor.u32 2147483648, %v2694_v41  ;;  %v5839_v37 = vand.u32 3, %v2704_v24  ;;  %v5841_v59 = vsub.s32 %v1319_v2, %v1322_v18  ;;  %v2931_v55 = vor.u32 8388608, %v2930_v47 }
 0x22a   : > { %v2939_v6 = vshrl.u32 %v4652_v5, %v2938_v30  ;;  %v1345_v63 = vsub.s32 4, %v1321_v31  ;;  %v2954_v12 = vor.u32 %v2953_v21, %v2952_v35  ;;  %vm2955_vm0 = vcmp.lt.s32.totalorder %v2936_v44, 1 }
 0x22b   : > { %v2696_v4 = vsel %vm2613_vm3, %v2695_v10, %v2694_v41  ;;  %v1325_v17 = vsub.s32 0, %v5841_v59  ;;  %vm2957_vm1 = vcmp.lt.s32.totalorder %v2936_v44, 3  ;;  %vm2958_vm2 = vcmp.lt.s32.totalorder %v2936_v44, 4 }
 0x22c   : > { %v2699_v28 = vsel %vm5778_vm4, %v5210_v8, %v2696_v4  ;;  %v2960_v58 = vsel %vm2958_vm2, %v2948_v50, 2102212464  ;;  %v2963_v45 = vsel %vm2955_vm0, %v2942_v54, %v2945_v48  ;;  %v2964_v36 = vsel %vm2958_vm2, %v2951_v52, 920167782 }
 0x22d   : > { %4488 = vcosq.f32 %v2699_v28  ;;  %v4063_v0 = vmin.u32 %v1325_v17, %v5841_v59  ;;  %vm2956_vm3 = vcmp.lt.s32.totalorder %v2936_v44, 2  ;;  %v2965_v49 = vsel %vm2957_vm1, %v2948_v50, %v2964_v36 }
 0x22e   : > { %4490 = vsinq.f32 %v2699_v28  ;;  %v2966_v25 = vsel %vm2956_vm3, %v2963_v45, %v2965_v49  ;;  %v2967_v62 = vsel %vm2955_vm0, %v2945_v48, %v2948_v50  ;;  %v2968_v2 = vsel %vm2958_vm2, %v2954_v12, 1326507024 }
 0x22f   : > { %v2971_v30 = vshll.u32 %v2931_v55, 8  ;;  %vm1261_vm4 = vcmp.lt.s32.totalorder %v5307_v40, 0  ;;  %v1327_v16 = vclz %v4063_v0  ;;  %v2959_v32 = vsel %vm2955_vm0, %v2939_v6, %v2942_v54 }
 0x230   : > { %v2961_v24 = vsel %vm2957_vm1, %v2945_v48, %v2960_v58  ;;  %vm5860_vm5 = vcmp.le.f32.partialorder %v1259_v14, 0.7853982  ;;  %v2969_v39 = vsel %vm2957_vm1, %v2951_v52, %v2968_v2  ;;  %v1346_v23 = vsel %vm1261_vm4, %v1345_v63, %v1321_v31 }
 0x231   : > { %v5865_v47 = vmul.u32.u64.low %v2971_v30, %v2966_v25  ;;  %v5866_v42 = vmul.u32.u64.high %v2971_v30, %v2966_v25, %v5865_v47  ;;  %v4064_v53 = vadd.s32 4294967294, %v1327_v16  ;;  %v2970_v20 = vsel %vm2956_vm3, %v2967_v62, %v2969_v39 }
 0x232   : > { %v1158_v19 = vand.u32 2139095040, %v5435_v7  ;;  %vm2706_vm6 = vcmp.lt.s32.totalorder %v5839_v37, 2  ;;  %v2962_v14 = vsel %vm2956_vm3, %v2959_v32, %v2961_v24  ;;  %v1155_v38 = vand.u32 2147483647, %v5435_v7 }
 0x233   : > { %v5875_v3 = vmul.u32.u64.low %v2971_v30, %v2970_v20  ;;  %v5876_v29 = vmul.u32.u64.high %v2971_v30, %v2970_v20, %v5875_v3  ;;  %vm2703_vm7 = vweird.f32 %v5210_v8  ;;  %vm2707_vm8 = vcmp.eq.s32.totalorder %v5839_v37, 0 }
 0x234   : > { %v1315_v31 = vadd.s32 %v5795_v56, %v5801_v26  ;;  %vm4065_vm9 = vcmp.lt.s32.totalorder %v4064_v53, 0  ;;  %v1159_v41 = vshrl.u32 %v1158_v19, 23  ;;  %v1348_v44 = vsel %vm5860_vm5, 0, %v1346_v23 }
 0x235   : > { %v1330_v46 = vsel %vm4065_vm9, 0, %v4064_v53  ;;  %v2981_v18 = vadd.s32 1, %v5866_v42  ;;  %v2822_v54 = vand.u32 2139095040, %v5533_v34  ;;  %v2978_v10 = vmul.u32 %v2971_v30, %v2962_v14 }
 0x236   : > { %v1331_v48 = vsub.s32 32, %v1330_v46  ;;  %v1335_v21 = vsub.s32 4294967266, %v1330_v46  ;;  %v4058_v50 = vadd.s32 4294967169, %v1159_v41  ;;  %v1332_v35 = vshll.u32 %v5841_v59, %v1330_v46 }
 0x237   : > { %v4489_v52 = vpop.eup %4488  ;;  %vm2980_vm10 = vc.u32 %v5876_v29, %v5865_v47  ;;  %v1162_v56 = vand.u32 8388607, %v1155_v38  ;;  %v2823_v26 = vshrl.u32 %v2822_v54, 23  ;;  %vm2710_vm12 = vcmp.eq.s32.totalorder %v5839_v37, 2 }
 0x238   : > { %v4491_v55 = vpop.eup %4490  ;;  %v2711_v6 = vxor.u32 2147483648, %v4489_v52  ;;  %v1333_v4 = vshrl.u32 %v1315_v31, %v1331_v48  ;;  %v1336_v63 = vadd.s32 127, %v1335_v21  ;;  %v2982_v12 = vsel %vm2980_vm10, %v2981_v18, %v5866_v42 }
 0x239   : > { %v2708_v28 = vxor.u32 2147483648, %v4491_v55  ;;  %v2983_v17 = vadd.s32 %v2982_v12, %v2978_v10  ;;  %v1165_v58 = vadd.s32 1, %v4058_v50  ;;  %v1352_v0 = vadd.s32 3, %v1348_v44 }
 0x23a   : > { %v2712_v45 = vsel %vm2710_vm12, %v2711_v6, %v4491_v55  ;;  %v1334_v59 = vor.u32 %v1333_v4, %v1332_v35  ;;  %v1337_v36 = vshll.u32 %v1336_v63, 23  ;;  %v1163_v62 = vor.u32 8388608, %v1162_v56 }
 0x23b   : > { %v2709_v49 = vsel %vm2707_vm8, %v4489_v52, %v2708_v28  ;;  %v2984_v25 = vadd.s32 536870912, %v2983_v17  ;;  %vm1166_vm11 = vcmp.gt.s32.totalorder %v1165_v58, 0  ;;  %v4122_v32 = vadd.s32 4294967169, %v2823_v26 }
 0x23c   : > { %v2713_v2 = vsel %vm2706_vm6, %v2709_v49, %v2712_v45  ;;  %v1338_v30 = vor.u32 4788187, %v1337_v36  ;;  %v1167_v16 = vsel %vm1166_vm11, %v1165_v58, 0  ;;  %vm5904_vm13 = vcmp.le.f32.partialorder %v2923_v1, 0.7853982 }
 0x23d   : > { %v2714_v24 = vsel %vm2703_vm7, nan, %v2713_v2  ;;  %v2985_v42 = vshrl.u32 %v2984_v25, 30  ;;  %v1169_v53 = vand.u32 31, %v1167_v16  ;;  %v1341_v20 = vcvt.s32.f32 %v1334_v59 }
 0x23e   : > { %3879 = vst [vmem:[%s5126_s4 + $0xa0] sm:$0xff] %v2714_v24  ;;  %v1339_v23 = vand.u32 2147483647, %v1338_v30  ;;  %v5909_v19 = vand.u32 3, %v1352_v0  ;;  %vm2925_vm14 = vcmp.lt.s32.totalorder %v5360_v60, 0  ;;  %v2979_v1 = vadd.s32 %v5865_v47, %v5876_v29 }
 0x23f   : > { %v2986_v37 = vshll.u32 %v2985_v42, 30  ;;  %v3009_v14 = vsub.s32 4, %v2985_v42  ;;  %v1170_v3 = vsub.s32 32, %v1169_v53  ;;  %v2819_v8 = vand.u32 2147483647, %v5533_v34 }
 0x240   : > { %v1342_v31 = vmul.f32 %v1341_v20, %v1339_v23  ;;  %v5915_v41 = vshll.u32 %v1163_v62, 8  ;;  %v2829_v46 = vadd.s32 1, %v4122_v32  ;;  %v5921_v54 = vshrl.u32 %v1167_v16, 5 }
 0x241   : > { %v5917_v44 = vsub.s32 %v2983_v17, %v2986_v37  ;;  %v3010_v18 = vsel %vm2925_vm14, %v3009_v14, %v2985_v42  ;;  %v1173_v48 = vshrl.u32 %v4653_v9, %v1170_v3  ;;  %v1172_v10 = vshll.u32 %v4652_v5, %v1169_v53 }
 0x242   : > { %v1343_v21 = vxor.u32 2147483648, %v1342_v31  ;;  %v1176_v50 = vshrl.u32 %v4654_v11, %v1170_v3  ;;  %v1179_v52 = vshrl.u32 %v4655_v13, %v1170_v3  ;;  %v1175_v29 = vshll.u32 %v4653_v9, %v1169_v53 }
 0x243   : > { %v2989_v47 = vsub.s32 0, %v5917_v44  ;;  %v1178_v35 = vshll.u32 %v4654_v11, %v1169_v53  ;;  %v1182_v56 = vshrl.u32 %v4656_v15, %v1170_v3  ;;  %v3012_v55 = vsel %vm5904_vm13, 0, %v3010_v18 }
 0x244   : > { %v1344_v26 = vsel %vm1261_vm4, %v1343_v21, %v1342_v31  ;;  %v1174_v6 = vor.u32 %v1173_v48, %v1172_v10  ;;  %v1181_v4 = vshll.u32 %v4655_v13, %v1169_v53  ;;  %v1177_v28 = vor.u32 %v1176_v50, %v1175_v29  ;;  %v5963_v21 = vpop.f32.mrb[10].mxu1 }
 0x245   : > { %v1347_v63 = vsel %vm5860_vm5, %v5307_v40, %v1344_v26  ;;  %v4127_v12 = vmin.u32 %v2989_v47, %v5917_v44  ;;  %v1180_v17 = vor.u32 %v1179_v52, %v1178_v35  ;;  %v1184_v45 = vshll.u32 %v4656_v15, %v1169_v53 }
 0x246   : > { %4492 = vcosq.f32 %v1347_v63  ;;  %v1183_v58 = vor.u32 %v1182_v56, %v1181_v4  ;;  %v1185_v59 = vshrl.u32 %v4657_v22, %v1170_v3  ;;  %v5944_v0 = vand.u32 8388607, %v2819_v8 }
 0x247   : > { %4494 = vsinq.f32 %v1347_v63  ;;  %v2991_v36 = vclz %v4127_v12  ;;  %vm2830_vm15 = vcmp.gt.s32.totalorder %v2829_v46, 0  ;;  %v3016_v49 = vadd.s32 3, %v3012_v55 }
 0x248   : > { %v1171_v57 = vshrl.u32 %v4652_v5, %v1170_v3  ;;  %v1186_v25 = vor.u32 %v1185_v59, %v1184_v45  ;;  %vm1187_vm0 = vcmp.lt.s32.totalorder %v5921_v54, 1  ;;  %vm1189_vm1 = vcmp.lt.s32.totalorder %v5921_v54, 3 }
 0x249   : > { %v4128_v62 = vadd.s32 4294967294, %v2991_v36  ;;  %vm1190_vm2 = vcmp.lt.s32.totalorder %v5921_v54, 4  ;;  %v1195_v2 = vsel %vm1187_vm0, %v1174_v6, %v1177_v28  ;;  %v1199_v32 = vsel %vm1187_vm0, %v1177_v28, %v1180_v17 }
 0x24a   : > { %v1192_v30 = vsel %vm1190_vm2, %v1180_v17, 2102212464  ;;  %v1196_v16 = vsel %vm1190_vm2, %v1183_v58, 920167782  ;;  %v1200_v24 = vsel %vm1190_vm2, %v1186_v25, 1326507024  ;;  %v1191_v20 = vsel %vm1187_vm0, %v1171_v57, %v1174_v6 }
 0x24b   : > { %vm4129_vm3 = vcmp.lt.s32.totalorder %v4128_v62, 0  ;;  %vm1188_vm4 = vcmp.lt.s32.totalorder %v5921_v54, 2  ;;  %v1197_v42 = vsel %vm1189_vm1, %v1180_v17, %v1196_v16  ;;  %v1201_v53 = vsel %vm1189_vm1, %v1183_v58, %v1200_v24 }
 0x24c   : > { %v2994_v23 = vsel %vm4129_vm3, 0, %v4128_v62  ;;  %v1198_v37 = vsel %vm1188_vm4, %v1195_v2, %v1197_v42  ;;  %v1202_v14 = vsel %vm1188_vm4, %v1199_v32, %v1201_v53  ;;  %vm1351_vm5 = vweird.f32 %v5307_v40 }
 0x24d   : > { %v2995_v3 = vsub.s32 32, %v2994_v23  ;;  %v2999_v31 = vsub.s32 4294967266, %v2994_v23  ;;  %v1193_v18 = vsel %vm1189_vm1, %v1177_v28, %v1192_v30  ;;  %v2831_v48 = vsel %vm2830_vm15, %v2829_v46, 0 }
 0x24e   : > { %v5966_v10 = vmul.u32.u64.low %v5915_v41, %v1202_v14  ;;  %v5967_v50 = vmul.u32.u64.high %v5915_v41, %v1202_v14, %v5966_v10  ;;  %v5970_v52 = vmul.u32.u64.low %v5915_v41, %v1198_v37  ;;  %v5971_v47 = vmul.u32.u64.high %v5915_v41, %v1198_v37, %v5970_v52 }
 0x24f   : > { %v2996_v29 = vshll.u32 %v5917_v44, %v2994_v23  ;;  %v2997_v35 = vshrl.u32 %v2979_v1, %v2995_v3  ;;  %v3000_v56 = vadd.s32 127, %v2999_v31  ;;  %v2833_v26 = vand.u32 31, %v2831_v48 }
 0x250   : > { %v4493_v55 = vpop.eup %4492  ;;  %vm1354_vm6 = vcmp.lt.s32.totalorder %v5909_v19, 2  ;;  %vm1355_vm7 = vcmp.eq.s32.totalorder %v5909_v19, 0  ;;  %vm1358_vm8 = vcmp.eq.s32.totalorder %v5909_v19, 2  ;;  %v1194_v46 = vsel %vm1188_vm4, %v1191_v20, %v1193_v18 }
 0x251   : > { %v4495_v6 = vpop.eup %4494  ;;  %v1359_v4 = vxor.u32 2147483648, %v4493_v55  ;;  %v2998_v63 = vor.u32 %v2997_v35, %v2996_v29  ;;  %v3001_v12 = vshll.u32 %v3000_v56, 23  ;;  %v2834_v28 = vsub.s32 32, %v2833_v26 }
 0x252   : > { %v1356_v17 = vxor.u32 2147483648, %v4495_v6  ;;  %vm1212_vm9 = vc.u32 %v5967_v50, %v5970_v52  ;;  %v1213_v1 = vadd.s32 1, %v5971_v47  ;;  %v2827_v44 = vor.u32 8388608, %v5944_v0 }
 0x253   : > { %v1360_v58 = vsel %vm1358_vm8, %v1359_v4, %v4495_v6  ;;  %v3002_v45 = vor.u32 4788187, %v3001_v12  ;;  %v5984_v59 = vand.u32 3, %v3016_v49  ;;  %v1210_v54 = vmul.u32 %v5915_v41, %v1194_v46 }
 0x254   : > { %v1357_v36 = vsel %vm1355_vm7, %v4493_v55, %v1356_v17  ;;  %v3005_v57 = vcvt.s32.f32 %v2998_v63  ;;  %v1214_v25 = vsel %vm1212_vm9, %v1213_v1, %v5971_v47  ;;  %v5990_v62 = vshrl.u32 %v2831_v48, 5 }
 0x255   : > { %v1361_v2 = vsel %vm1354_vm6, %v1357_v36, %v1360_v58  ;;  %v3003_v30 = vand.u32 2147483647, %v3002_v45  ;;  %v1215_v0 = vadd.s32 %v1214_v25, %v1210_v54  ;;  %v2837_v16 = vshrl.u32 %v4653_v9, %v2834_v28 }
 0x256   : > { %v1362_v49 = vsel %vm1351_vm5, nan, %v1361_v2  ;;  %v2836_v41 = vshll.u32 %v4652_v5, %v2833_v26  ;;  %v2840_v32 = vshrl.u32 %v4654_v11, %v2834_v28  ;;  %v5999_v24 = vshll.u32 %v2827_v44, 8 }
 0x257   : > { %3866 = vst [vmem:[%s5126_s4 + $0x38] sm:$0xff] %v1362_v49  ;;  %v3006_v42 = vmul.f32 %v3005_v57, %v3003_v30  ;;  %vm1157_vm10 = vcmp.lt.s32.totalorder %v5435_v7, 0  ;;  %v1216_v53 = vadd.s32 536870912, %v1215_v0  ;;  %v2839_v19 = vshll.u32 %v4653_v9, %v2833_v26 }
 0x258   : > { %v2843_v23 = vshrl.u32 %v4655_v13, %v2834_v28  ;;  %v2842_v20 = vshll.u32 %v4654_v11, %v2833_v26  ;;  %v2845_v40 = vshll.u32 %v4655_v13, %v2833_v26  ;;  %v2846_v37 = vshrl.u32 %v4656_v15, %v2834_v28 }
 0x259   : > { %v2849_v14 = vshrl.u32 %v4657_v22, %v2834_v28  ;;  %v3007_v3 = vxor.u32 2147483648, %v3006_v42  ;;  %v1217_v31 = vshrl.u32 %v1216_v53, 30  ;;  %v2838_v18 = vor.u32 %v2837_v16, %v2836_v41 }
 0x25a   : > { %v2841_v48 = vor.u32 %v2840_v32, %v2839_v19  ;;  %v2844_v10 = vor.u32 %v2843_v23, %v2842_v20  ;;  %v2847_v47 = vor.u32 %v2846_v37, %v2845_v40  ;;  %v2848_v29 = vshll.u32 %v4656_v15, %v2833_v26  ;;  %v6044_v19 = vpop.f32.mrb[11].mxu0 }
 0x25b   : > { %v1467_v35 = vand.u32 2147483647, %v5594_v27  ;;  %v3008_v56 = vsel %vm2925_vm14, %v3007_v3, %v3006_v42  ;;  %v1218_v55 = vshll.u32 %v1217_v31, 30  ;;  %v2835_v46 = vshrl.u32 %v4652_v5, %v2834_v28 }
 0x25c   : > { %v1470_v6 = vand.u32 2139095040, %v5594_v27  ;;  %v3011_v4 = vsel %vm5904_vm13, %v5360_v60, %v3008_v56  ;;  %v1241_v63 = vsub.s32 4, %v1217_v31  ;;  %v2850_v12 = vor.u32 %v2849_v14, %v2848_v29 }
 0x25d   : > { %vm2851_vm12 = vcmp.lt.s32.totalorder %v5990_v62, 1  ;;  %4496 = vcosq.f32 %v3011_v4  ;;  %v6019_v26 = vsub.s32 %v1215_v0, %v1218_v55  ;;  %vm2854_vm11 = vcmp.lt.s32.totalorder %v5990_v62, 4 }
 0x25e   : > { %v2859_v17 = vsel %vm2851_vm12, %v2838_v18, %v2841_v48  ;;  %4498 = vsinq.f32 %v3011_v4  ;;  %vm2853_vm14 = vcmp.lt.s32.totalorder %v5990_v62, 3  ;;  %v2856_v28 = vsel %vm2854_vm11, %v2844_v10, 2102212464 }
 0x25f   : > { %v2860_v1 = vsel %vm2854_vm11, %v2847_v47, 920167782  ;;  %v1221_v44 = vsub.s32 0, %v6019_v26  ;;  %vm2852_vm15 = vcmp.lt.s32.totalorder %v5990_v62, 2  ;;  %v2863_v58 = vsel %vm2851_vm12, %v2841_v48, %v2844_v10 }
 0x260   : > { %v2861_v39 = vsel %vm2853_vm14, %v2844_v10, %v2860_v1  ;;  %v1242_v45 = vsel %vm1157_vm10, %v1241_v63, %v1217_v31  ;;  %v2855_v54 = vsel %vm2851_vm12, %v2835_v46, %v2838_v18  ;;  %v2864_v57 = vsel %vm2854_vm11, %v2850_v12, 1326507024 }
 0x261   : > { %v2862_v36 = vsel %vm2852_vm15, %v2859_v17, %v2861_v39  ;;  %v4059_v25 = vmin.u32 %v1221_v44, %v6019_v26  ;;  %v2857_v2 = vsel %vm2853_vm14, %v2841_v48, %v2856_v28  ;;  %v2865_v30 = vsel %vm2853_vm14, %v2847_v47, %v2864_v57 }
 0x262   : > { %v1471_v0 = vshrl.u32 %v1470_v6, 23  ;;  %vm6032_vm13 = vcmp.le.f32.partialorder %v1155_v38, 0.7853982  ;;  %v2866_v49 = vsel %vm2852_vm15, %v2863_v58, %v2865_v30  ;;  %v2858_v23 = vsel %vm2852_vm15, %v2855_v54, %v2857_v2 }
 0x263   : > { %v6039_v41 = vmul.u32.u64.low %v5999_v24, %v2862_v36  ;;  %v6040_v32 = vmul.u32.u64.high %v5999_v24, %v2862_v36, %v6039_v41  ;;  %v1223_v42 = vclz %v4059_v25  ;;  %v1244_v53 = vsel %vm6032_vm13, 0, %v1242_v45 }
 0x264   : > { %v6049_v38 = vmul.u32.u64.low %v5999_v24, %v2866_v49  ;;  %v6050_v20 = vmul.u32.u64.high %v5999_v24, %v2866_v49, %v6049_v38  ;;  %v4070_v40 = vadd.s32 4294967169, %v1471_v0  ;;  %vm3015_vm0 = vweird.f32 %v5360_v60 }
 0x265   : > { %vm3018_vm1 = vcmp.lt.s32.totalorder %v5984_v59, 2  ;;  %v4060_v37 = vadd.s32 4294967294, %v1223_v42  ;;  %v1474_v14 = vand.u32 8388607, %v1467_v35  ;;  %vm3019_vm2 = vcmp.eq.s32.totalorder %v5984_v59, 0 }
 0x266   : > { %vm3022_vm3 = vcmp.eq.s32.totalorder %v5984_v59, 2  ;;  %v2877_v62 = vadd.s32 1, %v6040_v32  ;;  %v1477_v3 = vadd.s32 1, %v4070_v40  ;;  %v1211_v18 = vadd.s32 %v5970_v52, %v5967_v50 }
 0x267   : > { %v4497_v31 = vpop.eup %4496  ;;  %vm4061_vm4 = vcmp.lt.s32.totalorder %v4060_v37, 0  ;;  %v1248_v48 = vadd.s32 3, %v1244_v53  ;;  %v2874_v10 = vmul.u32 %v5999_v24, %v2858_v23  ;;  %vm2876_vm5 = vc.u32 %v6050_v20, %v6039_v41 }
 0x268   : > { %v4499_v47 = vpop.eup %4498  ;;  %v3023_v29 = vxor.u32 2147483648, %v4497_v31  ;;  %v1226_v56 = vsel %vm4061_vm4, 0, %v4060_v37  ;;  %v3134_v55 = vand.u32 2139095040, %v5655_v51  ;;  %v1475_v63 = vor.u32 8388608, %v1474_v14 }
 0x269   : > { %v3020_v46 = vxor.u32 2147483648, %v4499_v47  ;;  %v1227_v6 = vsub.s32 32, %v1226_v56  ;;  %v1231_v4 = vsub.s32 4294967266, %v1226_v56  ;;  %v1228_v50 = vshll.u32 %v6019_v26, %v1226_v56 }
 0x26a   : > { %v3024_v12 = vsel %vm3022_vm3, %v3023_v29, %v4499_v47  ;;  %v2878_v52 = vsel %vm2876_vm5, %v2877_v62, %v6040_v32  ;;  %vm1478_vm6 = vcmp.gt.s32.totalorder %v1477_v3, 0  ;;  %v3131_v58 = vand.u32 2147483647, %v5655_v51 }
 0x26b   : > { %v3021_v24 = vsel %vm3019_vm2, %v4497_v31, %v3020_v46  ;;  %v1229_v17 = vshrl.u32 %v1211_v18, %v1227_v6  ;;  %v1232_v28 = vadd.s32 127, %v1231_v4  ;;  %v2879_v1 = vadd.s32 %v2878_v52, %v2874_v10 }
 0x26c   : > { %v3025_v44 = vsel %vm3018_vm1, %v3021_v24, %v3024_v12  ;;  %v1479_v39 = vsel %vm1478_vm6, %v1477_v3, 0  ;;  %v3135_v45 = vshrl.u32 %v3134_v55, 23  ;;  %v6076_v30 = vand.u32 3, %v1248_v48 }
 0x26d   : > { %v3026_v54 = vsel %vm3015_vm0, nan, %v3025_v44  ;;  %v1230_v26 = vor.u32 %v1229_v17, %v1228_v50  ;;  %v1233_v36 = vshll.u32 %v1232_v28, 23  ;;  %v2880_v57 = vadd.s32 536870912, %v2879_v1 }
 0x26e   : > { %3882 = vst [vmem:[%s5126_s4 + $0xb8] sm:$0xff] %v3026_v54  ;;  %v1481_v25 = vand.u32 31, %v1479_v39  ;;  %vm2821_vm7 = vcmp.lt.s32.totalorder %v5533_v34, 0  ;;  %v6079_v49 = vshll.u32 %v1475_v63, 8  ;;  %v4134_v32 = vadd.s32 4294967169, %v3135_v45 }
 0x26f   : > { %v1234_v2 = vor.u32 4788187, %v1233_v36  ;;  %v2881_v0 = vshrl.u32 %v2880_v57, 30  ;;  %v6083_v42 = vand.u32 8388607, %v3131_v58  ;;  %v1237_v53 = vcvt.s32.f32 %v1230_v26 }
 0x270   : > { %v1482_v59 = vsub.s32 32, %v1481_v25  ;;  %v6086_v23 = vadd.s32 %v6039_v41, %v6050_v20  ;;  %v1480_v40 = vshrl.u32 %v1479_v39, 5  ;;  %v1484_v18 = vshll.u32 %v4652_v5, %v1481_v25 }
 0x271   : > { %v1235_v60 = vand.u32 2147483647, %v1234_v2  ;;  %v2882_v38 = vshll.u32 %v2881_v0, 30  ;;  %vm6097_vm8 = vcmp.le.f32.partialorder %v2819_v8, 0.7853982  ;;  %v2905_v20 = vsub.s32 4, %v2881_v0 }
 0x272   : > { %v1485_v37 = vshrl.u32 %v4653_v9, %v1482_v59  ;;  %v1488_v14 = vshrl.u32 %v4654_v11, %v1482_v59  ;;  %v1491_v62 = vshrl.u32 %v4655_v13, %v1482_v59  ;;  %v1494_v48 = vshrl.u32 %v4656_v15, %v1482_v59 }
 0x273   : > { %v1238_v3 = vmul.f32 %v1237_v53, %v1235_v60  ;;  %v6091_v31 = vsub.s32 %v2879_v1, %v2882_v38  ;;  %v1487_v10 = vshll.u32 %v4653_v9, %v1481_v25  ;;  %v1490_v47 = vshll.u32 %v4654_v11, %v1481_v25 }
 0x274   : > { %v3141_v29 = vadd.s32 1, %v4134_v32  ;;  %v1486_v46 = vor.u32 %v1485_v37, %v1484_v18  ;;  %v1493_v6 = vshll.u32 %v4655_v13, %v1481_v25  ;;  %v1496_v12 = vshll.u32 %v4656_v15, %v1481_v25 }
 0x275   : > { %v1239_v56 = vxor.u32 2147483648, %v1238_v3  ;;  %v2885_v55 = vsub.s32 0, %v6091_v31  ;;  %v1489_v4 = vor.u32 %v1488_v14, %v1487_v10  ;;  %v1492_v63 = vor.u32 %v1491_v62, %v1490_v47  ;;  %v6126_v62 = vpop.f32.mrb[11].mxu1 }
 0x276   : > { %v1497_v8 = vshrl.u32 %v4657_v22, %v1482_v59  ;;  %v1483_v24 = vshrl.u32 %v4652_v5, %v1482_v59  ;;  %v1495_v17 = vor.u32 %v1494_v48, %v1493_v6  ;;  %v2906_v1 = vsel %vm2821_vm7, %v2905_v20, %v2881_v0 }
 0x277   : > { %v1240_v50 = vsel %vm1157_vm10, %v1239_v56, %v1238_v3  ;;  %v4123_v52 = vmin.u32 %v2885_v55, %v6091_v31  ;;  %vm1499_vm9 = vcmp.lt.s32.totalorder %v1480_v40, 1  ;;  %vm1500_vm12 = vcmp.lt.s32.totalorder %v1480_v40, 2 }
 0x278   : > { %v1243_v28 = vsel %vm6032_vm13, %v5435_v7, %v1240_v50  ;;  %v1498_v44 = vor.u32 %v1497_v8, %v1496_v12  ;;  %vm1502_vm11 = vcmp.lt.s32.totalorder %v1480_v40, 4  ;;  %vm1501_vm10 = vcmp.lt.s32.totalorder %v1480_v40, 3 }
 0x279   : > { %4500 = vcosq.f32 %v1243_v28  ;;  %v2887_v39 = vclz %v4123_v52  ;;  %v1504_v45 = vsel %vm1502_vm11, %v1492_v63, 2102212464  ;;  %v1507_v54 = vsel %vm1499_vm9, %v1486_v46, %v1489_v4 }
 0x27a   : > { %4502 = vsinq.f32 %v1243_v28  ;;  %v1503_v36 = vsel %vm1499_vm9, %v1483_v24, %v1486_v46  ;;  %v1508_v57 = vsel %vm1502_vm11, %v1495_v17, 920167782  ;;  %v1511_v25 = vsel %vm1499_vm9, %v1489_v4, %v1492_v63 }
 0x27b   : > { %v4124_v26 = vadd.s32 4294967294, %v2887_v39  ;;  %v1505_v2 = vsel %vm1501_vm10, %v1489_v4, %v1504_v45  ;;  %v1509_v16 = vsel %vm1501_vm10, %v1492_v63, %v1508_v57  ;;  %v1512_v59 = vsel %vm1502_vm11, %v1498_v44, 1326507024 }
 0x27c   : > { %vm3142_vm14 = vcmp.gt.s32.totalorder %v3141_v29, 0  ;;  %v2908_v0 = vsel %vm6097_vm8, 0, %v2906_v1  ;;  %v1510_v32 = vsel %vm1500_vm12, %v1507_v54, %v1509_v16  ;;  %v1513_v60 = vsel %vm1501_vm10, %v1495_v17, %v1512_v59 }
 0x27d   : > { %vm4125_vm15 = vcmp.lt.s32.totalorder %v4124_v26, 0  ;;  %vm1251_vm13 = vcmp.eq.s32.totalorder %v6076_v30, 0  ;;  %v1514_v38 = vsel %vm1500_vm12, %v1511_v25, %v1513_v60  ;;  %vm1250_vm0 = vcmp.lt.s32.totalorder %v6076_v30, 2 }
 0x27e   : > { %v2890_v53 = vsel %vm4125_vm15, 0, %v4124_v26  ;;  %v6122_v37 = vmul.u32.u64.low %v6079_v49, %v1510_v32  ;;  %v6123_v14 = vmul.u32.u64.high %v6079_v49, %v1510_v32, %v6122_v37  ;;  %v1506_v48 = vsel %vm1500_vm12, %v1503_v36, %v1505_v2 }
 0x27f   : > { %v2891_v3 = vsub.s32 32, %v2890_v53  ;;  %v2895_v18 = vsub.s32 4294967266, %v2890_v53  ;;  %v3143_v20 = vsel %vm3142_vm14, %v3141_v29, 0  ;;  %vm1247_vm1 = vweird.f32 %v5435_v7 }
 0x280   : > { %vm1254_vm2 = vcmp.eq.s32.totalorder %v6076_v30, 2  ;;  %v6133_v10 = vmul.u32.u64.low %v6079_v49, %v1514_v38  ;;  %v6134_v47 = vmul.u32.u64.high %v6079_v49, %v1514_v38, %v6133_v10  ;;  %v3145_v56 = vand.u32 31, %v3143_v20 }
 0x281   : > { %v2892_v55 = vshll.u32 %v6091_v31, %v2890_v53  ;;  %v2893_v46 = vshrl.u32 %v6086_v23, %v2891_v3  ;;  %v2896_v6 = vadd.s32 127, %v2895_v18  ;;  %v3139_v4 = vor.u32 8388608, %v6083_v42 }
 0x282   : > { %v2912_v63 = vadd.s32 3, %v2908_v0  ;;  %v1522_v40 = vmul.u32 %v6079_v49, %v1506_v48  ;;  %v1525_v29 = vadd.s32 1, %v6123_v14  ;;  %v3146_v12 = vsub.s32 32, %v3145_v56 }
 0x283   : > { %v4501_v8 = vpop.eup %4500  ;;  %v2894_v50 = vor.u32 %v2893_v46, %v2892_v55  ;;  %v2897_v52 = vshll.u32 %v2896_v6, 23  ;;  %v6141_v24 = vshrl.u32 %v3143_v20, 5  ;;  %v3148_v17 = vshll.u32 %v4652_v5, %v3145_v56 }
 0x284   : > { %v4503_v28 = vpop.eup %4502  ;;  %v1255_v31 = vxor.u32 2147483648, %v4501_v8  ;;  %vm1524_vm3 = vc.u32 %v6134_v47, %v6122_v37  ;;  %v3151_v42 = vshll.u32 %v4653_v9, %v3145_v56  ;;  %v3157_v23 = vshll.u32 %v4655_v13, %v3145_v56 }
 0x285   : > { %v1252_v49 = vxor.u32 2147483648, %v4503_v28  ;;  %v2898_v1 = vor.u32 4788187, %v2897_v52  ;;  %v2901_v44 = vcvt.s32.f32 %v2894_v50  ;;  %v1526_v39 = vsel %vm1524_vm3, %v1525_v29, %v6123_v14 }
 0x286   : > { %v1256_v45 = vsel %vm1254_vm2, %v1255_v31, %v4503_v28  ;;  %v1527_v54 = vadd.s32 %v1526_v39, %v1522_v40  ;;  %v3149_v26 = vshrl.u32 %v4653_v9, %v3146_v12  ;;  %v3152_v36 = vshrl.u32 %v4654_v11, %v3146_v12 }
 0x287   : > { %v1253_v57 = vsel %vm1251_vm13, %v4501_v8, %v1252_v49  ;;  %v2899_v25 = vand.u32 2147483647, %v2898_v1  ;;  %vm1469_vm4 = vcmp.lt.s32.totalorder %v5594_v27, 0  ;;  %v3155_v2 = vshrl.u32 %v4655_v13, %v3146_v12 }
 0x288   : > { %v3158_v16 = vshrl.u32 %v4656_v15, %v3146_v12  ;;  %v1257_v59 = vsel %vm1250_vm0, %v1253_v57, %v1256_v45  ;;  %v1528_v0 = vadd.s32 536870912, %v1527_v54  ;;  %v3150_v32 = vor.u32 %v3149_v26, %v3148_v17 }
 0x289   : > { %v3154_v60 = vshll.u32 %v4654_v11, %v3145_v56  ;;  %v1258_v53 = vsel %vm1247_vm1, nan, %v1257_v59  ;;  %v2902_v38 = vmul.f32 %v2901_v44, %v2899_v25  ;;  %v3153_v14 = vor.u32 %v3152_v36, %v3151_v42 }
 0x28a   : > { %v3159_v3 = vor.u32 %v3158_v16, %v3157_v23  ;;  %3865 = vst [vmem:[%s5126_s4 + $0x30] sm:$0xff] %v1258_v53  ;;  %v1529_v18 = vshrl.u32 %v1528_v0, 30  ;;  %v3161_v48 = vshrl.u32 %v4657_v22, %v3146_v12  ;;  %v6165_v20 = vshll.u32 %v3139_v4, 8  ;;  %v6227_v53 = vpop.f32.mrb[12].mxu0 }
 0x28b   : > { %v1363_v10 = vand.u32 2147483647, %v5721_v61  ;;  %v2903_v30 = vxor.u32 2147483648, %v2902_v38  ;;  %v6168_v55 = vand.u32 3, %v2912_v63  ;;  %v3156_v46 = vor.u32 %v3155_v2, %v3154_v60 }
 0x28c   : > { %v3160_v6 = vshll.u32 %v4656_v15, %v3145_v56  ;;  %v1530_v40 = vshll.u32 %v1529_v18, 30  ;;  %v1553_v7 = vsub.s32 4, %v1529_v18  ;;  %vm3163_vm5 = vcmp.lt.s32.totalorder %v6141_v24, 1 }
 0x28d   : > { %vm3166_vm6 = vcmp.lt.s32.totalorder %v6141_v24, 4  ;;  %v2904_v29 = vsel %vm2821_vm7, %v2903_v30, %v2902_v38  ;;  %v3171_v4 = vsel %vm3163_vm5, %v3150_v32, %v3153_v14  ;;  %v3147_v52 = vshrl.u32 %v4652_v5, %v3146_v12 }
 0x28e   : > { %v3162_v8 = vor.u32 %v3161_v48, %v3160_v6  ;;  %v3172_v63 = vsel %vm3166_vm6, %v3159_v3, 920167782  ;;  %v2907_v56 = vsel %vm6097_vm8, %v5533_v34, %v2904_v29  ;;  %v6182_v50 = vsub.s32 %v1527_v54, %v1530_v40 }
 0x28f   : > { %vm3165_vm9 = vcmp.lt.s32.totalorder %v6141_v24, 3  ;;  %4504 = vcosq.f32 %v2907_v56  ;;  %vm3164_vm7 = vcmp.lt.s32.totalorder %v6141_v24, 2  ;;  %v3168_v17 = vsel %vm3166_vm6, %v3156_v46, 2102212464 }
 0x290   : > { %v3173_v28 = vsel %vm3165_vm9, %v3156_v46, %v3172_v63  ;;  %4506 = vsinq.f32 %v2907_v56  ;;  %v1533_v31 = vsub.s32 0, %v6182_v50  ;;  %v1554_v41 = vsel %vm1469_vm4, %v1553_v7, %v1529_v18 }
 0x291   : > { %v3174_v42 = vsel %vm3164_vm7, %v3171_v4, %v3173_v28  ;;  %v3175_v12 = vsel %vm3163_vm5, %v3153_v14, %v3156_v46  ;;  %v3176_v23 = vsel %vm3166_vm6, %v3162_v8, 1326507024  ;;  %v3167_v39 = vsel %vm3163_vm5, %v3147_v52, %v3150_v32 }
 0x292   : > { %v6199_v49 = vmul.u32.u64.low %v6165_v20, %v3174_v42  ;;  %v6200_v1 = vmul.u32.u64.high %v6165_v20, %v3174_v42, %v6199_v49  ;;  %v4071_v44 = vmin.u32 %v1533_v31, %v6182_v50  ;;  %v3169_v45 = vsel %vm3165_vm9, %v3153_v14, %v3168_v17 }
 0x293   : > { %v3177_v54 = vsel %vm3165_vm9, %v3159_v3, %v3176_v23  ;;  %vm6208_vm8 = vcmp.le.f32.partialorder %v1467_v35, 0.7853982  ;;  %v1366_v57 = vand.u32 2139095040, %v5721_v61  ;;  %v3170_v16 = vsel %vm3164_vm7, %v3167_v39, %v3169_v45 }
 0x294   : > { %v3178_v36 = vsel %vm3164_vm7, %v3175_v12, %v3177_v54  ;;  %v1535_v25 = vclz %v4071_v44  ;;  %v1556_v2 = vsel %vm6208_vm8, 0, %v1554_v41  ;;  %vm2911_vm12 = vweird.f32 %v5533_v34 }
 0x295   : > { %v6220_v59 = vmul.u32.u64.low %v6165_v20, %v3178_v36  ;;  %v6221_v0 = vmul.u32.u64.high %v6165_v20, %v3178_v36, %v6220_v59  ;;  %v1367_v35 = vshrl.u32 %v1366_v57, 23  ;;  %vm2914_vm11 = vcmp.lt.s32.totalorder %v6168_v55, 2 }
 0x296   : > { %v4072_v32 = vadd.s32 4294967294, %v1535_v25  ;;  %v1370_v60 = vand.u32 8388607, %v1363_v10  ;;  %vm2915_vm10 = vcmp.eq.s32.totalorder %v6168_v55, 0  ;;  %vm2918_vm14 = vcmp.eq.s32.totalorder %v6168_v55, 2 }
 0x297   : > { %v3189_v24 = vadd.s32 1, %v6200_v1  ;;  %v4066_v38 = vadd.s32 4294967169, %v1367_v35  ;;  %v1523_v14 = vadd.s32 %v6122_v37, %v6134_v47  ;;  %v1560_v3 = vadd.s32 3, %v1556_v2 }
 0x298   : > { %vm4073_vm15 = vcmp.lt.s32.totalorder %v4072_v32, 0  ;;  %v3186_v18 = vmul.u32 %v6165_v20, %v3170_v16  ;;  %vm3188_vm13 = vc.u32 %v6221_v0, %v6199_v49  ;;  %v3030_v6 = vand.u32 2139095040, %v5807_v33 }
 0x299   : > { %v4505_v48 = vpop.eup %4504  ;;  %v1538_v30 = vsel %vm4073_vm15, 0, %v4072_v32  ;;  %v1373_v46 = vadd.s32 1, %v4066_v38  ;;  %v1371_v4 = vor.u32 8388608, %v1370_v60  ;;  %v3190_v47 = vsel %vm3188_vm13, %v3189_v24, %v6200_v1 }
 0x29a   : > { %v4507_v40 = vpop.eup %4506  ;;  %v2919_v7 = vxor.u32 2147483648, %v4505_v48  ;;  %v1539_v29 = vsub.s32 32, %v1538_v30  ;;  %v1543_v8 = vsub.s32 4294967266, %v1538_v30  ;;  %v1540_v37 = vshll.u32 %v6182_v50, %v1538_v30 }
 0x29b   : > { %v2916_v63 = vxor.u32 2147483648, %v4507_v40  ;;  %vm1374_vm0 = vcmp.gt.s32.totalorder %v1373_v46, 0  ;;  %v3191_v17 = vadd.s32 %v3190_v47, %v3186_v18  ;;  %v3027_v41 = vand.u32 2147483647, %v5807_v33 }
 0x29c   : > { %v2920_v20 = vsel %vm2918_vm14, %v2919_v7, %v4507_v40  ;;  %v1541_v56 = vshrl.u32 %v1523_v14, %v1539_v29  ;;  %v1544_v52 = vadd.s32 127, %v1543_v8  ;;  %v1375_v31 = vsel %vm1374_vm0, %v1373_v46, 0 }
 0x29d   : > { %v2917_v28 = vsel %vm2915_vm10, %v4505_v48, %v2916_v63  ;;  %v3031_v42 = vshrl.u32 %v3030_v6, 23  ;;  %v3192_v1 = vadd.s32 536870912, %v3191_v17  ;;  %v1377_v39 = vand.u32 31, %v1375_v31 }
 0x29e   : > { %v2921_v50 = vsel %vm2914_vm11, %v2917_v28, %v2920_v20  ;;  %v1542_v12 = vor.u32 %v1541_v56, %v1540_v37  ;;  %v1545_v23 = vshll.u32 %v1544_v52, 23  ;;  %v6250_v54 = vand.u32 3, %v1560_v3 }
 0x29f   : > { %v2922_v44 = vsel %vm2911_vm12, nan, %v2921_v50  ;;  %vm3133_vm1 = vcmp.lt.s32.totalorder %v5655_v51, 0  ;;  %v3193_v36 = vshrl.u32 %v3192_v1, 30  ;;  %v1378_v57 = vsub.s32 32, %v1377_v39 }
 0x2a0   : > { %3881 = vst [vmem:[%s5126_s4 + $0xb0] sm:$0xff] %v2922_v44  ;;  %v1546_v45 = vor.u32 4788187, %v1545_v23  ;;  %v6253_v25 = vshll.u32 %v1371_v4, 8  ;;  %v4130_v2 = vadd.s32 4294967169, %v3031_v42  ;;  %v1549_v59 = vcvt.s32.f32 %v1542_v12 }
 0x2a1   : > { %v6257_v55 = vand.u32 8388607, %v3027_v41  ;;  %v6261_v34 = vadd.s32 %v6199_v49, %v6221_v0  ;;  %v3194_v35 = vshll.u32 %v3193_v36, 30  ;;  %v1376_v32 = vshrl.u32 %v1375_v31, 5 }
 0x2a2   : > { %v1547_v16 = vand.u32 2147483647, %v1546_v45  ;;  %v1381_v60 = vshrl.u32 %v4653_v9, %v1378_v57  ;;  %v1384_v24 = vshrl.u32 %v4654_v11, %v1378_v57  ;;  %v1387_v38 = vshrl.u32 %v4655_v13, %v1378_v57 }
 0x2a3   : > { %v6266_v3 = vsub.s32 %v3191_v17, %v3194_v35  ;;  %v1380_v18 = vshll.u32 %v4652_v5, %v1377_v39  ;;  %v1390_v48 = vshrl.u32 %v4656_v15, %v1378_v57  ;;  %vm6272_vm2 = vcmp.le.f32.partialorder %v3131_v58, 0.7853982 }
 0x2a4   : > { %v1550_v14 = vmul.f32 %v1549_v59, %v1547_v16  ;;  %v3217_v0 = vsub.s32 4, %v3193_v36  ;;  %v1383_v30 = vshll.u32 %v4653_v9, %v1377_v39  ;;  %v1386_v46 = vshll.u32 %v4654_v11, %v1377_v39 }
 0x2a5   : > { %v3037_v6 = vadd.s32 1, %v4130_v2  ;;  %v3197_v7 = vsub.s32 0, %v6266_v3  ;;  %v1382_v29 = vor.u32 %v1381_v60, %v1380_v18  ;;  %v1389_v8 = vshll.u32 %v4655_v13, %v1377_v39 }
 0x2a6   : > { %v1551_v40 = vxor.u32 2147483648, %v1550_v14  ;;  %v1385_v4 = vor.u32 %v1384_v24, %v1383_v30  ;;  %v1388_v63 = vor.u32 %v1387_v38, %v1386_v46  ;;  %v1392_v37 = vshll.u32 %v4656_v15, %v1377_v39  ;;  %v6301_v38 = vpop.f32.mrb[12].mxu1 }
 0x2a7   : > { %v1393_v58 = vshrl.u32 %v4657_v22, %v1378_v57  ;;  %v4135_v20 = vmin.u32 %v3197_v7, %v6266_v3  ;;  %v1379_v56 = vshrl.u32 %v4652_v5, %v1378_v57  ;;  %v1391_v52 = vor.u32 %v1390_v48, %v1389_v8 }
 0x2a8   : > { %v1552_v47 = vsel %vm1469_vm4, %v1551_v40, %v1550_v14  ;;  %v3218_v28 = vsel %vm3133_vm1, %v3217_v0, %v3193_v36  ;;  %vm1395_vm3 = vcmp.lt.s32.totalorder %v1376_v32, 1  ;;  %vm1396_vm5 = vcmp.lt.s32.totalorder %v1376_v32, 2 }
 0x2a9   : > { %v1555_v17 = vsel %vm6208_vm8, %v5594_v27, %v1552_v47  ;;  %v1394_v31 = vor.u32 %v1393_v58, %v1392_v37  ;;  %v3199_v42 = vclz %v4135_v20  ;;  %vm1398_vm6 = vcmp.lt.s32.totalorder %v1376_v32, 4 }
 0x2aa   : > { %4508 = vcosq.f32 %v1555_v17  ;;  %vm1397_vm4 = vcmp.lt.s32.totalorder %v1376_v32, 3  ;;  %v1400_v50 = vsel %vm1398_vm6, %v1388_v63, 2102212464  ;;  %v1403_v12 = vsel %vm1395_vm3, %v1382_v29, %v1385_v4 }
 0x2ab   : > { %4510 = vsinq.f32 %v1555_v17  ;;  %v4136_v23 = vadd.s32 4294967294, %v3199_v42  ;;  %v1399_v1 = vsel %vm1395_vm3, %v1379_v56, %v1382_v29  ;;  %v1404_v44 = vsel %vm1398_vm6, %v1391_v52, 920167782 }
 0x2ac   : > { %v1407_v39 = vsel %vm1395_vm3, %v1385_v4, %v1388_v63  ;;  %v1401_v45 = vsel %vm1397_vm4, %v1385_v4, %v1400_v50  ;;  %v1405_v26 = vsel %vm1397_vm4, %v1388_v63, %v1404_v44  ;;  %v1408_v57 = vsel %vm1398_vm6, %v1394_v31, 1326507024 }
 0x2ad   : > { %vm3038_vm9 = vcmp.gt.s32.totalorder %v3037_v6, 0  ;;  %vm4137_vm7 = vcmp.lt.s32.totalorder %v4136_v23, 0  ;;  %v3220_v36 = vsel %vm6272_vm2, 0, %v3218_v28  ;;  %v1406_v2 = vsel %vm1396_vm5, %v1403_v12, %v1405_v26 }
 0x2ae   : > { %v1409_v16 = vsel %vm1397_vm4, %v1391_v52, %v1408_v57  ;;  %vm1563_vm8 = vcmp.eq.s32.totalorder %v6250_v54, 0  ;;  %v3202_v59 = vsel %vm4137_vm7, 0, %v4136_v23  ;;  %vm1562_vm12 = vcmp.lt.s32.totalorder %v6250_v54, 2 }
 0x2af   : > { %v1410_v35 = vsel %vm1396_vm5, %v1407_v39, %v1409_v16  ;;  %v6297_v60 = vmul.u32.u64.low %v6253_v25, %v1406_v2  ;;  %v6298_v24 = vmul.u32.u64.high %v6253_v25, %v1406_v2, %v6297_v60  ;;  %v3203_v14 = vsub.s32 32, %v3202_v59 }
 0x2b0   : > { %v3207_v18 = vsub.s32 4294967266, %v3202_v59  ;;  %v1402_v48 = vsel %vm1396_vm5, %v1399_v1, %v1401_v45  ;;  %v3039_v0 = vsel %vm3038_vm9, %v3037_v6, 0  ;;  %vm1559_vm11 = vweird.f32 %v5594_v27 }
 0x2b1   : > { %vm1566_vm10 = vcmp.eq.s32.totalorder %v6250_v54, 2  ;;  %v6308_v30 = vmul.u32.u64.low %v6253_v25, %v1410_v35  ;;  %v6309_v46 = vmul.u32.u64.high %v6253_v25, %v1410_v35, %v6308_v30  ;;  %v3041_v40 = vand.u32 31, %v3039_v0 }
 0x2b2   : > { %v3204_v7 = vshll.u32 %v6266_v3, %v3202_v59  ;;  %v3205_v29 = vshrl.u32 %v6261_v34, %v3203_v14  ;;  %v3208_v8 = vadd.s32 127, %v3207_v18  ;;  %v3035_v4 = vor.u32 8388608, %v6257_v55 }
 0x2b3   : > { %v3224_v63 = vadd.s32 3, %v3220_v36  ;;  %v1418_v32 = vmul.u32 %v6253_v25, %v1402_v48  ;;  %v1421_v6 = vadd.s32 1, %v6298_v24  ;;  %v3042_v37 = vsub.s32 32, %v3041_v40 }
 0x2b4   : > { %v4509_v58 = vpop.eup %4508  ;;  %v3206_v47 = vor.u32 %v3205_v29, %v3204_v7  ;;  %v3209_v20 = vshll.u32 %v3208_v8, 23  ;;  %v6316_v56 = vshrl.u32 %v3039_v0, 5  ;;  %v3044_v52 = vshll.u32 %v4652_v5, %v3041_v40 }
 0x2b5   : > { %v4511_v17 = vpop.eup %4510  ;;  %v1567_v3 = vxor.u32 2147483648, %v4509_v58  ;;  %vm1420_vm14 = vc.u32 %v6309_v46, %v6297_v60  ;;  %v3047_v55 = vshll.u32 %v4653_v9, %v3041_v40  ;;  %v3053_v34 = vshll.u32 %v4655_v13, %v3041_v40 }
 0x2b6   : > { %v1564_v25 = vxor.u32 2147483648, %v4511_v17  ;;  %v3210_v28 = vor.u32 4788187, %v3209_v20  ;;  %v3213_v31 = vcvt.s32.f32 %v3206_v47  ;;  %v1422_v42 = vsel %vm1420_vm14, %v1421_v6, %v6298_v24 }
 0x2b7   : > { %v1568_v50 = vsel %vm1566_vm10, %v1567_v3, %v4511_v17  ;;  %v1423_v12 = vadd.s32 %v1422_v42, %v1418_v32  ;;  %v3045_v23 = vshrl.u32 %v4653_v9, %v3042_v37  ;;  %v3048_v1 = vshrl.u32 %v4654_v11, %v3042_v37 }
 0x2b8   : > { %v1565_v44 = vsel %vm1563_vm8, %v4509_v58, %v1564_v25  ;;  %v3211_v39 = vand.u32 2147483647, %v3210_v28  ;;  %vm1365_vm15 = vcmp.lt.s32.totalorder %v5721_v61, 0  ;;  %v3051_v45 = vshrl.u32 %v4655_v13, %v3042_v37 }
 0x2b9   : > { %v3054_v26 = vshrl.u32 %v4656_v15, %v3042_v37  ;;  %v1569_v57 = vsel %vm1562_vm12, %v1565_v44, %v1568_v50  ;;  %v1424_v36 = vadd.s32 536870912, %v1423_v12  ;;  %v3046_v2 = vor.u32 %v3045_v23, %v3044_v52 }
 0x2ba   : > { %v3050_v16 = vshll.u32 %v4654_v11, %v3041_v40  ;;  %v1570_v59 = vsel %vm1559_vm11, nan, %v1569_v57  ;;  %v3214_v35 = vmul.f32 %v3213_v31, %v3211_v39  ;;  %v3049_v24 = vor.u32 %v3048_v1, %v3047_v55 }
 0x2bb   : > { %v3055_v14 = vor.u32 %v3054_v26, %v3053_v34  ;;  %3868 = vst [vmem:[%s5126_s4 + $0x48] sm:$0xff] %v1570_v59  ;;  %v1425_v18 = vshrl.u32 %v1424_v36, 30  ;;  %v3057_v48 = vshrl.u32 %v4657_v22, %v3042_v37  ;;  %v6340_v0 = vshll.u32 %v3035_v4, 8  ;;  %v6392_v26 = vpop.f32.mrb[13].mxu0 }
 0x2bc   : > { %v1675_v30 = vand.u32 2147483647, %v5883_v43  ;;  %v3215_v54 = vxor.u32 2147483648, %v3214_v35  ;;  %v6343_v7 = vand.u32 3, %v3224_v63  ;;  %v3052_v29 = vor.u32 %v3051_v45, %v3050_v16 }
 0x2bd   : > { %v3056_v8 = vshll.u32 %v4656_v15, %v3041_v40  ;;  %v1426_v32 = vshll.u32 %v1425_v18, 30  ;;  %v1449_v27 = vsub.s32 4, %v1425_v18  ;;  %vm3059_vm13 = vcmp.lt.s32.totalorder %v6316_v56, 1 }
 0x2be   : > { %vm3062_vm0 = vcmp.lt.s32.totalorder %v6316_v56, 4  ;;  %v3216_v6 = vsel %vm3133_vm1, %v3215_v54, %v3214_v35  ;;  %v3067_v4 = vsel %vm3059_vm13, %v3046_v2, %v3049_v24  ;;  %v3043_v20 = vshrl.u32 %v4652_v5, %v3042_v37 }
 0x2bf   : > { %v3058_v58 = vor.u32 %v3057_v48, %v3056_v8  ;;  %v3068_v63 = vsel %vm3062_vm0, %v3055_v14, 920167782  ;;  %v3219_v40 = vsel %vm6272_vm2, %v5655_v51, %v3216_v6  ;;  %v6357_v47 = vsub.s32 %v1423_v12, %v1426_v32 }
 0x2c0   : > { %vm3061_vm3 = vcmp.lt.s32.totalorder %v6316_v56, 3  ;;  %4512 = vcosq.f32 %v3219_v40  ;;  %vm3060_vm1 = vcmp.lt.s32.totalorder %v6316_v56, 2  ;;  %v3064_v52 = vsel %vm3062_vm0, %v3052_v29, 2102212464 }
 0x2c1   : > { %v3069_v17 = vsel %vm3061_vm3, %v3052_v29, %v3068_v63  ;;  %4514 = vsinq.f32 %v3219_v40  ;;  %v1429_v3 = vsub.s32 0, %v6357_v47  ;;  %v1450_v49 = vsel %vm1365_vm15, %v1449_v27, %v1425_v18 }
 0x2c2   : > { %v3070_v55 = vsel %vm3060_vm1, %v3067_v4, %v3069_v17  ;;  %v3071_v37 = vsel %vm3059_vm13, %v3049_v24, %v3052_v29  ;;  %v3072_v34 = vsel %vm3062_vm0, %v3058_v58, 1326507024  ;;  %v3063_v42 = vsel %vm3059_vm13, %v3043_v20, %v3046_v2 }
 0x2c3   : > { %v6374_v25 = vmul.u32.u64.low %v6340_v0, %v3070_v55  ;;  %v6375_v28 = vmul.u32.u64.high %v6340_v0, %v3070_v55, %v6374_v25  ;;  %v4067_v31 = vmin.u32 %v1429_v3, %v6357_v47  ;;  %v3065_v50 = vsel %vm3061_vm3, %v3049_v24, %v3064_v52 }
 0x2c4   : > { %v3073_v12 = vsel %vm3061_vm3, %v3055_v14, %v3072_v34  ;;  %vm6383_vm2 = vcmp.le.f32.partialorder %v1363_v10, 0.7853982  ;;  %v1678_v44 = vand.u32 2139095040, %v5883_v43  ;;  %v3066_v57 = vsel %vm3060_vm1, %v3063_v42, %v3065_v50 }
 0x2c5   : > { %v3074_v1 = vsel %vm3060_vm1, %v3071_v37, %v3073_v12  ;;  %v1431_v39 = vclz %v4067_v31  ;;  %v1452_v45 = vsel %vm6383_vm2, 0, %v1450_v49  ;;  %vm3223_vm5 = vweird.f32 %v5655_v51 }
 0x2c6   : > { %v6397_v36 = vmul.u32.u64.low %v6340_v0, %v3074_v1  ;;  %v6398_v10 = vmul.u32.u64.high %v6340_v0, %v3074_v1, %v6397_v36  ;;  %v1679_v2 = vshrl.u32 %v1678_v44, 23  ;;  %vm3226_vm6 = vcmp.lt.s32.totalorder %v6343_v7, 2 }
 0x2c7   : > { %v4068_v16 = vadd.s32 4294967294, %v1431_v39  ;;  %v1682_v59 = vand.u32 8388607, %v1675_v30  ;;  %vm3227_vm4 = vcmp.eq.s32.totalorder %v6343_v7, 0  ;;  %vm3230_vm9 = vcmp.eq.s32.totalorder %v6343_v7, 2 }
 0x2c8   : > { %v3085_v56 = vadd.s32 1, %v6375_v28  ;;  %v4078_v35 = vadd.s32 4294967169, %v1679_v2  ;;  %v1419_v24 = vadd.s32 %v6297_v60, %v6309_v46  ;;  %v1456_v14 = vadd.s32 3, %v1452_v45 }
 0x2c9   : > { %vm4069_vm7 = vcmp.lt.s32.totalorder %v4068_v16, 0  ;;  %v3082_v18 = vmul.u32 %v6340_v0, %v3066_v57  ;;  %vm3084_vm8 = vc.u32 %v6398_v10, %v6374_v25  ;;  %v3342_v8 = vand.u32 2139095040, %v5963_v21 }
 0x2ca   : > { %v4513_v48 = vpop.eup %4512  ;;  %v1434_v54 = vsel %vm4069_vm7, 0, %v4068_v16  ;;  %v1685_v29 = vadd.s32 1, %v4078_v35  ;;  %v1683_v4 = vor.u32 8388608, %v1682_v59  ;;  %v3086_v46 = vsel %vm3084_vm8, %v3085_v56, %v6375_v28 }
 0x2cb   : > { %v4515_v32 = vpop.eup %4514  ;;  %v3231_v27 = vxor.u32 2147483648, %v4513_v48  ;;  %v1435_v6 = vsub.s32 32, %v1434_v54  ;;  %v1439_v58 = vsub.s32 4294967266, %v1434_v54  ;;  %v1436_v60 = vshll.u32 %v6357_v47, %v1434_v54 }
 0x2cc   : > { %v3228_v63 = vxor.u32 2147483648, %v4515_v32  ;;  %vm1686_vm12 = vcmp.gt.s32.totalorder %v1685_v29, 0  ;;  %v3087_v52 = vadd.s32 %v3086_v46, %v3082_v18  ;;  %v3339_v49 = vand.u32 2147483647, %v5963_v21 }
 0x2cd   : > { %v3232_v0 = vsel %vm3230_vm9, %v3231_v27, %v4515_v32  ;;  %v1437_v40 = vshrl.u32 %v1419_v24, %v1435_v6  ;;  %v1440_v20 = vadd.s32 127, %v1439_v58  ;;  %v1687_v3 = vsel %vm1686_vm12, %v1685_v29, 0 }
 0x2ce   : > { %v3229_v17 = vsel %vm3227_vm4, %v4513_v48, %v3228_v63  ;;  %v3343_v55 = vshrl.u32 %v3342_v8, 23  ;;  %v3088_v28 = vadd.s32 536870912, %v3087_v52  ;;  %v1689_v42 = vand.u32 31, %v1687_v3 }
 0x2cf   : > { %v3233_v47 = vsel %vm3226_vm6, %v3229_v17, %v3232_v0  ;;  %v1438_v37 = vor.u32 %v1437_v40, %v1436_v60  ;;  %v1441_v34 = vshll.u32 %v1440_v20, 23  ;;  %v6425_v12 = vand.u32 3, %v1456_v14 }
 0x2d0   : > { %v3234_v31 = vsel %vm3223_vm5, nan, %v3233_v47  ;;  %vm3029_vm11 = vcmp.lt.s32.totalorder %v5807_v33, 0  ;;  %v3089_v1 = vshrl.u32 %v3088_v28, 30  ;;  %v1690_v44 = vsub.s32 32, %v1689_v42 }
 0x2d1   : > { %3884 = vst [vmem:[%s5126_s4 + $0xc8] sm:$0xff] %v3234_v31  ;;  %v1442_v50 = vor.u32 4788187, %v1441_v34  ;;  %v6428_v39 = vshll.u32 %v1683_v4, 8  ;;  %v4142_v45 = vadd.s32 4294967169, %v3343_v55  ;;  %v1445_v36 = vcvt.s32.f32 %v1438_v37 }
 0x2d2   : > { %v6432_v7 = vand.u32 8388607, %v3339_v49  ;;  %v6436_v51 = vadd.s32 %v6374_v25, %v6398_v10  ;;  %v3090_v2 = vshll.u32 %v3089_v1, 30  ;;  %v1688_v16 = vshrl.u32 %v1687_v3, 5 }
 0x2d3   : > { %v1443_v57 = vand.u32 2147483647, %v1442_v50  ;;  %v1693_v59 = vshrl.u32 %v4653_v9, %v1690_v44  ;;  %v1696_v56 = vshrl.u32 %v4654_v11, %v1690_v44  ;;  %v1699_v35 = vshrl.u32 %v4655_v13, %v1690_v44 }
 0x2d4   : > { %v6441_v14 = vsub.s32 %v3087_v52, %v3090_v2  ;;  %v1692_v18 = vshll.u32 %v4652_v5, %v1689_v42  ;;  %v1702_v48 = vshrl.u32 %v4656_v15, %v1690_v44  ;;  %vm6447_vm10 = vcmp.le.f32.partialorder %v3027_v41, 0.7853982 }
 0x2d5   : > { %v1446_v24 = vmul.f32 %v1445_v36, %v1443_v57  ;;  %v3113_v10 = vsub.s32 4, %v3089_v1  ;;  %v1695_v54 = vshll.u32 %v4653_v9, %v1689_v42  ;;  %v1698_v29 = vshll.u32 %v4654_v11, %v1689_v42 }
 0x2d6   : > { %v3349_v8 = vadd.s32 1, %v4142_v45  ;;  %v3093_v27 = vsub.s32 0, %v6441_v14  ;;  %v1694_v6 = vor.u32 %v1693_v59, %v1692_v18  ;;  %v1701_v58 = vshll.u32 %v4655_v13, %v1689_v42 }
 0x2d7   : > { %v1447_v32 = vxor.u32 2147483648, %v1446_v24  ;;  %v1697_v4 = vor.u32 %v1696_v56, %v1695_v54  ;;  %v1700_v63 = vor.u32 %v1699_v35, %v1698_v29  ;;  %v1704_v60 = vshll.u32 %v4656_v15, %v1689_v42  ;;  %v6476_v35 = vpop.f32.mrb[13].mxu1 }
 0x2d8   : > { %v1705_v41 = vshrl.u32 %v4657_v22, %v1690_v44  ;;  %v4131_v0 = vmin.u32 %v3093_v27, %v6441_v14  ;;  %v1691_v40 = vshrl.u32 %v4652_v5, %v1690_v44  ;;  %v1703_v20 = vor.u32 %v1702_v48, %v1701_v58 }
 0x2d9   : > { %v1448_v46 = vsel %vm1365_vm15, %v1447_v32, %v1446_v24  ;;  %v3114_v17 = vsel %vm3029_vm11, %v3113_v10, %v3089_v1  ;;  %vm1707_vm14 = vcmp.lt.s32.totalorder %v1688_v16, 1  ;;  %vm1708_vm13 = vcmp.lt.s32.totalorder %v1688_v16, 2 }
 0x2da   : > { %v1451_v52 = vsel %vm6383_vm2, %v5721_v61, %v1448_v46  ;;  %v1706_v3 = vor.u32 %v1705_v41, %v1704_v60  ;;  %v3095_v55 = vclz %v4131_v0  ;;  %vm1710_vm0 = vcmp.lt.s32.totalorder %v1688_v16, 4 }
 0x2db   : > { %4516 = vcosq.f32 %v1451_v52  ;;  %vm1709_vm15 = vcmp.lt.s32.totalorder %v1688_v16, 3  ;;  %v1712_v47 = vsel %vm1710_vm0, %v1700_v63, 2102212464  ;;  %v1715_v37 = vsel %vm1707_vm14, %v1694_v6, %v1697_v4 }
 0x2dc   : > { %4518 = vsinq.f32 %v1451_v52  ;;  %v4132_v34 = vadd.s32 4294967294, %v3095_v55  ;;  %v1711_v28 = vsel %vm1707_vm14, %v1691_v40, %v1694_v6  ;;  %v1716_v31 = vsel %vm1710_vm0, %v1703_v20, 920167782 }
 0x2dd   : > { %v1719_v42 = vsel %vm1707_vm14, %v1697_v4, %v1700_v63  ;;  %v1713_v50 = vsel %vm1709_vm15, %v1697_v4, %v1712_v47  ;;  %v1717_v23 = vsel %vm1709_vm15, %v1700_v63, %v1716_v31  ;;  %v1720_v44 = vsel %vm1710_vm0, %v1706_v3, 1326507024 }
 0x2de   : > { %vm3350_vm3 = vcmp.gt.s32.totalorder %v3349_v8, 0  ;;  %vm4133_vm1 = vcmp.lt.s32.totalorder %v4132_v34, 0  ;;  %v3116_v1 = vsel %vm6447_vm10, 0, %v3114_v17  ;;  %v1718_v45 = vsel %vm1708_vm13, %v1715_v37, %v1717_v23 }
 0x2df   : > { %v1721_v57 = vsel %vm1709_vm15, %v1703_v20, %v1720_v44  ;;  %vm1459_vm2 = vcmp.eq.s32.totalorder %v6425_v12, 0  ;;  %v3098_v36 = vsel %vm4133_vm1, 0, %v4132_v34  ;;  %vm1458_vm5 = vcmp.lt.s32.totalorder %v6425_v12, 2 }
 0x2e0   : > { %v1722_v2 = vsel %vm1708_vm13, %v1719_v42, %v1721_v57  ;;  %v6472_v59 = vmul.u32.u64.low %v6428_v39, %v1718_v45  ;;  %v6473_v56 = vmul.u32.u64.high %v6428_v39, %v1718_v45, %v6472_v59  ;;  %v3099_v24 = vsub.s32 32, %v3098_v36 }
 0x2e1   : > { %v3103_v18 = vsub.s32 4294967266, %v3098_v36  ;;  %v1714_v48 = vsel %vm1708_vm13, %v1711_v28, %v1713_v50  ;;  %v3351_v10 = vsel %vm3350_vm3, %v3349_v8, 0  ;;  %vm1455_vm6 = vweird.f32 %v5721_v61 }
 0x2e2   : > { %vm1462_vm4 = vcmp.eq.s32.totalorder %v6425_v12, 2  ;;  %v6483_v54 = vmul.u32.u64.low %v6428_v39, %v1722_v2  ;;  %v6484_v29 = vmul.u32.u64.high %v6428_v39, %v1722_v2, %v6483_v54  ;;  %v3353_v32 = vand.u32 31, %v3351_v10 }
 0x2e3   : > { %v3100_v27 = vshll.u32 %v6441_v14, %v3098_v36  ;;  %v3101_v6 = vshrl.u32 %v6436_v51, %v3099_v24  ;;  %v3104_v58 = vadd.s32 127, %v3103_v18  ;;  %v3347_v4 = vor.u32 8388608, %v6432_v7 }
 0x2e4   : > { %v3120_v63 = vadd.s32 3, %v3116_v1  ;;  %v1730_v16 = vmul.u32 %v6428_v39, %v1714_v48  ;;  %v1733_v8 = vadd.s32 1, %v6473_v56  ;;  %v3354_v60 = vsub.s32 32, %v3353_v32 }
 0x2e5   : > { %v4517_v41 = vpop.eup %4516  ;;  %v3102_v46 = vor.u32 %v3101_v6, %v3100_v27  ;;  %v3105_v0 = vshll.u32 %v3104_v58, 23  ;;  %v6491_v40 = vshrl.u32 %v3351_v10, 5  ;;  %v3356_v20 = vshll.u32 %v4652_v5, %v3353_v32 }
 0x2e6   : > { %v4519_v52 = vpop.eup %4518  ;;  %v1463_v14 = vxor.u32 2147483648, %v4517_v41  ;;  %vm1732_vm9 = vc.u32 %v6484_v29, %v6472_v59  ;;  %v3359_v7 = vshll.u32 %v4653_v9, %v3353_v32  ;;  %v3365_v51 = vshll.u32 %v4655_v13, %v3353_v32 }
 0x2e7   : > { %v1460_v39 = vxor.u32 2147483648, %v4519_v52  ;;  %v3106_v17 = vor.u32 4788187, %v3105_v0  ;;  %v3109_v3 = vcvt.s32.f32 %v3102_v46  ;;  %v1734_v55 = vsel %vm1732_vm9, %v1733_v8, %v6473_v56 }
 0x2e8   : > { %v1464_v47 = vsel %vm1462_vm4, %v1463_v14, %v4519_v52  ;;  %v1735_v37 = vadd.s32 %v1734_v55, %v1730_v16  ;;  %v3357_v34 = vshrl.u32 %v4653_v9, %v3354_v60  ;;  %v3360_v28 = vshrl.u32 %v4654_v11, %v3354_v60 }
 0x2e9   : > { %v1461_v31 = vsel %vm1459_vm2, %v4517_v41, %v1460_v39  ;;  %v3107_v42 = vand.u32 2147483647, %v3106_v17  ;;  %vm1677_vm7 = vcmp.lt.s32.totalorder %v5883_v43, 0  ;;  %v3363_v50 = vshrl.u32 %v4655_v13, %v3354_v60 }
 0x2ea   : > { %v3366_v23 = vshrl.u32 %v4656_v15, %v3354_v60  ;;  %v1465_v44 = vsel %vm1458_vm5, %v1461_v31, %v1464_v47  ;;  %v1736_v1 = vadd.s32 536870912, %v1735_v37  ;;  %v3358_v45 = vor.u32 %v3357_v34, %v3356_v20 }
 0x2eb   : > { %v3362_v57 = vshll.u32 %v4654_v11, %v3353_v32  ;;  %v1466_v36 = vsel %vm1455_vm6, nan, %v1465_v44  ;;  %v3110_v2 = vmul.f32 %v3109_v3, %v3107_v42  ;;  %v3361_v56 = vor.u32 %v3360_v28, %v3359_v7 }
 0x2ec   : > { %v3367_v24 = vor.u32 %v3366_v23, %v3365_v51  ;;  %3867 = vst [vmem:[%s5126_s4 + $0x40] sm:$0xff] %v1466_v36  ;;  %v1737_v18 = vshrl.u32 %v1736_v1, 30  ;;  %v3369_v48 = vshrl.u32 %v4657_v22, %v3354_v60  ;;  %v6515_v10 = vshll.u32 %v3347_v4, 8  ;;  %v6577_v36 = vpop.f32.mrb[14].mxu0 }
 0x2ed   : > { %v1571_v54 = vand.u32 2147483647, %v6044_v19  ;;  %v3111_v12 = vxor.u32 2147483648, %v3110_v2  ;;  %v6518_v27 = vand.u32 3, %v3120_v63  ;;  %v3364_v6 = vor.u32 %v3363_v50, %v3362_v57 }
 0x2ee   : > { %v3368_v58 = vshll.u32 %v4656_v15, %v3353_v32  ;;  %v1738_v16 = vshll.u32 %v1737_v18, 30  ;;  %v1761_v61 = vsub.s32 4, %v1737_v18  ;;  %vm3371_vm8 = vcmp.lt.s32.totalorder %v6491_v40, 1 }
 0x2ef   : > { %vm3374_vm12 = vcmp.lt.s32.totalorder %v6491_v40, 4  ;;  %v3112_v8 = vsel %vm3029_vm11, %v3111_v12, %v3110_v2  ;;  %v3379_v4 = vsel %vm3371_vm8, %v3358_v45, %v3361_v56  ;;  %v3355_v0 = vshrl.u32 %v4652_v5, %v3354_v60 }
 0x2f0   : > { %v3370_v41 = vor.u32 %v3369_v48, %v3368_v58  ;;  %v3380_v63 = vsel %vm3374_vm12, %v3367_v24, 920167782  ;;  %v3115_v32 = vsel %vm6447_vm10, %v5807_v33, %v3112_v8  ;;  %v6532_v46 = vsub.s32 %v1735_v37, %v1738_v16 }
 0x2f1   : > { %vm3373_vm14 = vcmp.lt.s32.totalorder %v6491_v40, 3  ;;  %4520 = vcosq.f32 %v3115_v32  ;;  %vm3372_vm11 = vcmp.lt.s32.totalorder %v6491_v40, 2  ;;  %v3376_v20 = vsel %vm3374_vm12, %v3364_v6, 2102212464 }
 0x2f2   : > { %v3381_v52 = vsel %vm3373_vm14, %v3364_v6, %v3380_v63  ;;  %4522 = vsinq.f32 %v3115_v32  ;;  %v1741_v14 = vsub.s32 0, %v6532_v46  ;;  %v1762_v25 = vsel %vm1677_vm7, %v1761_v61, %v1737_v18 }
 0x2f3   : > { %v3382_v7 = vsel %vm3372_vm11, %v3379_v4, %v3381_v52  ;;  %v3383_v60 = vsel %vm3371_vm8, %v3361_v56, %v3364_v6  ;;  %v3384_v51 = vsel %vm3374_vm12, %v3370_v41, 1326507024  ;;  %v3375_v55 = vsel %vm3371_vm8, %v3355_v0, %v3358_v45 }
 0x2f4   : > { %v6549_v39 = vmul.u32.u64.low %v6515_v10, %v3382_v7  ;;  %v6550_v17 = vmul.u32.u64.high %v6515_v10, %v3382_v7, %v6549_v39  ;;  %v4079_v3 = vmin.u32 %v1741_v14, %v6532_v46  ;;  %v3377_v47 = vsel %vm3373_vm14, %v3361_v56, %v3376_v20 }
 0x2f5   : > { %v3385_v37 = vsel %vm3373_vm14, %v3367_v24, %v3384_v51  ;;  %vm6558_vm10 = vcmp.le.f32.partialorder %v1675_v30, 0.7853982  ;;  %v1574_v31 = vand.u32 2139095040, %v6044_v19  ;;  %v3378_v23 = vsel %vm3372_vm11, %v3375_v55, %v3377_v47 }
 0x2f6   : > { %v3386_v28 = vsel %vm3372_vm11, %v3383_v60, %v3385_v37  ;;  %v1743_v42 = vclz %v4079_v3  ;;  %v1764_v50 = vsel %vm6558_vm10, 0, %v1762_v25  ;;  %vm3119_vm13 = vweird.f32 %v5807_v33 }
 0x2f7   : > { %v6570_v44 = vmul.u32.u64.low %v6515_v10, %v3386_v28  ;;  %v6571_v1 = vmul.u32.u64.high %v6515_v10, %v3386_v28, %v6570_v44  ;;  %v1575_v30 = vshrl.u32 %v1574_v31, 23  ;;  %vm3122_vm0 = vcmp.lt.s32.totalorder %v6518_v27, 2 }
 0x2f8   : > { %v4080_v45 = vadd.s32 4294967294, %v1743_v42  ;;  %v1578_v57 = vand.u32 8388607, %v1571_v54  ;;  %vm3123_vm15 = vcmp.eq.s32.totalorder %v6518_v27, 0  ;;  %vm3126_vm3 = vcmp.eq.s32.totalorder %v6518_v27, 2 }
 0x2f9   : > { %v3397_v40 = vadd.s32 1, %v6550_v17  ;;  %v4074_v2 = vadd.s32 4294967169, %v1575_v30  ;;  %v1731_v56 = vadd.s32 %v6472_v59, %v6484_v29  ;;  %v1768_v24 = vadd.s32 3, %v1764_v50 }
 0x2fa   : > { %vm4081_vm1 = vcmp.lt.s32.totalorder %v4080_v45, 0  ;;  %v3394_v18 = vmul.u32 %v6515_v10, %v3378_v23  ;;  %vm3396_vm2 = vc.u32 %v6571_v1, %v6549_v39  ;;  %v3238_v58 = vand.u32 2139095040, %v6126_v62 }
 0x2fb   : > { %v4521_v48 = vpop.eup %4520  ;;  %v1746_v12 = vsel %vm4081_vm1, 0, %v4080_v45  ;;  %v1581_v6 = vadd.s32 1, %v4074_v2  ;;  %v1579_v4 = vor.u32 8388608, %v1578_v57  ;;  %v3398_v29 = vsel %vm3396_vm2, %v3397_v40, %v6550_v17 }
 0x2fc   : > { %v4523_v16 = vpop.eup %4522  ;;  %v3127_v61 = vxor.u32 2147483648, %v4521_v48  ;;  %v1747_v8 = vsub.s32 32, %v1746_v12  ;;  %v1751_v41 = vsub.s32 4294967266, %v1746_v12  ;;  %v1748_v59 = vshll.u32 %v6532_v46, %v1746_v12 }
 0x2fd   : > { %v3124_v63 = vxor.u32 2147483648, %v4523_v16  ;;  %vm1582_vm5 = vcmp.gt.s32.totalorder %v1581_v6, 0  ;;  %v3399_v20 = vadd.s32 %v3398_v29, %v3394_v18  ;;  %v3235_v25 = vand.u32 2147483647, %v6126_v62 }
 0x2fe   : > { %v3128_v10 = vsel %vm3126_vm3, %v3127_v61, %v4523_v16  ;;  %v1749_v32 = vshrl.u32 %v1731_v56, %v1747_v8  ;;  %v1752_v0 = vadd.s32 127, %v1751_v41  ;;  %v1583_v14 = vsel %vm1582_vm5, %v1581_v6, 0 }
 0x2ff   : > { %v3125_v52 = vsel %vm3123_vm15, %v4521_v48, %v3124_v63  ;;  %v3239_v7 = vshrl.u32 %v3238_v58, 23  ;;  %v3400_v17 = vadd.s32 536870912, %v3399_v20  ;;  %v1585_v55 = vand.u32 31, %v1583_v14 }
 0x300   : > { %v3129_v46 = vsel %vm3122_vm0, %v3125_v52, %v3128_v10  ;;  %v1750_v60 = vor.u32 %v1749_v32, %v1748_v59  ;;  %v1753_v51 = vshll.u32 %v1752_v0, 23  ;;  %v6600_v37 = vand.u32 3, %v1768_v24 }
 0x301   : > { %v3130_v3 = vsel %vm3119_vm13, nan, %v3129_v46  ;;  %vm3341_vm6 = vcmp.lt.s32.totalorder %v5963_v21, 0  ;;  %v3401_v28 = vshrl.u32 %v3400_v17, 30  ;;  %v1586_v31 = vsub.s32 32, %v1585_v55 }
 0x302   : > { %3883 = vst [vmem:[%s5126_s4 + $0xc0] sm:$0xff] %v3130_v3  ;;  %v1754_v47 = vor.u32 4788187, %v1753_v51  ;;  %v6603_v42 = vshll.u32 %v1579_v4, 8  ;;  %v4138_v50 = vadd.s32 4294967169, %v3239_v7  ;;  %v1757_v44 = vcvt.s32.f32 %v1750_v60 }
 0x303   : > { %v6607_v27 = vand.u32 8388607, %v3235_v25  ;;  %v6611_v33 = vadd.s32 %v6549_v39, %v6571_v1  ;;  %v3402_v30 = vshll.u32 %v3401_v28, 30  ;;  %v1584_v45 = vshrl.u32 %v1583_v14, 5 }
 0x304   : > { %v1755_v23 = vand.u32 2147483647, %v1754_v47  ;;  %v1589_v57 = vshrl.u32 %v4653_v9, %v1586_v31  ;;  %v1592_v40 = vshrl.u32 %v4654_v11, %v1586_v31  ;;  %v1595_v2 = vshrl.u32 %v4655_v13, %v1586_v31 }
 0x305   : > { %v6616_v24 = vsub.s32 %v3399_v20, %v3402_v30  ;;  %v1588_v18 = vshll.u32 %v4652_v5, %v1585_v55  ;;  %v1598_v48 = vshrl.u32 %v4656_v15, %v1586_v31  ;;  %vm6622_vm4 = vcmp.le.f32.partialorder %v3339_v49, 0.7853982 }
 0x306   : > { %v1758_v56 = vmul.f32 %v1757_v44, %v1755_v23  ;;  %v3425_v1 = vsub.s32 4, %v3401_v28  ;;  %v1591_v12 = vshll.u32 %v4653_v9, %v1585_v55  ;;  %v1594_v6 = vshll.u32 %v4654_v11, %v1585_v55 }
 0x307   : > { %v3245_v58 = vadd.s32 1, %v4138_v50  ;;  %v3405_v61 = vsub.s32 0, %v6616_v24  ;;  %v1590_v8 = vor.u32 %v1589_v57, %v1588_v18  ;;  %v1597_v41 = vshll.u32 %v4655_v13, %v1585_v55 }
 0x308   : > { %v1759_v16 = vxor.u32 2147483648, %v1758_v56  ;;  %v1593_v4 = vor.u32 %v1592_v40, %v1591_v12  ;;  %v1596_v63 = vor.u32 %v1595_v2, %v1594_v6  ;;  %v1600_v59 = vshll.u32 %v4656_v15, %v1585_v55  ;;  %v6651_v2 = vpop.f32.mrb[14].mxu1 }
 0x309   : > { %v1601_v49 = vshrl.u32 %v4657_v22, %v1586_v31  ;;  %v4143_v10 = vmin.u32 %v3405_v61, %v6616_v24  ;;  %v1587_v32 = vshrl.u32 %v4652_v5, %v1586_v31  ;;  %v1599_v0 = vor.u32 %v1598_v48, %v1597_v41 }
 0x30a   : > { %v1760_v29 = vsel %vm1677_vm7, %v1759_v16, %v1758_v56  ;;  %v3426_v52 = vsel %vm3341_vm6, %v3425_v1, %v3401_v28  ;;  %vm1603_vm9 = vcmp.lt.s32.totalorder %v1584_v45, 1  ;;  %vm1604_vm8 = vcmp.lt.s32.totalorder %v1584_v45, 2 }
 0x30b   : > { %v1763_v20 = vsel %vm6558_vm10, %v5883_v43, %v1760_v29  ;;  %v1602_v14 = vor.u32 %v1601_v49, %v1600_v59  ;;  %v3407_v7 = vclz %v4143_v10  ;;  %vm1606_vm12 = vcmp.lt.s32.totalorder %v1584_v45, 4 }
 0x30c   : > { %4524 = vcosq.f32 %v1763_v20  ;;  %vm1605_vm7 = vcmp.lt.s32.totalorder %v1584_v45, 3  ;;  %v1608_v46 = vsel %vm1606_vm12, %v1596_v63, 2102212464  ;;  %v1611_v60 = vsel %vm1603_vm9, %v1590_v8, %v1593_v4 }
 0x30d   : > { %4526 = vsinq.f32 %v1763_v20  ;;  %v4144_v51 = vadd.s32 4294967294, %v3407_v7  ;;  %v1607_v17 = vsel %vm1603_vm9, %v1587_v32, %v1590_v8  ;;  %v1612_v3 = vsel %vm1606_vm12, %v1599_v0, 920167782 }
 0x30e   : > { %v1615_v55 = vsel %vm1603_vm9, %v1593_v4, %v1596_v63  ;;  %v1609_v47 = vsel %vm1605_vm7, %v1593_v4, %v1608_v46  ;;  %v1613_v34 = vsel %vm1605_vm7, %v1596_v63, %v1612_v3  ;;  %v1616_v31 = vsel %vm1606_vm12, %v1602_v14, 1326507024 }
 0x30f   : > { %vm3246_vm14 = vcmp.gt.s32.totalorder %v3245_v58, 0  ;;  %vm4145_vm11 = vcmp.lt.s32.totalorder %v4144_v51, 0  ;;  %v3428_v28 = vsel %vm6622_vm4, 0, %v3426_v52  ;;  %v1614_v50 = vsel %vm1604_vm8, %v1611_v60, %v1613_v34 }
 0x310   : > { %v1617_v23 = vsel %vm1605_vm7, %v1599_v0, %v1616_v31  ;;  %vm1771_vm10 = vcmp.eq.s32.totalorder %v6600_v37, 0  ;;  %v3410_v44 = vsel %vm4145_vm11, 0, %v4144_v51  ;;  %vm1770_vm13 = vcmp.lt.s32.totalorder %v6600_v37, 2 }
 0x311   : > { %v1618_v30 = vsel %vm1604_vm8, %v1615_v55, %v1617_v23  ;;  %v6647_v57 = vmul.u32.u64.low %v6603_v42, %v1614_v50  ;;  %v6648_v40 = vmul.u32.u64.high %v6603_v42, %v1614_v50, %v6647_v57  ;;  %v3411_v56 = vsub.s32 32, %v3410_v44 }
 0x312   : > { %v3415_v18 = vsub.s32 4294967266, %v3410_v44  ;;  %v1610_v48 = vsel %vm1604_vm8, %v1607_v17, %v1609_v47  ;;  %v3247_v1 = vsel %vm3246_vm14, %v3245_v58, 0  ;;  %vm1767_vm0 = vweird.f32 %v5883_v43 }
 0x313   : > { %vm1774_vm15 = vcmp.eq.s32.totalorder %v6600_v37, 2  ;;  %v6658_v12 = vmul.u32.u64.low %v6603_v42, %v1618_v30  ;;  %v6659_v6 = vmul.u32.u64.high %v6603_v42, %v1618_v30, %v6658_v12  ;;  %v3249_v16 = vand.u32 31, %v3247_v1 }
 0x314   : > { %v3412_v61 = vshll.u32 %v6616_v24, %v3410_v44  ;;  %v3413_v8 = vshrl.u32 %v6611_v33, %v3411_v56  ;;  %v3416_v41 = vadd.s32 127, %v3415_v18  ;;  %v3243_v4 = vor.u32 8388608, %v6607_v27 }
 0x315   : > { %v3432_v63 = vadd.s32 3, %v3428_v28  ;;  %v1626_v45 = vmul.u32 %v6603_v42, %v1610_v48  ;;  %v1629_v58 = vadd.s32 1, %v6648_v40  ;;  %v3250_v59 = vsub.s32 32, %v3249_v16 }
 0x316   : > { %v4525_v49 = vpop.eup %4524  ;;  %v3414_v29 = vor.u32 %v3413_v8, %v3412_v61  ;;  %v3417_v10 = vshll.u32 %v3416_v41, 23  ;;  %v6666_v32 = vshrl.u32 %v3247_v1, 5  ;;  %v3252_v0 = vshll.u32 %v4652_v5, %v3249_v16 }
 0x317   : > { %v4527_v20 = vpop.eup %4526  ;;  %v1775_v24 = vxor.u32 2147483648, %v4525_v49  ;;  %vm1628_vm3 = vc.u32 %v6659_v6, %v6647_v57  ;;  %v3255_v27 = vshll.u32 %v4653_v9, %v3249_v16  ;;  %v3261_v33 = vshll.u32 %v4655_v13, %v3249_v16 }
 0x318   : > { %v1772_v42 = vxor.u32 2147483648, %v4527_v20  ;;  %v3418_v52 = vor.u32 4788187, %v3417_v10  ;;  %v3421_v14 = vcvt.s32.f32 %v3414_v29  ;;  %v1630_v7 = vsel %vm1628_vm3, %v1629_v58, %v6648_v40 }
 0x319   : > { %v1776_v46 = vsel %vm1774_vm15, %v1775_v24, %v4527_v20  ;;  %v1631_v60 = vadd.s32 %v1630_v7, %v1626_v45  ;;  %v3253_v51 = vshrl.u32 %v4653_v9, %v3250_v59  ;;  %v3256_v17 = vshrl.u32 %v4654_v11, %v3250_v59 }
 0x31a   : > { %v1773_v3 = vsel %vm1771_vm10, %v4525_v49, %v1772_v42  ;;  %v3419_v55 = vand.u32 2147483647, %v3418_v52  ;;  %vm1573_vm1 = vcmp.lt.s32.totalorder %v6044_v19, 0  ;;  %v3259_v47 = vshrl.u32 %v4655_v13, %v3250_v59 }
 0x31b   : > { %v3262_v34 = vshrl.u32 %v4656_v15, %v3250_v59  ;;  %v1777_v31 = vsel %vm1770_vm13, %v1773_v3, %v1776_v46  ;;  %v1632_v28 = vadd.s32 536870912, %v1631_v60  ;;  %v3254_v50 = vor.u32 %v3253_v51, %v3252_v0 }
 0x31c   : > { %v3258_v23 = vshll.u32 %v4654_v11, %v3249_v16  ;;  %v1778_v44 = vsel %vm1767_vm0, nan, %v1777_v31  ;;  %v3422_v30 = vmul.f32 %v3421_v14, %v3419_v55  ;;  %v3257_v40 = vor.u32 %v3256_v17, %v3255_v27 }
 0x31d   : > { %v3263_v56 = vor.u32 %v3262_v34, %v3261_v33  ;;  %3870 = vst [vmem:[%s5126_s4 + $0x58] sm:$0xff] %v1778_v44  ;;  %v1633_v18 = vshrl.u32 %v1632_v28, 30  ;;  %v3265_v48 = vshrl.u32 %v4657_v22, %v3250_v59  ;;  %v6690_v1 = vshll.u32 %v3243_v4, 8  ;;  %v6742_v34 = vpop.f32.mrb[15].mxu0 }
 0x31e   : > { %v1883_v12 = vand.u32 2147483647, %v6227_v53  ;;  %v3423_v37 = vxor.u32 2147483648, %v3422_v30  ;;  %v6693_v61 = vand.u32 3, %v3432_v63  ;;  %v3260_v8 = vor.u32 %v3259_v47, %v3258_v23 }
 0x31f   : > { %v3264_v41 = vshll.u32 %v4656_v15, %v3249_v16  ;;  %v1634_v45 = vshll.u32 %v1633_v18, 30  ;;  %v1657_v43 = vsub.s32 4, %v1633_v18  ;;  %vm3267_vm2 = vcmp.lt.s32.totalorder %v6666_v32, 1 }
 0x320   : > { %vm3270_vm5 = vcmp.lt.s32.totalorder %v6666_v32, 4  ;;  %v3424_v58 = vsel %vm3341_vm6, %v3423_v37, %v3422_v30  ;;  %v3275_v4 = vsel %vm3267_vm2, %v3254_v50, %v3257_v40  ;;  %v3251_v10 = vshrl.u32 %v4652_v5, %v3250_v59 }
 0x321   : > { %v3266_v49 = vor.u32 %v3265_v48, %v3264_v41  ;;  %v3276_v63 = vsel %vm3270_vm5, %v3263_v56, 920167782  ;;  %v3427_v16 = vsel %vm6622_vm4, %v5963_v21, %v3424_v58  ;;  %v6707_v29 = vsub.s32 %v1631_v60, %v1634_v45 }
 0x322   : > { %vm3269_vm9 = vcmp.lt.s32.totalorder %v6666_v32, 3  ;;  %4528 = vcosq.f32 %v3427_v16  ;;  %vm3268_vm6 = vcmp.lt.s32.totalorder %v6666_v32, 2  ;;  %v3272_v0 = vsel %vm3270_vm5, %v3260_v8, 2102212464 }
 0x323   : > { %v3277_v20 = vsel %vm3269_vm9, %v3260_v8, %v3276_v63  ;;  %4530 = vsinq.f32 %v3427_v16  ;;  %v1637_v24 = vsub.s32 0, %v6707_v29  ;;  %v1658_v39 = vsel %vm1573_vm1, %v1657_v43, %v1633_v18 }
 0x324   : > { %v3278_v27 = vsel %vm3268_vm6, %v3275_v4, %v3277_v20  ;;  %v3279_v59 = vsel %vm3267_vm2, %v3257_v40, %v3260_v8  ;;  %v3280_v33 = vsel %vm3270_vm5, %v3266_v49, 1326507024  ;;  %v3271_v7 = vsel %vm3267_vm2, %v3251_v10, %v3254_v50 }
 0x325   : > { %v6724_v42 = vmul.u32.u64.low %v6690_v1, %v3278_v27  ;;  %v6725_v52 = vmul.u32.u64.high %v6690_v1, %v3278_v27, %v6724_v42  ;;  %v4075_v14 = vmin.u32 %v1637_v24, %v6707_v29  ;;  %v3273_v46 = vsel %vm3269_vm9, %v3257_v40, %v3272_v0 }
 0x326   : > { %v3281_v60 = vsel %vm3269_vm9, %v3263_v56, %v3280_v33  ;;  %vm6733_vm4 = vcmp.le.f32.partialorder %v1571_v54, 0.7853982  ;;  %v1886_v3 = vand.u32 2139095040, %v6227_v53  ;;  %v3274_v31 = vsel %vm3268_vm6, %v3271_v7, %v3273_v46 }
 0x327   : > { %v3282_v17 = vsel %vm3268_vm6, %v3279_v59, %v3281_v60  ;;  %v1639_v55 = vclz %v4075_v14  ;;  %v1660_v47 = vsel %vm6733_vm4, 0, %v1658_v39  ;;  %vm3431_vm8 = vweird.f32 %v5963_v21 }
 0x328   : > { %v6747_v28 = vmul.u32.u64.low %v6690_v1, %v3282_v17  ;;  %v6748_v54 = vmul.u32.u64.high %v6690_v1, %v3282_v17, %v6747_v28  ;;  %v1887_v50 = vshrl.u32 %v1886_v3, 23  ;;  %vm3434_vm12 = vcmp.lt.s32.totalorder %v6693_v61, 2 }
 0x329   : > { %v4076_v23 = vadd.s32 4294967294, %v1639_v55  ;;  %v1890_v44 = vand.u32 8388607, %v1883_v12  ;;  %vm3435_vm7 = vcmp.eq.s32.totalorder %v6693_v61, 0  ;;  %vm3438_vm14 = vcmp.eq.s32.totalorder %v6693_v61, 2 }
 0x32a   : > { %v3293_v32 = vadd.s32 1, %v6725_v52  ;;  %v4086_v30 = vadd.s32 4294967169, %v1887_v50  ;;  %v1627_v40 = vadd.s32 %v6647_v57, %v6659_v6  ;;  %v1664_v56 = vadd.s32 3, %v1660_v47 }
 0x32b   : > { %vm4077_vm11 = vcmp.lt.s32.totalorder %v4076_v23, 0  ;;  %v3290_v18 = vmul.u32 %v6690_v1, %v3274_v31  ;;  %vm3292_vm10 = vc.u32 %v6748_v54, %v6724_v42  ;;  %v3550_v41 = vand.u32 2139095040, %v6301_v38 }
 0x32c   : > { %v4529_v48 = vpop.eup %4528  ;;  %v1642_v37 = vsel %vm4077_vm11, 0, %v4076_v23  ;;  %v1893_v8 = vadd.s32 1, %v4086_v30  ;;  %v1891_v4 = vor.u32 8388608, %v1890_v44  ;;  %v3294_v6 = vsel %vm3292_vm10, %v3293_v32, %v6725_v52 }
 0x32d   : > { %v4531_v45 = vpop.eup %4530  ;;  %v3439_v43 = vxor.u32 2147483648, %v4529_v48  ;;  %v1643_v58 = vsub.s32 32, %v1642_v37  ;;  %v1647_v49 = vsub.s32 4294967266, %v1642_v37  ;;  %v1644_v57 = vshll.u32 %v6707_v29, %v1642_v37 }
 0x32e   : > { %v3436_v63 = vxor.u32 2147483648, %v4531_v45  ;;  %vm1894_vm13 = vcmp.gt.s32.totalorder %v1893_v8, 0  ;;  %v3295_v0 = vadd.s32 %v3294_v6, %v3290_v18  ;;  %v3547_v39 = vand.u32 2147483647, %v6301_v38 }
 0x32f   : > { %v3440_v1 = vsel %vm3438_vm14, %v3439_v43, %v4531_v45  ;;  %v1645_v16 = vshrl.u32 %v1627_v40, %v1643_v58  ;;  %v1648_v10 = vadd.s32 127, %v1647_v49  ;;  %v1895_v24 = vsel %vm1894_vm13, %v1893_v8, 0 }
 0x330   : > { %v3437_v20 = vsel %vm3435_vm7, %v4529_v48, %v3436_v63  ;;  %v3551_v27 = vshrl.u32 %v3550_v41, 23  ;;  %v3296_v52 = vadd.s32 536870912, %v3295_v0  ;;  %v1897_v7 = vand.u32 31, %v1895_v24 }
 0x331   : > { %v3441_v29 = vsel %vm3434_vm12, %v3437_v20, %v3440_v1  ;;  %v1646_v59 = vor.u32 %v1645_v16, %v1644_v57  ;;  %v1649_v33 = vshll.u32 %v1648_v10, 23  ;;  %v6775_v60 = vand.u32 3, %v1664_v56 }
 0x332   : > { %v3442_v14 = vsel %vm3431_vm8, nan, %v3441_v29  ;;  %vm3237_vm0 = vcmp.lt.s32.totalorder %v6126_v62, 0  ;;  %v3297_v17 = vshrl.u32 %v3296_v52, 30  ;;  %v1898_v3 = vsub.s32 32, %v1897_v7 }
 0x333   : > { %3886 = vst [vmem:[%s5126_s4 + $0xd8] sm:$0xff] %v3442_v14  ;;  %v1650_v46 = vor.u32 4788187, %v1649_v33  ;;  %v6778_v55 = vshll.u32 %v1891_v4, 8  ;;  %v4150_v47 = vadd.s32 4294967169, %v3551_v27  ;;  %v1653_v28 = vcvt.s32.f32 %v1646_v59 }
 0x334   : > { %v6782_v61 = vand.u32 8388607, %v3547_v39  ;;  %v6786_v21 = vadd.s32 %v6724_v42, %v6748_v54  ;;  %v3298_v50 = vshll.u32 %v3297_v17, 30  ;;  %v1896_v23 = vshrl.u32 %v1895_v24, 5 }
 0x335   : > { %v1651_v31 = vand.u32 2147483647, %v1650_v46  ;;  %v1901_v44 = vshrl.u32 %v4653_v9, %v1898_v3  ;;  %v1904_v32 = vshrl.u32 %v4654_v11, %v1898_v3  ;;  %v1907_v30 = vshrl.u32 %v4655_v13, %v1898_v3 }
 0x336   : > { %v6791_v56 = vsub.s32 %v3295_v0, %v3298_v50  ;;  %v1900_v18 = vshll.u32 %v4652_v5, %v1897_v7  ;;  %v1910_v48 = vshrl.u32 %v4656_v15, %v1898_v3  ;;  %vm6797_vm15 = vcmp.le.f32.partialorder %v3235_v25, 0.7853982 }
 0x337   : > { %v1654_v40 = vmul.f32 %v1653_v28, %v1651_v31  ;;  %v3321_v54 = vsub.s32 4, %v3297_v17  ;;  %v1903_v37 = vshll.u32 %v4653_v9, %v1897_v7  ;;  %v1906_v8 = vshll.u32 %v4654_v11, %v1897_v7 }
 0x338   : > { %v3557_v41 = vadd.s32 1, %v4150_v47  ;;  %v3301_v43 = vsub.s32 0, %v6791_v56  ;;  %v1902_v58 = vor.u32 %v1901_v44, %v1900_v18  ;;  %v1909_v49 = vshll.u32 %v4655_v13, %v1897_v7 }
 0x339   : > { %v1655_v45 = vxor.u32 2147483648, %v1654_v40  ;;  %v1905_v4 = vor.u32 %v1904_v32, %v1903_v37  ;;  %v1908_v63 = vor.u32 %v1907_v30, %v1906_v8  ;;  %v1912_v57 = vshll.u32 %v4656_v15, %v1897_v7  ;;  %v6826_v30 = vpop.f32.mrb[15].mxu1 }
 0x33a   : > { %v1913_v25 = vshrl.u32 %v4657_v22, %v1898_v3  ;;  %v4139_v1 = vmin.u32 %v3301_v43, %v6791_v56  ;;  %v1899_v16 = vshrl.u32 %v4652_v5, %v1898_v3  ;;  %v1911_v10 = vor.u32 %v1910_v48, %v1909_v49 }
 0x33b   : > { %v1656_v6 = vsel %vm1573_vm1, %v1655_v45, %v1654_v40  ;;  %v3322_v20 = vsel %vm3237_vm0, %v3321_v54, %v3297_v17  ;;  %vm1915_vm3 = vcmp.lt.s32.totalorder %v1896_v23, 1  ;;  %vm1916_vm2 = vcmp.lt.s32.totalorder %v1896_v23, 2 }
 0x33c   : > { %v1659_v0 = vsel %vm6733_vm4, %v6044_v19, %v1656_v6  ;;  %v1914_v24 = vor.u32 %v1913_v25, %v1912_v57  ;;  %v3303_v27 = vclz %v4139_v1  ;;  %vm1918_vm5 = vcmp.lt.s32.totalorder %v1896_v23, 4 }
 0x33d   : > { %4532 = vcosq.f32 %v1659_v0  ;;  %vm1917_vm1 = vcmp.lt.s32.totalorder %v1896_v23, 3  ;;  %v1920_v29 = vsel %vm1918_vm5, %v1908_v63, 2102212464  ;;  %v1923_v59 = vsel %vm1915_vm3, %v1902_v58, %v1905_v4 }
 0x33e   : > { %4534 = vsinq.f32 %v1659_v0  ;;  %v4140_v33 = vadd.s32 4294967294, %v3303_v27  ;;  %v1919_v52 = vsel %vm1915_vm3, %v1899_v16, %v1902_v58  ;;  %v1924_v14 = vsel %vm1918_vm5, %v1911_v10, 920167782 }
 0x33f   : > { %v1927_v7 = vsel %vm1915_vm3, %v1905_v4, %v1908_v63  ;;  %v1921_v46 = vsel %vm1917_vm1, %v1905_v4, %v1920_v29  ;;  %v1925_v51 = vsel %vm1917_vm1, %v1908_v63, %v1924_v14  ;;  %v1928_v3 = vsel %vm1918_vm5, %v1914_v24, 1326507024 }
 0x340   : > { %vm3558_vm9 = vcmp.gt.s32.totalorder %v3557_v41, 0  ;;  %vm4141_vm6 = vcmp.lt.s32.totalorder %v4140_v33, 0  ;;  %v3324_v17 = vsel %vm6797_vm15, 0, %v3322_v20  ;;  %v1926_v47 = vsel %vm1916_vm2, %v1923_v59, %v1925_v51 }
 0x341   : > { %v1929_v31 = vsel %vm1917_vm1, %v1911_v10, %v1928_v3  ;;  %vm1667_vm4 = vcmp.eq.s32.totalorder %v6775_v60, 0  ;;  %v3306_v28 = vsel %vm4141_vm6, 0, %v4140_v33  ;;  %vm1666_vm8 = vcmp.lt.s32.totalorder %v6775_v60, 2 }
 0x342   : > { %v1930_v50 = vsel %vm1916_vm2, %v1927_v7, %v1929_v31  ;;  %v6822_v44 = vmul.u32.u64.low %v6778_v55, %v1926_v47  ;;  %v6823_v32 = vmul.u32.u64.high %v6778_v55, %v1926_v47, %v6822_v44  ;;  %v3307_v40 = vsub.s32 32, %v3306_v28 }
 0x343   : > { %v3311_v18 = vsub.s32 4294967266, %v3306_v28  ;;  %v1922_v48 = vsel %vm1916_vm2, %v1919_v52, %v1921_v46  ;;  %v3559_v54 = vsel %vm3558_vm9, %v3557_v41, 0  ;;  %vm1663_vm12 = vweird.f32 %v6044_v19 }
 0x344   : > { %vm1670_vm7 = vcmp.eq.s32.totalorder %v6775_v60, 2  ;;  %v6833_v37 = vmul.u32.u64.low %v6778_v55, %v1930_v50  ;;  %v6834_v8 = vmul.u32.u64.high %v6778_v55, %v1930_v50, %v6833_v37  ;;  %v3561_v45 = vand.u32 31, %v3559_v54 }
 0x345   : > { %v3308_v43 = vshll.u32 %v6791_v56, %v3306_v28  ;;  %v3309_v58 = vshrl.u32 %v6786_v21, %v3307_v40  ;;  %v3312_v49 = vadd.s32 127, %v3311_v18  ;;  %v3555_v4 = vor.u32 8388608, %v6782_v61 }
 0x346   : > { %v3328_v63 = vadd.s32 3, %v3324_v17  ;;  %v1938_v23 = vmul.u32 %v6778_v55, %v1922_v48  ;;  %v1941_v41 = vadd.s32 1, %v6823_v32  ;;  %v3562_v57 = vsub.s32 32, %v3561_v45 }
 0x347   : > { %v4533_v25 = vpop.eup %4532  ;;  %v3310_v6 = vor.u32 %v3309_v58, %v3308_v43  ;;  %v3313_v1 = vshll.u32 %v3312_v49, 23  ;;  %v6841_v16 = vshrl.u32 %v3559_v54, 5  ;;  %v3564_v10 = vshll.u32 %v4652_v5, %v3561_v45 }
 0x348   : > { %v4535_v0 = vpop.eup %4534  ;;  %v1671_v56 = vxor.u32 2147483648, %v4533_v25  ;;  %vm1940_vm14 = vc.u32 %v6834_v8, %v6822_v44  ;;  %v3567_v61 = vshll.u32 %v4653_v9, %v3561_v45  ;;  %v3573_v21 = vshll.u32 %v4655_v13, %v3561_v45 }
 0x349   : > { %v1668_v55 = vxor.u32 2147483648, %v4535_v0  ;;  %v3314_v20 = vor.u32 4788187, %v3313_v1  ;;  %v3317_v24 = vcvt.s32.f32 %v3310_v6  ;;  %v1942_v27 = vsel %vm1940_vm14, %v1941_v41, %v6823_v32 }
 0x34a   : > { %v1672_v29 = vsel %vm1670_vm7, %v1671_v56, %v4535_v0  ;;  %v1943_v59 = vadd.s32 %v1942_v27, %v1938_v23  ;;  %v3565_v33 = vshrl.u32 %v4653_v9, %v3562_v57  ;;  %v3568_v52 = vshrl.u32 %v4654_v11, %v3562_v57 }
 0x34b   : > { %v1669_v14 = vsel %vm1667_vm4, %v4533_v25, %v1668_v55  ;;  %v3315_v7 = vand.u32 2147483647, %v3314_v20  ;;  %vm1885_vm11 = vcmp.lt.s32.totalorder %v6227_v53, 0  ;;  %v3571_v46 = vshrl.u32 %v4655_v13, %v3562_v57 }
 0x34c   : > { %v3574_v51 = vshrl.u32 %v4656_v15, %v3562_v57  ;;  %v1673_v3 = vsel %vm1666_vm8, %v1669_v14, %v1672_v29  ;;  %v1944_v17 = vadd.s32 536870912, %v1943_v59  ;;  %v3566_v47 = vor.u32 %v3565_v33, %v3564_v10 }
 0x34d   : > { %v3570_v31 = vshll.u32 %v4654_v11, %v3561_v45  ;;  %v1674_v28 = vsel %vm1663_vm12, nan, %v1673_v3  ;;  %v3318_v50 = vmul.f32 %v3317_v24, %v3315_v7  ;;  %v3569_v32 = vor.u32 %v3568_v52, %v3567_v61 }
 0x34e   : > { %v3575_v40 = vor.u32 %v3574_v51, %v3573_v21  ;;  %3869 = vst [vmem:[%s5126_s4 + $0x50] sm:$0xff] %v1674_v28  ;;  %v1945_v18 = vshrl.u32 %v1944_v17, 30  ;;  %v3577_v48 = vshrl.u32 %v4657_v22, %v3562_v57  ;;  %v6865_v54 = vshll.u32 %v3555_v4, 8 }
 0x34f   : > { %v1779_v37 = vand.u32 2147483647, %v6392_v26  ;;  %v3319_v60 = vxor.u32 2147483648, %v3318_v50  ;;  %v6868_v43 = vand.u32 3, %v3328_v63  ;;  %v3572_v58 = vor.u32 %v3571_v46, %v3570_v31 }
 0x350   : > { %v3576_v49 = vshll.u32 %v4656_v15, %v3561_v45  ;;  %v1946_v23 = vshll.u32 %v1945_v18, 30  ;;  %v1969_v19 = vsub.s32 4, %v1945_v18  ;;  %vm3579_vm10 = vcmp.lt.s32.totalorder %v6841_v16, 1 }
 0x351   : > { %vm3582_vm13 = vcmp.lt.s32.totalorder %v6841_v16, 4  ;;  %v3320_v41 = vsel %vm3237_vm0, %v3319_v60, %v3318_v50  ;;  %v3587_v4 = vsel %vm3579_vm10, %v3566_v47, %v3569_v32  ;;  %v3563_v1 = vshrl.u32 %v4652_v5, %v3562_v57 }
 0x352   : > { %v3578_v25 = vor.u32 %v3577_v48, %v3576_v49  ;;  %v3588_v63 = vsel %vm3582_vm13, %v3575_v40, 920167782  ;;  %v3323_v45 = vsel %vm6797_vm15, %v6126_v62, %v3320_v41  ;;  %v6882_v6 = vsub.s32 %v1943_v59, %v1946_v23 }
 0x353   : > { %vm3581_vm3 = vcmp.lt.s32.totalorder %v6841_v16, 3  ;;  %4536 = vcosq.f32 %v3323_v45  ;;  %vm3580_vm0 = vcmp.lt.s32.totalorder %v6841_v16, 2  ;;  %v3584_v10 = vsel %vm3582_vm13, %v3572_v58, 2102212464 }
 0x354   : > { %v3589_v0 = vsel %vm3581_vm3, %v3572_v58, %v3588_v63  ;;  %4538 = vsinq.f32 %v3323_v45  ;;  %v1949_v56 = vsub.s32 0, %v6882_v6  ;;  %v1970_v42 = vsel %vm1885_vm11, %v1969_v19, %v1945_v18 }
 0x355   : > { %v3590_v61 = vsel %vm3580_vm0, %v3587_v4, %v3589_v0  ;;  %v3591_v57 = vsel %vm3579_vm10, %v3569_v32, %v3572_v58  ;;  %v3592_v21 = vsel %vm3582_vm13, %v3578_v25, 1326507024  ;;  %v3583_v27 = vsel %vm3579_vm10, %v3563_v1, %v3566_v47 }
 0x356   : > { %v6899_v55 = vmul.u32.u64.low %v6865_v54, %v3590_v61  ;;  %v6900_v20 = vmul.u32.u64.high %v6865_v54, %v3590_v61, %v6899_v55  ;;  %v4087_v24 = vmin.u32 %v1949_v56, %v6882_v6  ;;  %v3585_v29 = vsel %vm3581_vm3, %v3569_v32, %v3584_v10 }
 0x357   : > { %v3593_v59 = vsel %vm3581_vm3, %v3575_v40, %v3592_v21  ;;  %vm6908_vm15 = vcmp.le.f32.partialorder %v1883_v12, 0.7853982  ;;  %v1782_v14 = vand.u32 2139095040, %v6392_v26  ;;  %v3586_v51 = vsel %vm3580_vm0, %v3583_v27, %v3585_v29 }
 0x358   : > { %v3594_v52 = vsel %vm3580_vm0, %v3591_v57, %v3593_v59  ;;  %v1951_v7 = vclz %v4087_v24  ;;  %v1972_v46 = vsel %vm6908_vm15, 0, %v1970_v42  ;;  %vm3327_vm2 = vweird.f32 %v6126_v62 }
 0x359   : > { %v6920_v3 = vmul.u32.u64.low %v6865_v54, %v3594_v52  ;;  %v6921_v17 = vmul.u32.u64.high %v6865_v54, %v3594_v52, %v6920_v3  ;;  %v1783_v12 = vshrl.u32 %v1782_v14, 23  ;;  %vm3330_vm5 = vcmp.lt.s32.totalorder %v6868_v43, 2 }
 0x35a   : > { %v4088_v47 = vadd.s32 4294967294, %v1951_v7  ;;  %v1786_v31 = vand.u32 8388607, %v1779_v37  ;;  %vm3331_vm1 = vcmp.eq.s32.totalorder %v6868_v43, 0  ;;  %vm3334_vm9 = vcmp.eq.s32.totalorder %v6868_v43, 2 }
 0x35b   : > { %v3605_v16 = vadd.s32 1, %v6900_v20  ;;  %v4082_v28 = vadd.s32 4294967169, %v1783_v12  ;;  %v1939_v50 = vadd.s32 %v6822_v44, %v6834_v8  ;;  %v1976_v32 = vadd.s32 3, %v1972_v46 }
 0x35c   : > { %vm4089_vm6 = vcmp.lt.s32.totalorder %v4088_v47, 0  ;;  %v3602_v40 = vmul.u32 %v6865_v54, %v3586_v51  ;;  %vm3604_vm4 = vc.u32 %v6921_v17, %v6899_v55  ;;  %v3446_v58 = vand.u32 2139095040, %v6476_v35 }
 0x35d   : > { %v4537_v18 = vpop.eup %4536  ;;  %v1954_v48 = vsel %vm4089_vm6, 0, %v4088_v47  ;;  %v1789_v60 = vadd.s32 1, %v4082_v28  ;;  %v1787_v25 = vor.u32 8388608, %v1786_v31  ;;  %v3606_v8 = vsel %vm3604_vm4, %v3605_v16, %v6900_v20 }
 0x35e   : > { %v4539_v49 = vpop.eup %4538  ;;  %v3335_v23 = vxor.u32 2147483648, %v4537_v18  ;;  %v1955_v19 = vsub.s32 32, %v1954_v48  ;;  %v1959_v41 = vsub.s32 4294967266, %v1954_v48  ;;  %v1956_v44 = vshll.u32 %v6882_v6, %v1954_v48 }
 0x35f   : > { %v3332_v4 = vxor.u32 2147483648, %v4539_v49  ;;  %vm1790_vm8 = vcmp.gt.s32.totalorder %v1789_v60, 0  ;;  %v3607_v1 = vadd.s32 %v3606_v8, %v3602_v40  ;;  %v3443_v56 = vand.u32 2147483647, %v6476_v35 }
 0x360   : > { %v3336_v54 = vsel %vm3334_vm9, %v3335_v23, %v4539_v49  ;;  %v1957_v63 = vshrl.u32 %v1939_v50, %v1955_v19  ;;  %v1960_v45 = vadd.s32 127, %v1959_v41  ;;  %v1791_v0 = vsel %vm1790_vm8, %v1789_v60, 0 }
 0x361   : > { %v3333_v10 = vsel %vm3331_vm1, %v4537_v18, %v3332_v4  ;;  %v3447_v42 = vshrl.u32 %v3446_v58, 23  ;;  %v3608_v21 = vadd.s32 536870912, %v3607_v1  ;;  %v1793_v24 = vand.u32 31, %v1791_v0 }
 0x362   : > { %v3337_v6 = vsel %vm3330_vm5, %v3333_v10, %v3336_v54  ;;  %v1958_v61 = vor.u32 %v1957_v63, %v1956_v44  ;;  %v1961_v57 = vshll.u32 %v1960_v45, 23  ;;  %v6948_v29 = vand.u32 3, %v1976_v32 }
 0x363   : > { %v3338_v20 = vsel %vm3327_vm2, nan, %v3337_v6  ;;  %vm3549_vm12 = vcmp.lt.s32.totalorder %v6301_v38, 0  ;;  %v3609_v59 = vshrl.u32 %v3608_v21, 30  ;;  %v1794_v52 = vsub.s32 32, %v1793_v24 }
 0x364   : > { %3885 = vst [vmem:[%s5126_s4 + $0xd0] sm:$0xff] %v3338_v20  ;;  %v1962_v27 = vor.u32 4788187, %v1961_v57  ;;  %v6951_v14 = vshll.u32 %v1787_v25, 8  ;;  %v4146_v7 = vadd.s32 4294967169, %v3447_v42  ;;  %v1965_v51 = vcvt.s32.f32 %v1958_v61 }
 0x365   : > { %v6955_v43 = vand.u32 8388607, %v3443_v56  ;;  %v6959_v62 = vadd.s32 %v6899_v55, %v6921_v17  ;;  %v3610_v3 = vshll.u32 %v3609_v59, 30  ;;  %v1792_v12 = vshrl.u32 %v1791_v0, 5 }
 0x366   : > { %v1963_v46 = vand.u32 2147483647, %v1962_v27  ;;  %v1797_v47 = vshrl.u32 %v4653_v9, %v1794_v52  ;;  %v1800_v31 = vshrl.u32 %v4654_v11, %v1794_v52  ;;  %v1803_v16 = vshrl.u32 %v4655_v13, %v1794_v52 }
 0x367   : > { %v6964_v50 = vsub.s32 %v3607_v1, %v3610_v3  ;;  %v1796_v32 = vshll.u32 %v4652_v5, %v1793_v24  ;;  %v1806_v40 = vshrl.u32 %v4656_v15, %v1794_v52  ;;  %vm6970_vm7 = vcmp.le.f32.partialorder %v3547_v39, 0.7853982 }
 0x368   : > { %v1966_v28 = vmul.f32 %v1965_v51, %v1963_v46  ;;  %v3633_v17 = vsub.s32 4, %v3609_v59  ;;  %v1799_v18 = vshll.u32 %v4653_v9, %v1793_v24  ;;  %v1802_v48 = vshll.u32 %v4654_v11, %v1793_v24 }
 0x369   : > { %v3453_v60 = vadd.s32 1, %v4146_v7  ;;  %v3613_v49 = vsub.s32 0, %v6964_v50  ;;  %v1798_v23 = vor.u32 %v1797_v47, %v1796_v32  ;;  %v1805_v19 = vshll.u32 %v4655_v13, %v1793_v24 }
 0x36a   : > { %v1967_v58 = vxor.u32 2147483648, %v1966_v28  ;;  %v1801_v41 = vor.u32 %v1800_v31, %v1799_v18  ;;  %v1804_v25 = vor.u32 %v1803_v16, %v1802_v48  ;;  %v1808_v4 = vshll.u32 %v4656_v15, %v1793_v24 }
 0x36b   : > { %v1809_v39 = vshrl.u32 %v4657_v22, %v1794_v52  ;;  %v4151_v8 = vmin.u32 %v3613_v49, %v6964_v50  ;;  %v1795_v54 = vshrl.u32 %v4652_v5, %v1794_v52  ;;  %v1807_v63 = vor.u32 %v1806_v40, %v1805_v19 }
 0x36c   : > { %v1968_v44 = vsel %vm1885_vm11, %v1967_v58, %v1966_v28  ;;  %v3634_v1 = vsel %vm3549_vm12, %v3633_v17, %v3609_v59  ;;  %vm1811_vm14 = vcmp.lt.s32.totalorder %v1792_v12, 1  ;;  %vm1812_vm10 = vcmp.lt.s32.totalorder %v1792_v12, 2 }
 0x36d   : > { %v1971_v45 = vsel %vm6908_vm15, %v6227_v53, %v1968_v44  ;;  %v1810_v10 = vor.u32 %v1809_v39, %v1808_v4  ;;  %v3615_v0 = vclz %v4151_v8  ;;  %vm1814_vm13 = vcmp.lt.s32.totalorder %v1792_v12, 4 }
 0x36e   : > { %4540 = vcosq.f32 %v1971_v45  ;;  %vm1813_vm11 = vcmp.lt.s32.totalorder %v1792_v12, 3  ;;  %v1816_v42 = vsel %vm1814_vm13, %v1804_v25, 2102212464  ;;  %v1819_v6 = vsel %vm1811_vm14, %v1798_v23, %v1801_v41 }
 0x36f   : > { %4542 = vsinq.f32 %v1971_v45  ;;  %v4152_v61 = vadd.s32 4294967294, %v3615_v0  ;;  %v1815_v57 = vsel %vm1811_vm14, %v1795_v54, %v1798_v23  ;;  %v1820_v21 = vsel %vm1814_vm13, %v1807_v63, 920167782 }
 0x370   : > { %v1823_v20 = vsel %vm1811_vm14, %v1801_v41, %v1804_v25  ;;  %v1817_v24 = vsel %vm1813_vm11, %v1801_v41, %v1816_v42  ;;  %v1821_v33 = vsel %vm1813_vm11, %v1804_v25, %v1820_v21  ;;  %v1824_v27 = vsel %vm1814_vm13, %v1810_v10, 1326507024 }
 0x371   : > { %vm3454_vm3 = vcmp.gt.s32.totalorder %v3453_v60, 0  ;;  %vm4153_vm0 = vcmp.lt.s32.totalorder %v4152_v61, 0  ;;  %v3636_v59 = vsel %vm6970_vm7, 0, %v3634_v1  ;;  %v1822_v52 = vsel %vm1812_vm10, %v1819_v6, %v1821_v33 }
 0x372   : > { %v1825_v7 = vsel %vm1813_vm11, %v1807_v63, %v1824_v27  ;;  %vm1979_vm15 = vcmp.eq.s32.totalorder %v6948_v29, 0  ;;  %v3618_v46 = vsel %vm4153_vm0, 0, %v4152_v61  ;;  %vm1978_vm2 = vcmp.lt.s32.totalorder %v6948_v29, 2 }
 0x373   : > { %v1826_v51 = vsel %vm1812_vm10, %v1823_v20, %v1825_v7  ;;  %v6995_v3 = vmul.u32.u64.low %v6951_v14, %v1822_v52  ;;  %v6996_v47 = vmul.u32.u64.high %v6951_v14, %v1822_v52, %v6995_v3  ;;  %v3619_v31 = vsub.s32 32, %v3618_v46 }
 0x374   : > { %v3623_v16 = vsub.s32 4294967266, %v3618_v46  ;;  %v1818_v28 = vsel %vm1812_vm10, %v1815_v57, %v1817_v24  ;;  %v3455_v32 = vsel %vm3454_vm3, %v3453_v60, 0  ;;  %vm1975_vm5 = vweird.f32 %v6227_v53 }
 0x375   : > { %vm1982_vm1 = vcmp.eq.s32.totalorder %v6948_v29, 2  ;;  %v7004_v40 = vmul.u32.u64.low %v6951_v14, %v1826_v51  ;;  %v7005_v17 = vmul.u32.u64.high %v6951_v14, %v1826_v51, %v7004_v40  ;;  %v3457_v18 = vand.u32 31, %v3455_v32 }
 0x376   : > { %v3620_v48 = vshll.u32 %v6964_v50, %v3618_v46  ;;  %v3621_v58 = vshrl.u32 %v6959_v62, %v3619_v31  ;;  %v3624_v49 = vadd.s32 127, %v3623_v16  ;;  %v3451_v23 = vor.u32 8388608, %v6955_v43 }
 0x377   : > { %v3640_v19 = vadd.s32 3, %v3636_v59  ;;  %v1834_v12 = vmul.u32 %v6951_v14, %v1818_v28  ;;  %v1837_v60 = vadd.s32 1, %v6996_v47  ;;  %v3458_v41 = vsub.s32 32, %v3457_v18 }
 0x378   : > { %v4541_v25 = vpop.eup %4540  ;;  %v3622_v4 = vor.u32 %v3621_v58, %v3620_v48  ;;  %v3625_v39 = vshll.u32 %v3624_v49, 23  ;;  %v7012_v44 = vshrl.u32 %v3455_v32, 5  ;;  %v3460_v8 = vshll.u32 %v4652_v5, %v3457_v18 }
 0x379   : > { %v4543_v54 = vpop.eup %4542  ;;  %v1983_v50 = vxor.u32 2147483648, %v4541_v25  ;;  %vm1836_vm9 = vc.u32 %v7005_v17, %v6995_v3  ;;  %v3463_v43 = vshll.u32 %v4653_v9, %v3457_v18  ;;  %v3469_v62 = vshll.u32 %v4655_v13, %v3457_v18 }
 0x37a   : > { %v1980_v14 = vxor.u32 2147483648, %v4543_v54  ;;  %v3626_v63 = vor.u32 4788187, %v3625_v39  ;;  %v3629_v45 = vcvt.s32.f32 %v3622_v4  ;;  %v1838_v1 = vsel %vm1836_vm9, %v1837_v60, %v6996_v47 }
 0x37b   : > { %v1984_v10 = vsel %vm1982_vm1, %v1983_v50, %v4543_v54  ;;  %v1839_v0 = vadd.s32 %v1838_v1, %v1834_v12  ;;  %v3461_v42 = vshrl.u32 %v4653_v9, %v3458_v41  ;;  %v3464_v6 = vshrl.u32 %v4654_v11, %v3458_v41 }
 0x37c   : > { %v1981_v61 = vsel %vm1979_vm15, %v4541_v25, %v1980_v14  ;;  %v3627_v57 = vand.u32 2147483647, %v3626_v63  ;;  %vm1781_vm6 = vcmp.lt.s32.totalorder %v6392_v26, 0  ;;  %v3467_v21 = vshrl.u32 %v4655_v13, %v3458_v41 }
 0x37d   : > { %v3470_v20 = vshrl.u32 %v4656_v15, %v3458_v41  ;;  %v1985_v24 = vsel %vm1978_vm2, %v1981_v61, %v1984_v10  ;;  %v1840_v33 = vadd.s32 536870912, %v1839_v0  ;;  %v3462_v27 = vor.u32 %v3461_v42, %v3460_v8 }
 0x37e   : > { %v3466_v59 = vshll.u32 %v4654_v11, %v3457_v18  ;;  %v1986_v52 = vsel %vm1975_vm5, nan, %v1985_v24  ;;  %v3630_v7 = vmul.f32 %v3629_v45, %v3627_v57  ;;  %v3465_v46 = vor.u32 %v3464_v6, %v3463_v43 }
 0x37f   : > { %v3471_v51 = vor.u32 %v3470_v20, %v3469_v62  ;;  %3872 = vst [vmem:[%s5126_s4 + $0x68] sm:$0xff] %v1986_v52  ;;  %v1841_v47 = vshrl.u32 %v1840_v33, 30  ;;  %v3473_v31 = vshrl.u32 %v4657_v22, %v3458_v41  ;;  %v7036_v16 = vshll.u32 %v3451_v23, 8 }
 0x380   : > { %v2091_v28 = vand.u32 2147483647, %v6577_v36  ;;  %v3631_v29 = vxor.u32 2147483648, %v3630_v7  ;;  %v7039_v32 = vand.u32 3, %v3640_v19  ;;  %v3468_v40 = vor.u32 %v3467_v21, %v3466_v59 }
 0x381   : > { %v3472_v48 = vshll.u32 %v4656_v15, %v3457_v18  ;;  %v1842_v58 = vshll.u32 %v1841_v47, 30  ;;  %v1865_v53 = vsub.s32 4, %v1841_v47  ;;  %vm3475_vm4 = vcmp.lt.s32.totalorder %v7012_v44, 1 }
 0x382   : > { %vm3478_vm8 = vcmp.lt.s32.totalorder %v7012_v44, 4  ;;  %v3632_v49 = vsel %vm3549_vm12, %v3631_v29, %v3630_v7  ;;  %v3483_v23 = vsel %vm3475_vm4, %v3462_v27, %v3465_v46  ;;  %v3459_v25 = vshrl.u32 %v4652_v5, %v3458_v41 }
 0x383   : > { %v3474_v12 = vor.u32 %v3473_v31, %v3472_v48  ;;  %v3484_v19 = vsel %vm3478_vm8, %v3471_v51, 920167782  ;;  %v3635_v18 = vsel %vm6970_vm7, %v6301_v38, %v3632_v49  ;;  %v7053_v60 = vsub.s32 %v1839_v0, %v1842_v58 }
 0x384   : > { %vm3477_vm14 = vcmp.lt.s32.totalorder %v7012_v44, 3  ;;  %4544 = vcosq.f32 %v3635_v18  ;;  %vm3476_vm12 = vcmp.lt.s32.totalorder %v7012_v44, 2  ;;  %v3480_v4 = vsel %vm3478_vm8, %v3468_v40, 2102212464 }
 0x385   : > { %v3485_v39 = vsel %vm3477_vm14, %v3468_v40, %v3484_v19  ;;  %4546 = vsinq.f32 %v3635_v18  ;;  %v1845_v8 = vsub.s32 0, %v7053_v60  ;;  %v1866_v55 = vsel %vm1781_vm6, %v1865_v53, %v1841_v47 }
 0x386   : > { %v3486_v54 = vsel %vm3476_vm12, %v3483_v23, %v3485_v39  ;;  %v3487_v41 = vsel %vm3475_vm4, %v3465_v46, %v3468_v40  ;;  %v3488_v50 = vsel %vm3478_vm8, %v3474_v12, 1326507024  ;;  %v3479_v63 = vsel %vm3475_vm4, %v3459_v25, %v3462_v27 }
 0x387   : > { %v7070_v43 = vmul.u32.u64.low %v7036_v16, %v3486_v54  ;;  %v7071_v62 = vmul.u32.u64.high %v7036_v16, %v3486_v54, %v7070_v43  ;;  %v4083_v14 = vmin.u32 %v1845_v8, %v7053_v60  ;;  %v3481_v45 = vsel %vm3477_vm14, %v3465_v46, %v3480_v4 }
 0x388   : > { %v3489_v1 = vsel %vm3477_vm14, %v3471_v51, %v3488_v50  ;;  %vm7079_vm7 = vcmp.le.f32.partialorder %v1779_v37, 0.7853982  ;;  %v2094_v42 = vand.u32 2139095040, %v6577_v36  ;;  %v3482_v57 = vsel %vm3476_vm12, %v3479_v63, %v3481_v45 }
 0x389   : > { %v3490_v0 = vsel %vm3476_vm12, %v3487_v41, %v3489_v1  ;;  %v1847_v6 = vclz %v4083_v14  ;;  %v1868_v61 = vsel %vm7079_vm7, 0, %v1866_v55  ;;  %vm3639_vm10 = vweird.f32 %v6301_v38 }
 0x38a   : > { %v7091_v21 = vmul.u32.u64.low %v7036_v16, %v3490_v0  ;;  %v7092_v20 = vmul.u32.u64.high %v7036_v16, %v3490_v0, %v7091_v21  ;;  %v2095_v37 = vshrl.u32 %v2094_v42, 23  ;;  %vm3642_vm13 = vcmp.lt.s32.totalorder %v7039_v32, 2 }
 0x38b   : > { %v4084_v24 = vadd.s32 4294967294, %v1847_v6  ;;  %v2098_v33 = vand.u32 8388607, %v2091_v28  ;;  %vm3643_vm11 = vcmp.eq.s32.totalorder %v7039_v32, 0  ;;  %vm3646_vm3 = vcmp.eq.s32.totalorder %v7039_v32, 2 }
 0x38c   : > { %v3501_v44 = vadd.s32 1, %v7071_v62  ;;  %v4094_v27 = vadd.s32 4294967169, %v2095_v37  ;;  %v1835_v59 = vadd.s32 %v6995_v3, %v7005_v17  ;;  %v1872_v52 = vadd.s32 3, %v1868_v61 }
 0x38d   : > { %vm4085_vm0 = vcmp.lt.s32.totalorder %v4084_v24, 0  ;;  %v3498_v7 = vmul.u32 %v7036_v16, %v3482_v57  ;;  %vm3500_vm15 = vc.u32 %v7092_v20, %v7070_v43  ;;  %v3758_v31 = vand.u32 2139095040, %v6651_v2 }
 0x38e   : > { %v4545_v46 = vpop.eup %4544  ;;  %v1850_v51 = vsel %vm4085_vm0, 0, %v4084_v24  ;;  %v2101_v47 = vadd.s32 1, %v4094_v27  ;;  %v2099_v53 = vor.u32 8388608, %v2098_v33  ;;  %v3502_v17 = vsel %vm3500_vm15, %v3501_v44, %v7071_v62 }
 0x38f   : > { %v4547_v29 = vpop.eup %4546  ;;  %v3647_v40 = vxor.u32 2147483648, %v4545_v46  ;;  %v1851_v48 = vsub.s32 32, %v1850_v51  ;;  %v1855_v58 = vsub.s32 4294967266, %v1850_v51  ;;  %v1852_v3 = vshll.u32 %v7053_v60, %v1850_v51 }
 0x390   : > { %v3644_v49 = vxor.u32 2147483648, %v4547_v29  ;;  %vm2102_vm2 = vcmp.gt.s32.totalorder %v2101_v47, 0  ;;  %v3503_v19 = vadd.s32 %v3502_v17, %v3498_v7  ;;  %v3755_v4 = vand.u32 2147483647, %v6651_v2 }
 0x391   : > { %v3648_v16 = vsel %vm3646_vm3, %v3647_v40, %v4547_v29  ;;  %v1853_v12 = vshrl.u32 %v1835_v59, %v1851_v48  ;;  %v1856_v23 = vadd.s32 127, %v1855_v58  ;;  %v2103_v25 = vsel %vm2102_vm2, %v2101_v47, 0 }
 0x392   : > { %v3645_v18 = vsel %vm3643_vm11, %v4545_v46, %v3644_v49  ;;  %v3759_v39 = vshrl.u32 %v3758_v31, 23  ;;  %v3504_v54 = vadd.s32 536870912, %v3503_v19  ;;  %v2105_v50 = vand.u32 31, %v2103_v25 }
 0x393   : > { %v3649_v60 = vsel %vm3642_vm13, %v3645_v18, %v3648_v16  ;;  %v1854_v8 = vor.u32 %v1853_v12, %v1852_v3  ;;  %v1857_v55 = vshll.u32 %v1856_v23, 23  ;;  %v7119_v14 = vand.u32 3, %v1872_v52 }
 0x394   : > { %v3650_v41 = vsel %vm3639_vm10, nan, %v3649_v60  ;;  %vm3445_vm5 = vcmp.lt.s32.totalorder %v6476_v35, 0  ;;  %v3505_v63 = vshrl.u32 %v3504_v54, 30  ;;  %v2106_v45 = vsub.s32 32, %v2105_v50 }
 0x395   : > { %3888 = vst [vmem:[%s5126_s4 + $0xe8] sm:$0xff] %v3650_v41  ;;  %v1858_v62 = vor.u32 4788187, %v1857_v55  ;;  %v7122_v1 = vshll.u32 %v2099_v53, 8  ;;  %v4158_v0 = vadd.s32 4294967169, %v3759_v39  ;;  %v1861_v6 = vcvt.s32.f32 %v1854_v8 }
 0x396   : > { %v7126_v32 = vand.u32 8388607, %v3755_v4  ;;  %v7130_v38 = vadd.s32 %v7070_v43, %v7092_v20  ;;  %v3506_v61 = vshll.u32 %v3505_v63, 30  ;;  %v2104_v57 = vshrl.u32 %v2103_v25, 5 }
 0x397   : > { %v1859_v42 = vand.u32 2147483647, %v1858_v62  ;;  %v2109_v21 = vshrl.u32 %v4653_v9, %v2106_v45  ;;  %v2112_v37 = vshrl.u32 %v4654_v11, %v2106_v45  ;;  %v2115_v24 = vshrl.u32 %v4655_v13, %v2106_v45 }
 0x398   : > { %v7135_v44 = vsub.s32 %v3503_v19, %v3506_v61  ;;  %v2108_v27 = vshll.u32 %v4652_v5, %v2105_v50  ;;  %v2118_v59 = vshrl.u32 %v4656_v15, %v2106_v45  ;;  %vm7141_vm1 = vcmp.le.f32.partialorder %v3443_v56, 0.7853982 }
 0x399   : > { %v1862_v33 = vmul.f32 %v1861_v6, %v1859_v42  ;;  %v3529_v20 = vsub.s32 4, %v3505_v63  ;;  %v2111_v52 = vshll.u32 %v4653_v9, %v2105_v50  ;;  %v2114_v7 = vshll.u32 %v4654_v11, %v2105_v50 }
 0x39a   : > { %v3765_v46 = vadd.s32 1, %v4158_v0  ;;  %v3509_v47 = vsub.s32 0, %v7135_v44  ;;  %v2110_v31 = vor.u32 %v2109_v21, %v2108_v27  ;;  %v2117_v29 = vshll.u32 %v4655_v13, %v2105_v50 }
 0x39b   : > { %v1863_v51 = vxor.u32 2147483648, %v1862_v33  ;;  %v2113_v40 = vor.u32 %v2112_v37, %v2111_v52  ;;  %v2116_v48 = vor.u32 %v2115_v24, %v2114_v7  ;;  %v2120_v58 = vshll.u32 %v4656_v15, %v2105_v50 }
 0x39c   : > { %v2121_v56 = vshrl.u32 %v4657_v22, %v2106_v45  ;;  %v4147_v49 = vmin.u32 %v3509_v47, %v7135_v44  ;;  %v2107_v3 = vshrl.u32 %v4652_v5, %v2106_v45  ;;  %v2119_v17 = vor.u32 %v2118_v59, %v2117_v29 }
 0x39d   : > { %v1864_v53 = vsel %vm1781_vm6, %v1863_v51, %v1862_v33  ;;  %v3530_v12 = vsel %vm3445_vm5, %v3529_v20, %v3505_v63  ;;  %vm2123_vm9 = vcmp.lt.s32.totalorder %v2104_v57, 1  ;;  %vm2124_vm4 = vcmp.lt.s32.totalorder %v2104_v57, 2 }
 0x39e   : > { %v1867_v16 = vsel %vm7079_vm7, %v6392_v26, %v1864_v53  ;;  %v2122_v23 = vor.u32 %v2121_v56, %v2120_v58  ;;  %v3511_v19 = vclz %v4147_v49  ;;  %vm2126_vm8 = vcmp.lt.s32.totalorder %v2104_v57, 4 }
 0x39f   : > { %4548 = vcosq.f32 %v1867_v16  ;;  %vm2125_vm6 = vcmp.lt.s32.totalorder %v2104_v57, 3  ;;  %v2128_v18 = vsel %vm2126_vm8, %v2116_v48, 2102212464  ;;  %v2131_v25 = vsel %vm2123_vm9, %v2110_v31, %v2113_v40 }
 0x3a0   : > { %4550 = vsinq.f32 %v1867_v16  ;;  %v4148_v39 = vadd.s32 4294967294, %v3511_v19  ;;  %v2127_v60 = vsel %vm2123_vm9, %v2107_v3, %v2110_v31  ;;  %v2132_v8 = vsel %vm2126_vm8, %v2119_v17, 920167782 }
 0x3a1   : > { %v2135_v55 = vsel %vm2123_vm9, %v2113_v40, %v2116_v48  ;;  %v2129_v54 = vsel %vm2125_vm6, %v2113_v40, %v2128_v18  ;;  %v2133_v10 = vsel %vm2125_vm6, %v2116_v48, %v2132_v8  ;;  %v2136_v41 = vsel %vm2126_vm8, %v2122_v23, 1326507024 }
 0x3a2   : > { %vm3766_vm14 = vcmp.gt.s32.totalorder %v3765_v46, 0  ;;  %vm4149_vm12 = vcmp.lt.s32.totalorder %v4148_v39, 0  ;;  %v3532_v50 = vsel %vm7141_vm1, 0, %v3530_v12  ;;  %v2134_v62 = vsel %vm2124_vm4, %v2131_v25, %v2133_v10 }
 0x3a3   : > { %v2137_v63 = vsel %vm2125_vm6, %v2119_v17, %v2136_v41  ;;  %vm1875_vm7 = vcmp.eq.s32.totalorder %v7119_v14, 0  ;;  %v3514_v45 = vsel %vm4149_vm12, 0, %v4148_v39  ;;  %vm1874_vm10 = vcmp.lt.s32.totalorder %v7119_v14, 2 }
 0x3a4   : > { %v2138_v0 = vsel %vm2124_vm4, %v2135_v55, %v2137_v63  ;;  %v7166_v42 = vmul.u32.u64.low %v7122_v1, %v2134_v62  ;;  %v7167_v6 = vmul.u32.u64.high %v7122_v1, %v2134_v62, %v7166_v42  ;;  %v3515_v61 = vsub.s32 32, %v3514_v45 }
 0x3a5   : > { %v3519_v21 = vsub.s32 4294967266, %v3514_v45  ;;  %v2130_v37 = vsel %vm2124_vm4, %v2127_v60, %v2129_v54  ;;  %v3767_v24 = vsel %vm3766_vm14, %v3765_v46, 0  ;;  %vm1871_vm13 = vweird.f32 %v6392_v26 }
 0x3a6   : > { %vm1878_vm11 = vcmp.eq.s32.totalorder %v7119_v14, 2  ;;  %v7175_v33 = vmul.u32.u64.low %v7122_v1, %v2138_v0  ;;  %v7176_v27 = vmul.u32.u64.high %v7122_v1, %v2138_v0, %v7175_v33  ;;  %v3769_v59 = vand.u32 31, %v3767_v24 }
 0x3a7   : > { %v3516_v20 = vshll.u32 %v7135_v44, %v3514_v45  ;;  %v3517_v52 = vshrl.u32 %v7130_v38, %v3515_v61  ;;  %v3520_v7 = vadd.s32 127, %v3519_v21  ;;  %v3763_v51 = vor.u32 8388608, %v7126_v32 }
 0x3a8   : > { %v3536_v47 = vadd.s32 3, %v3532_v50  ;;  %v2146_v57 = vmul.u32 %v7122_v1, %v2130_v37  ;;  %v2149_v46 = vadd.s32 1, %v7167_v6  ;;  %v3770_v31 = vsub.s32 32, %v3769_v59 }
 0x3a9   : > { %v4549_v29 = vpop.eup %4548  ;;  %v3518_v40 = vor.u32 %v3517_v52, %v3516_v20  ;;  %v3521_v48 = vshll.u32 %v3520_v7, 23  ;;  %v7183_v58 = vshrl.u32 %v3767_v24, 5  ;;  %v3772_v56 = vshll.u32 %v4652_v5, %v3769_v59 }
 0x3aa   : > { %v4551_v53 = vpop.eup %4550  ;;  %v1879_v44 = vxor.u32 2147483648, %v4549_v29  ;;  %vm2148_vm3 = vc.u32 %v7176_v27, %v7166_v42  ;;  %v3775_v32 = vshll.u32 %v4653_v9, %v3769_v59  ;;  %v3781_v38 = vshll.u32 %v4655_v13, %v3769_v59 }
 0x3ab   : > { %v1876_v1 = vxor.u32 2147483648, %v4551_v53  ;;  %v3522_v49 = vor.u32 4788187, %v3521_v48  ;;  %v3525_v3 = vcvt.s32.f32 %v3518_v40  ;;  %v2150_v17 = vsel %vm2148_vm3, %v2149_v46, %v7167_v6 }
 0x3ac   : > { %v1880_v16 = vsel %vm1878_vm11, %v1879_v44, %v4551_v53  ;;  %v2151_v12 = vadd.s32 %v2150_v17, %v2146_v57  ;;  %v3773_v23 = vshrl.u32 %v4653_v9, %v3770_v31  ;;  %v3776_v19 = vshrl.u32 %v4654_v11, %v3770_v31 }
 0x3ad   : > { %v1877_v18 = vsel %vm1875_vm7, %v4549_v29, %v1876_v1  ;;  %v3523_v25 = vand.u32 2147483647, %v3522_v49  ;;  %v3779_v39 = vshrl.u32 %v4655_v13, %v3770_v31  ;;  %v3782_v60 = vshrl.u32 %v4656_v15, %v3770_v31 }
 0x3ae   : > { %v1881_v8 = vsel %vm1874_vm10, %v1877_v18, %v1880_v16  ;;  %v2152_v55 = vadd.s32 536870912, %v2151_v12  ;;  %v3774_v54 = vor.u32 %v3773_v23, %v3772_v56  ;;  %v3778_v10 = vshll.u32 %v4654_v11, %v3769_v59 }
 0x3af   : > { %v1882_v41 = vsel %vm1871_vm13, nan, %v1881_v8  ;;  %v3526_v50 = vmul.f32 %v3525_v3, %v3523_v25  ;;  %v3777_v62 = vor.u32 %v3776_v19, %v3775_v32  ;;  %v3783_v63 = vor.u32 %v3782_v60, %v3781_v38 }
 0x3b0   : > { %3871 = vst [vmem:[%s5126_s4 + $0x60] sm:$0xff] %v1882_v41  ;;  %v2153_v45 = vshrl.u32 %v2152_v55, 30  ;;  %v3785_v0 = vshrl.u32 %v4657_v22, %v3770_v31  ;;  %v3780_v61 = vor.u32 %v3779_v39, %v3778_v10  ;;  %v3784_v21 = vshll.u32 %v4656_v15, %v3769_v59 }
 0x3b1   : > { %v3527_v6 = vxor.u32 2147483648, %v3526_v50  ;;  %v7207_v14 = vshll.u32 %v3763_v51, 8  ;;  %v7209_v37 = vand.u32 3, %v3536_v47  ;;  %vm3787_vm0 = vcmp.lt.s32.totalorder %v7183_v58, 1 }
 0x3b2   : > { %v2154_v24 = vshll.u32 %v2153_v45, 30  ;;  %vm3790_vm15 = vcmp.lt.s32.totalorder %v7183_v58, 4  ;;  %v3786_v33 = vor.u32 %v3785_v0, %v3784_v21  ;;  %v3795_v20 = vsel %vm3787_vm0, %v3774_v54, %v3777_v62 }
 0x3b3   : > { %v3528_v26 = vsel %vm3445_vm5, %v3527_v6, %v3526_v50  ;;  %v3796_v52 = vsel %vm3790_vm15, %v3783_v63, 920167782  ;;  %v3771_v51 = vshrl.u32 %v4652_v5, %v3770_v31  ;;  %vm3789_vm2 = vcmp.lt.s32.totalorder %v7183_v58, 3 }
 0x3b4   : > { %v3531_v59 = vsel %vm7141_vm1, %v6476_v35, %v3528_v26  ;;  %v7222_v7 = vsub.s32 %v2151_v12, %v2154_v24  ;;  %vm3788_vm5 = vcmp.lt.s32.totalorder %v7183_v58, 2  ;;  %v3792_v47 = vsel %vm3790_vm15, %v3780_v61, 2102212464 }
 0x3b5   : > { %4552 = vcosq.f32 %v3531_v59  ;;  %v3797_v57 = vsel %vm3789_vm2, %v3780_v61, %v3796_v52  ;;  %v2177_v29 = vsub.s32 4, %v2153_v45  ;;  %v3799_v40 = vsel %vm3787_vm0, %v3777_v62, %v3780_v61 }
 0x3b6   : > { %4554 = vsinq.f32 %v3531_v59  ;;  %v2157_v46 = vsub.s32 0, %v7222_v7  ;;  %v3798_v43 = vsel %vm3788_vm5, %v3795_v20, %v3797_v57  ;;  %v3800_v31 = vsel %vm3790_vm15, %v3786_v33, 1326507024 }
 0x3b7   : > { %v7237_v48 = vmul.u32.u64.low %v7207_v14, %v3798_v43  ;;  %v7238_v56 = vmul.u32.u64.high %v7207_v14, %v3798_v43, %v7237_v48  ;;  %v3791_v44 = vsel %vm3787_vm0, %v3771_v51, %v3774_v54  ;;  %v3793_v32 = vsel %vm3789_vm2, %v3777_v62, %v3792_v47 }
 0x3b8   : > { %v4095_v53 = vmin.u32 %v2157_v46, %v7222_v7  ;;  %v3801_v38 = vsel %vm3789_vm2, %v3783_v63, %v3800_v31  ;;  %vm2093_vm1 = vcmp.lt.s32.totalorder %v6577_v36, 0  ;;  %v1990_v49 = vand.u32 2139095040, %v6742_v34 }
 0x3b9   : > { %v3802_v1 = vsel %vm3788_vm5, %v3799_v40, %v3801_v38  ;;  %v2178_v17 = vsel %vm2093_vm1, %v2177_v29, %v2153_v45  ;;  %v1987_v16 = vand.u32 2147483647, %v6742_v34  ;;  %v3794_v12 = vsel %vm3788_vm5, %v3791_v44, %v3793_v32 }
 0x3ba   : > { %v2159_v3 = vclz %v4095_v53  ;;  %v7254_v23 = vmul.u32.u64.low %v7207_v14, %v3802_v1  ;;  %v7255_v19 = vmul.u32.u64.high %v7207_v14, %v3802_v1, %v7254_v23  ;;  %v1991_v18 = vshrl.u32 %v1990_v49, 23 }
 0x3bb   : > { %vm3535_vm9 = vweird.f32 %v6476_v35  ;;  %vm3538_vm4 = vcmp.lt.s32.totalorder %v7209_v37, 2  ;;  %vm7261_vm8 = vcmp.le.f32.partialorder %v2091_v28, 0.7853982  ;;  %vm3539_vm6 = vcmp.eq.s32.totalorder %v7209_v37, 0 }
 0x3bc   : > { %v4096_v39 = vadd.s32 4294967294, %v2159_v3  ;;  %vm3542_vm14 = vcmp.eq.s32.totalorder %v7209_v37, 2  ;;  %v3813_v58 = vadd.s32 1, %v7238_v56  ;;  %v4090_v60 = vadd.s32 4294967169, %v1991_v18 }
 0x3bd   : > { %v2147_v8 = vadd.s32 %v7166_v42, %v7176_v27  ;;  %v2180_v55 = vsel %vm7261_vm8, 0, %v2178_v17  ;;  %v3810_v28 = vmul.u32 %v7207_v14, %v3794_v12  ;;  %vm3812_vm7 = vc.u32 %v7255_v19, %v7237_v48 }
 0x3be   : > { %vm4097_vm12 = vcmp.lt.s32.totalorder %v4096_v39, 0  ;;  %v1994_v41 = vand.u32 8388607, %v1987_v16  ;;  %v1997_v50 = vadd.s32 1, %v4090_v60  ;;  %v3654_v42 = vand.u32 2139095040, %v6826_v30 }
 0x3bf   : > { %v4553_v54 = vpop.eup %4552  ;;  %v2162_v10 = vsel %vm4097_vm12, 0, %v4096_v39  ;;  %v3814_v61 = vsel %vm3812_vm7, %v3813_v58, %v7238_v56  ;;  %v2184_v20 = vadd.s32 3, %v2180_v55  ;;  %v3651_v44 = vand.u32 2147483647, %v6826_v30 }
 0x3c0   : > { %v4555_v62 = vpop.eup %4554  ;;  %v3543_v63 = vxor.u32 2147483648, %v4553_v54  ;;  %v2163_v45 = vsub.s32 32, %v2162_v10  ;;  %v2167_v0 = vsub.s32 4294967266, %v2162_v10  ;;  %v2164_v6 = vshll.u32 %v7222_v7, %v2162_v10 }
 0x3c1   : > { %v3540_v27 = vxor.u32 2147483648, %v4555_v62  ;;  %vm1998_vm10 = vcmp.gt.s32.totalorder %v1997_v50, 0  ;;  %v3815_v26 = vadd.s32 %v3814_v61, %v3810_v28  ;;  %v1995_v52 = vor.u32 8388608, %v1994_v41 }
 0x3c2   : > { %v3544_v21 = vsel %vm3542_vm14, %v3543_v63, %v4555_v62  ;;  %v2165_v14 = vshrl.u32 %v2147_v8, %v2163_v45  ;;  %v2168_v24 = vadd.s32 127, %v2167_v0  ;;  %v1999_v59 = vsel %vm1998_vm10, %v1997_v50, 0 }
 0x3c3   : > { %v3541_v33 = vsel %vm3539_vm6, %v4553_v54, %v3540_v27  ;;  %v3816_v57 = vadd.s32 536870912, %v3815_v26  ;;  %v2001_v29 = vand.u32 31, %v1999_v59  ;;  %v3655_v43 = vshrl.u32 %v3654_v42, 23 }
 0x3c4   : > { %v3545_v51 = vsel %vm3538_vm4, %v3541_v33, %v3544_v21  ;;  %v2166_v7 = vor.u32 %v2165_v14, %v2164_v6  ;;  %v2169_v47 = vshll.u32 %v2168_v24, 23  ;;  %v7291_v56 = vand.u32 3, %v2184_v20 }
 0x3c5   : > { %v3546_v46 = vsel %vm3535_vm9, nan, %v3545_v51  ;;  %v7289_v31 = vshrl.u32 %v3816_v57, 30  ;;  %v2002_v53 = vsub.s32 32, %v2001_v29  ;;  %v7295_v1 = vshll.u32 %v1995_v52, 8 }
 0x3c6   : > { %3887 = vst [vmem:[%s5126_s4 + $0xe0] sm:$0xff] %v3546_v46  ;;  %v2170_v40 = vor.u32 4788187, %v2169_v47  ;;  %v2173_v37 = vcvt.s32.f32 %v2166_v7  ;;  %v4154_v17 = vadd.s32 4294967169, %v3655_v43  ;;  %v2004_v18 = vshll.u32 %v4652_v5, %v2001_v29 }
 0x3c7   : > { %v3818_v38 = vshll.u32 %v7289_v31, 30  ;;  %v2005_v35 = vshrl.u32 %v4653_v9, %v2002_v53  ;;  %v2008_v49 = vshrl.u32 %v4654_v11, %v2002_v53  ;;  %v2011_v3 = vshrl.u32 %v4655_v13, %v2002_v53 }
 0x3c8   : > { %v2171_v32 = vand.u32 2147483647, %v2170_v40  ;;  %v2014_v39 = vshrl.u32 %v4656_v15, %v2002_v53  ;;  %v3811_v58 = vadd.s32 %v7237_v48, %v7255_v19  ;;  %v2000_v60 = vshrl.u32 %v1999_v59, 5 }
 0x3c9   : > { %v7300_v23 = vsub.s32 %v3815_v26, %v3818_v38  ;;  %v2007_v8 = vshll.u32 %v4653_v9, %v2001_v29  ;;  %v2010_v55 = vshll.u32 %v4654_v11, %v2001_v29  ;;  %v2006_v10 = vor.u32 %v2005_v35, %v2004_v18 }
 0x3ca   : > { %v2174_v12 = vmul.f32 %v2173_v37, %v2171_v32  ;;  %v2013_v41 = vshll.u32 %v4655_v13, %v2001_v29  ;;  %v2016_v63 = vshll.u32 %v4656_v15, %v2001_v29  ;;  %v2017_v45 = vshrl.u32 %v4657_v22, %v2002_v53 }
 0x3cb   : > { %v3821_v54 = vsub.s32 0, %v7300_v23  ;;  %v2009_v50 = vor.u32 %v2008_v49, %v2007_v8  ;;  %v2012_v62 = vor.u32 %v2011_v3, %v2010_v55  ;;  %v3661_v42 = vadd.s32 1, %v4154_v17 }
 0x3cc   : > { %v2175_v28 = vxor.u32 2147483648, %v2174_v12  ;;  %v2015_v0 = vor.u32 %v2014_v39, %v2013_v41  ;;  %v2003_v6 = vshrl.u32 %v4652_v5, %v2002_v53  ;;  %v2018_v61 = vor.u32 %v2017_v45, %v2016_v63 }
 0x3cd   : > { %v4159_v19 = vmin.u32 %v3821_v54, %v7300_v23  ;;  %vm2019_vm13 = vcmp.lt.s32.totalorder %v2000_v60, 1  ;;  %vm3757_vm11 = vcmp.lt.s32.totalorder %v6651_v2, 0  ;;  %vm2020_vm3 = vcmp.lt.s32.totalorder %v2000_v60, 2 }
 0x3ce   : > { %v2176_v48 = vsel %vm2093_vm1, %v2175_v28, %v2174_v12  ;;  %vm2022_vm0 = vcmp.lt.s32.totalorder %v2000_v60, 4  ;;  %vm2021_vm15 = vcmp.lt.s32.totalorder %v2000_v60, 3  ;;  %v2027_v24 = vsel %vm2019_vm13, %v2006_v10, %v2009_v50 }
 0x3cf   : > { %v2179_v27 = vsel %vm7261_vm8, %v6577_v36, %v2176_v48  ;;  %v3823_v21 = vclz %v4159_v19  ;;  %v2024_v14 = vsel %vm2022_vm0, %v2012_v62, 2102212464  ;;  %v2023_v33 = vsel %vm2019_vm13, %v2003_v6, %v2006_v10 }
 0x3d0   : > { %4556 = vcosq.f32 %v2179_v27  ;;  %v2028_v20 = vsel %vm2022_vm0, %v2015_v0, 920167782  ;;  %v2031_v52 = vsel %vm2019_vm13, %v2009_v50, %v2012_v62  ;;  %v2025_v25 = vsel %vm2021_vm15, %v2009_v50, %v2024_v14 }
 0x3d1   : > { %4558 = vsinq.f32 %v2179_v27  ;;  %v4160_v26 = vadd.s32 4294967294, %v3823_v21  ;;  %v2029_v59 = vsel %vm2021_vm15, %v2012_v62, %v2028_v20  ;;  %v2032_v51 = vsel %vm2022_vm0, %v2018_v61, 1326507024 }
 0x3d2   : > { %vm3662_vm2 = vcmp.gt.s32.totalorder %v3661_v42, 0  ;;  %v3841_v7 = vsub.s32 4, %v7289_v31  ;;  %v2030_v47 = vsel %vm2020_vm3, %v2027_v24, %v2029_v59  ;;  %v2033_v57 = vsel %vm2021_vm15, %v2015_v0, %v2032_v51 }
 0x3d3   : > { %vm4161_vm5 = vcmp.lt.s32.totalorder %v4160_v26, 0  ;;  %vm2187_vm1 = vcmp.eq.s32.totalorder %v7291_v56, 0  ;;  %v2034_v29 = vsel %vm2020_vm3, %v2031_v52, %v2033_v57  ;;  %vm2186_vm9 = vcmp.lt.s32.totalorder %v7291_v56, 2 }
 0x3d4   : > { %v3826_v46 = vsel %vm4161_vm5, 0, %v4160_v26  ;;  %v7325_v43 = vmul.u32.u64.low %v7295_v1, %v2030_v47  ;;  %v7326_v40 = vmul.u32.u64.high %v7295_v1, %v2030_v47, %v7325_v43  ;;  %v2026_v37 = vsel %vm2020_vm3, %v2023_v33, %v2025_v25 }
 0x3d5   : > { %v3827_v53 = vsub.s32 32, %v3826_v46  ;;  %v3831_v32 = vsub.s32 4294967266, %v3826_v46  ;;  %v3663_v38 = vsel %vm3662_vm2, %v3661_v42, 0  ;;  %vm2183_vm4 = vweird.f32 %v6577_v36 }
 0x3d6   : > { %vm2190_vm8 = vcmp.eq.s32.totalorder %v7291_v56, 2  ;;  %v7334_v35 = vmul.u32.u64.low %v7295_v1, %v2034_v29  ;;  %v7335_v49 = vmul.u32.u64.high %v7295_v1, %v2034_v29, %v7334_v35  ;;  %v3665_v3 = vand.u32 31, %v3663_v38 }
 0x3d7   : > { %v3828_v17 = vshll.u32 %v7300_v23, %v3826_v46  ;;  %v3829_v12 = vshrl.u32 %v3811_v58, %v3827_v53  ;;  %v3832_v18 = vadd.s32 127, %v3831_v32  ;;  %v3658_v39 = vand.u32 8388607, %v3651_v44 }
 0x3d8   : > { %v3842_v60 = vsel %vm3757_vm11, %v3841_v7, %v7289_v31  ;;  %v2042_v8 = vmul.u32 %v7295_v1, %v2026_v37  ;;  %v2045_v55 = vadd.s32 1, %v7326_v40  ;;  %v7345_v28 = vsub.s32 32, %v3665_v3 }
 0x3d9   : > { %v3830_v10 = vor.u32 %v3829_v12, %v3828_v17  ;;  %v3833_v41 = vshll.u32 %v3832_v18, 23  ;;  %v7347_v50 = vshrl.u32 %v3663_v38, 5  ;;  %v3668_v23 = vshll.u32 %v4652_v5, %v3665_v3 }
 0x3da   : > { %v4557_v54 = vpop.eup %4556  ;;  %vm2044_vm6 = vc.u32 %v7335_v49, %v7325_v43  ;;  %v3671_v31 = vshll.u32 %v4653_v9, %v3665_v3  ;;  %v3677_v1 = vshll.u32 %v4655_v13, %v3665_v3  ;;  %v3669_v27 = vshrl.u32 %v4653_v9, %v7345_v28 }
 0x3db   : > { %v4559_v58 = vpop.eup %4558  ;;  %v2191_v62 = vxor.u32 2147483648, %v4557_v54  ;;  %v3834_v45 = vor.u32 4788187, %v3833_v41  ;;  %v3837_v48 = vcvt.s32.f32 %v3830_v10  ;;  %v2046_v19 = vsel %vm2044_vm6, %v2045_v55, %v7326_v40 }
 0x3dc   : > { %v2188_v63 = vxor.u32 2147483648, %v4559_v58  ;;  %v2047_v42 = vadd.s32 %v2046_v19, %v2042_v8  ;;  %v3672_v6 = vshrl.u32 %v4654_v11, %v7345_v28  ;;  %v3675_v14 = vshrl.u32 %v4655_v13, %v7345_v28 }
 0x3dd   : > { %v2192_v0 = vsel %vm2190_vm8, %v2191_v62, %v4559_v58  ;;  %v3835_v21 = vand.u32 2147483647, %v3834_v45  ;;  %v3678_v24 = vshrl.u32 %v4656_v15, %v7345_v28  ;;  %v3670_v20 = vor.u32 %v3669_v27, %v3668_v23 }
 0x3de   : > { %v2189_v61 = vsel %vm2187_vm1, %v4557_v54, %v2188_v63  ;;  %v2048_v33 = vadd.s32 536870912, %v2047_v42  ;;  %v3674_v9 = vshll.u32 %v4654_v11, %v3665_v3  ;;  %v3673_v59 = vor.u32 %v3672_v6, %v3671_v31 }
 0x3df   : > { %v2193_v26 = vsel %vm2186_vm9, %v2189_v61, %v2192_v0  ;;  %v3838_v25 = vmul.f32 %v3837_v48, %v3835_v21  ;;  %v3679_v51 = vor.u32 %v3678_v24, %v3677_v1  ;;  %v3659_v13 = vor.u32 8388608, %v3658_v39 }
 0x3e0   : > { %v2194_v52 = vsel %vm2183_vm4, nan, %v2193_v26  ;;  %v7373_v7 = vshrl.u32 %v2048_v33, 30  ;;  %v3681_v47 = vshrl.u32 %v4657_v22, %v7345_v28  ;;  %vm7379_vm14 = vcmp.le.f32.partialorder %v3755_v4, 0.7853982 }
 0x3e1   : > { %3874 = vst [vmem:[%s5126_s4 + $0x78] sm:$0xff] %v2194_v52  ;;  %v3839_v11 = vxor.u32 2147483648, %v3838_v25  ;;  %v3676_v57 = vor.u32 %v3675_v14, %v3674_v9  ;;  %v3680_v36 = vshll.u32 %v4656_v15, %v3665_v3  ;;  %v3844_v46 = vsel %vm7379_vm14, 0, %v3842_v60 }
 0x3e2   : > { %v2050_v29 = vshll.u32 %v7373_v7, 30  ;;  %vm3683_vm12 = vcmp.lt.s32.totalorder %v7347_v50, 1  ;;  %vm3686_vm7 = vcmp.lt.s32.totalorder %v7347_v50, 4  ;;  %vm3685_vm10 = vcmp.lt.s32.totalorder %v7347_v50, 3 }
 0x3e3   : > { %v3840_v22 = vsel %vm3757_vm11, %v3839_v11, %v3838_v25  ;;  %v3682_v4 = vor.u32 %v3681_v47, %v3680_v36  ;;  %v3691_v40 = vsel %vm3683_vm12, %v3670_v20, %v3673_v59  ;;  %v3692_v53 = vsel %vm3686_vm7, %v3679_v51, 920167782 }
 0x3e4   : > { %v3843_v15 = vsel %vm7379_vm14, %v6651_v2, %v3840_v22  ;;  %v2051_v32 = vsub.s32 %v2047_v42, %v2050_v29  ;;  %v3699_v37 = vshll.u32 %v3659_v13, 8  ;;  %v3848_v38 = vadd.s32 3, %v3844_v46 }
 0x3e5   : > { %4560 = vcosq.f32 %v3843_v15  ;;  %vm3684_vm13 = vcmp.lt.s32.totalorder %v7347_v50, 2  ;;  %v3693_v35 = vsel %vm3685_vm10, %v3676_v57, %v3692_v53  ;;  %v3688_v17 = vsel %vm3686_vm7, %v3676_v57, 2102212464 }
 0x3e6   : > { %4562 = vsinq.f32 %v3843_v15  ;;  %v2053_v3 = vsub.s32 0, %v2051_v32  ;;  %v3694_v12 = vsel %vm3684_vm13, %v3691_v40, %v3693_v35  ;;  %v3695_v18 = vsel %vm3683_vm12, %v3673_v59, %v3676_v57 }
 0x3e7   : > { %v3696_v39 = vsel %vm3686_vm7, %v3682_v4, 1326507024  ;;  %v7410_v60 = vmul.u32.u64.low %v3699_v37, %v3694_v12  ;;  %v7411_v8 = vmul.u32.u64.high %v3699_v37, %v3694_v12, %v7410_v60  ;;  %v3667_v54 = vshrl.u32 %v4652_v5, %v7345_v28 }
 0x3e8   : > { %v4091_v55 = vmin.u32 %v2053_v3, %v2051_v32  ;;  %v3697_v10 = vsel %vm3685_vm10, %v3679_v51, %v3696_v39  ;;  %v3689_v62 = vsel %vm3685_vm10, %v3673_v59, %v3688_v17  ;;  %v3849_v31 = vand.u32 3, %v3848_v38 }
 0x3e9   : > { %v3698_v41 = vsel %vm3684_vm13, %v3695_v18, %v3697_v10  ;;  %v3687_v58 = vsel %vm3683_vm12, %v3667_v54, %v3670_v20  ;;  %v3709_v28 = vadd.s32 1, %v7411_v8  ;;  %v2043_v19 = vadd.s32 %v7325_v43, %v7335_v49 }
 0x3ea   : > { %v2055_v23 = vclz %v4091_v55  ;;  %v7424_v1 = vmul.u32.u64.low %v3699_v37, %v3698_v41  ;;  %v7425_v63 = vmul.u32.u64.high %v3699_v37, %v3698_v41, %v7424_v1  ;;  %v3690_v5 = vsel %vm3684_vm13, %v3687_v58, %v3689_v62 }
 0x3eb   : > { %vm3851_vm3 = vcmp.eq.s32.totalorder %v3849_v31, 0  ;;  %v3706_v21 = vmul.u32 %v3699_v37, %v3690_v5  ;;  %vm3854_vm15 = vcmp.eq.s32.totalorder %v3849_v31, 2  ;;  %vm3847_vm2 = vweird.f32 %v6651_v2 }
 0x3ec   : > { %v4092_v45 = vadd.s32 4294967294, %v2055_v23  ;;  %vm3708_vm0 = vc.u32 %v7425_v63, %v7410_v60  ;;  %vm3850_vm5 = vcmp.lt.s32.totalorder %v3849_v31, 2  ;;  %v2073_v46 = vsub.s32 4, %v7373_v7 }
 0x3ed   : > { %v3710_v24 = vsel %vm3708_vm0, %v3709_v28, %v7411_v8  ;;  %vm1989_vm1 = vcmp.lt.s32.totalorder %v6742_v34, 0  ;;  %vm1988_vm9 = vcmp.le.f32.partialorder %v1987_v16, 0.7853982  ;;  %v3707_v17 = vadd.s32 %v7410_v60, %v7425_v63 }
 0x3ee   : > { %vm4093_vm11 = vcmp.lt.s32.totalorder %v4092_v45, 0  ;;  %v3711_v9 = vadd.s32 %v3710_v24, %v3706_v21  ;;  %v2074_v40 = vsel %vm1989_vm1, %v2073_v46, %v7373_v7  ;;  %vm2079_vm12 = vweird.f32 %v6742_v34 }
 0x3ef   : > { %v4561_v48 = vpop.eup %4560  ;;  %v2058_v0 = vsel %vm4093_vm11, 0, %v4092_v45  ;;  %v2076_v37 = vsel %vm1988_vm9, 0, %v2074_v40  ;;  %vm3653_vm7 = vcmp.lt.s32.totalorder %v6826_v30, 0  ;;  %vm3652_vm10 = vcmp.le.f32.partialorder %v3651_v44, 0.7853982 }
 0x3f0   : > { %v4563_v42 = vpop.eup %4562  ;;  %v3855_v27 = vxor.u32 2147483648, %v4561_v48  ;;  %v2059_v6 = vsub.s32 32, %v2058_v0  ;;  %v2063_v61 = vsub.s32 4294967266, %v2058_v0  ;;  %v2060_v50 = vshll.u32 %v2051_v32, %v2058_v0 }
 0x3f1   : > { %v3852_v14 = vxor.u32 2147483648, %v4563_v42  ;;  %v3712_v59 = vadd.s32 536870912, %v3711_v9  ;;  %v2080_v35 = vadd.s32 3, %v2076_v37  ;;  %vm3743_vm0 = vweird.f32 %v6826_v30 }
 0x3f2   : > { %v3856_v26 = vsel %vm3854_vm15, %v3855_v27, %v4563_v42  ;;  %v2061_v33 = vshrl.u32 %v2043_v19, %v2059_v6  ;;  %v2064_v20 = vadd.s32 127, %v2063_v61 }
 0x3f3   : > { %v3853_v43 = vsel %vm3851_vm3, %v4561_v48, %v3852_v14  ;;  %v3713_v47 = vshrl.u32 %v3712_v59, 30  ;;  %v2081_v16 = vand.u32 3, %v2080_v35 }
 0x3f4   : > { %v3857_v49 = vsel %vm3850_vm5, %v3853_v43, %v3856_v26  ;;  %v2062_v52 = vor.u32 %v2061_v33, %v2060_v50  ;;  %v2065_v25 = vshll.u32 %v2064_v20, 23 }
 0x3f5   : > { %v3858_v51 = vsel %vm3847_vm2, nan, %v3857_v49  ;;  %v3714_v57 = vshll.u32 %v3713_v47, 30  ;;  %vm2086_vm8 = vcmp.eq.s32.totalorder %v2081_v16, 2  ;;  %vm2083_vm6 = vcmp.eq.s32.totalorder %v2081_v16, 0 }
 0x3f6   : > { %3890 = vst [vmem:[%s5126_s4 + $0xf8] sm:$0xff] %v3858_v51  ;;  %v2066_v13 = vor.u32 4788187, %v2065_v25  ;;  %v2069_v11 = vcvt.s32.f32 %v2062_v52  ;;  %vm2082_vm14 = vcmp.lt.s32.totalorder %v2081_v16, 2  ;;  %v3737_v48 = vsub.s32 4, %v3713_v47 }
 0x3f7   : > { %v3715_v29 = vsub.s32 %v3711_v9, %v3714_v57 }
 0x3f8   : > { %v2067_v56 = vand.u32 2147483647, %v2066_v13  ;;  %v3738_v42 = vsel %vm3653_vm7, %v3737_v48, %v3713_v47 }
 0x3f9   : > { %v3717_v2 = vsub.s32 0, %v3715_v29  ;;  %v3740_v6 = vsel %vm3652_vm10, 0, %v3738_v42 }
 0x3fa   : > { %v2070_v36 = vmul.f32 %v2069_v11, %v2067_v56 }
 0x3fb   : > { %v4155_v53 = vmin.u32 %v3717_v2, %v3715_v29 }
 0x3fc   : > { %v2071_v22 = vxor.u32 2147483648, %v2070_v36 }
 0x3fd   : > { %v3719_v32 = vclz %v4155_v53 }
 0x3fe   : > { %v2072_v4 = vsel %vm1989_vm1, %v2071_v22, %v2070_v36 }
 0x3ff   : > { %v2075_v15 = vsel %vm1988_vm9, %v6742_v34, %v2072_v4  ;;  %v4156_v38 = vadd.s32 4294967294, %v3719_v32  ;;  %v3744_v34 = vadd.s32 3, %v3740_v6 }
 0x400   : > { %4564 = vcosq.f32 %v2075_v15 }
 0x401   : > { %4566 = vsinq.f32 %v2075_v15  ;;  %vm4157_vm4 = vcmp.lt.s32.totalorder %v4156_v38, 0  ;;  %v3745_v61 = vand.u32 3, %v3744_v34 }
 0x402   : > { %v3722_v3 = vsel %vm4157_vm4, 0, %v4156_v38 }
 0x403   : > { %v3723_v12 = vsub.s32 32, %v3722_v3  ;;  %v3727_v18 = vsub.s32 4294967266, %v3722_v3  ;;  %v3724_v39 = vshll.u32 %v3715_v29, %v3722_v3  ;;  %vm3750_vm13 = vcmp.eq.s32.totalorder %v3745_v61, 2 }
 0x404   : > { %vm3747_vm11 = vcmp.eq.s32.totalorder %v3745_v61, 0  ;;  %vm3746_vm3 = vcmp.lt.s32.totalorder %v3745_v61, 2 }
 0x405   : > { %v3725_v8 = vshrl.u32 %v3707_v17, %v3723_v12  ;;  %v3728_v7 = vadd.s32 127, %v3727_v18 }
 0x407   : > { %v3726_v54 = vor.u32 %v3725_v8, %v3724_v39  ;;  %v3729_v10 = vshll.u32 %v3728_v7, 23 }
 0x409   : > { %v3730_v62 = vor.u32 4788187, %v3729_v10  ;;  %v3733_v63 = vcvt.s32.f32 %v3726_v54 }
 0x40a   : > { %v4565_v55 = vpop.eup %4564 }
 0x40b   : > { %v4567_v41 = vpop.eup %4566  ;;  %v2087_v23 = vxor.u32 2147483648, %v4565_v55  ;;  %v3731_v60 = vand.u32 2147483647, %v3730_v62 }
 0x40c   : > { %v2084_v58 = vxor.u32 2147483648, %v4567_v41 }
 0x40d   : > { %v2088_v31 = vsel %vm2086_vm8, %v2087_v23, %v4567_v41  ;;  %v3734_v28 = vmul.f32 %v3733_v63, %v3731_v60 }
 0x40e   : > { %v2085_v1 = vsel %vm2083_vm6, %v4565_v55, %v2084_v58 }
 0x40f   : > { %v2089_v45 = vsel %vm2082_vm14, %v2085_v1, %v2088_v31  ;;  %v3735_v19 = vxor.u32 2147483648, %v3734_v28 }
 0x410   : > { %v2090_v5 = vsel %vm2079_vm12, nan, %v2089_v45 }
 0x411   : > { %3873 = vst [vmem:[%s5126_s4 + $0x70] sm:$0xff] %v2090_v5  ;;  %v3736_v0 = vsel %vm3653_vm7, %v3735_v19, %v3734_v28 }
 0x412   : > { %v3739_v27 = vsel %vm3652_vm10, %v6826_v30, %v3736_v0 }
 0x413   : > { %4568 = vcosq.f32 %v3739_v27 }
 0x414   : > { %4570 = vsinq.f32 %v3739_v27 }
 0x41d   : > { %v4569_v21 = vpop.eup %4568 }
 0x41e   : > { %v4571_v14 = vpop.eup %4570  ;;  %v3751_v50 = vxor.u32 2147483648, %v4569_v21 }
 0x41f   : > { %v3748_v24 = vxor.u32 2147483648, %v4571_v14 }
 0x420   : > { %v3752_v44 = vsel %vm3750_vm13, %v3751_v50, %v4571_v14 }
 0x421   : > { %v3749_v26 = vsel %vm3747_vm11, %v4569_v21, %v3748_v24 }
 0x422   : > { %v3753_v33 = vsel %vm3746_vm3, %v3749_v26, %v3752_v44 }
 0x423   : > { %v3754_v20 = vsel %vm3743_vm0, nan, %v3753_v33 }
 0x424   : > { %3889 = vst [vmem:[%s5126_s4 + $0xf0] sm:$0xff] %v3754_v20 }
 0x425   : > { %4585 = shalt.err (!%p4582_p5)
}
 0x426   : > { %s4586_s24 = scalar_lea.hbm %s7457_s15, 4096  ;;  %s4590_s27 = scalar_lea.hbm %s7513_s2, 16384 }
 0x427   : > { %p4587_p6 = scmp.ne.s32.totalorder %s7457_s15, %s4586_s24  ;;  %p4591_p10 = scmp.lt.u32.totalorder %s7457_s15, %s7513_s2 }
 0x428   : > { %p4592_p11 = scmp.lt.u32.totalorder %s4590_s27, %s4586_s24  ;;  %p4594_p13 = scmp.lt.u32.totalorder %s4586_s24, %s7457_s15 }
 0x429   : > { %p4588_p7 = pnand %p4587_p6, %p4716_p4 }
 0x42a   : > { %p4593_p12 = por %p4592_p11, %p4591_p10 }
 0x42b   : > { %p4589_p9 = pneg %p4588_p7 }
 0x42c   : > { %p4595_p0 = por %p4594_p13, %p4593_p12 }
 0x42e   : > { %p4596_p1 = pnand %p4595_p0, %p4589_p9 }
 0x430   : > { %4599 = shalt.err (!%p4596_p1)
}
 0x431   : > { %s4659_s30 = smov 128   ;;  %s4660_s3 = smov 8  }
 0x432   : > { %4381 = dma.vmem_to_hbm [thread:$0]  (%p4716_p4), %s7459_s6, 4096, %s7457_s15, %s7465_s12, %s4659_s30, %s4659_s30, %s4660_s3  }
 0x433 PF: > { %p4387_p2 = scmp.ge.s32.totalorder %s4650_s14, 2  ;;  %s3921_s4 = sand.u32 1, %s4630_s9  }
 0x434   : > { %s3922_s5 = scalar_lea.sflag [#allocation3], %s3921_s4 }
 0x435   : > { %p4384_p3 = pnand %p4387_p2, %p4723_p8 }
 0x437   : > { %4625 = dma.done.wait (!%p4384_p3), %s3922_s5, 4096  }
 0x438   : > { %4627 = vsyncadd (!%p4384_p3), %s3922_s5, 4294963200  ;;  %s15_s14 = sadd.s32 1, %s4650_s14   ;;  %s7576_s9 = smov %s4634_s10 }
 0x439   : > { %p12_p5 = scmp.ge.s32.totalorder %s15_s14, 6   ;;  %s7577_s10 = smov %s4638_s11 }
 0x43a   : > { %s7578_s11 = smov %s4729_s22  ;;  %s7579_s12 = smov %s4646_s13 }
 0x43b   : > { %s7580_s13 = smov %s7582_s17  ;;  %14 = sbr.rel (!%p12_p5) target bundleno = 4 (0x4), region = 66 }
 0x442   :  { %3927 = vsyncpa [#allocation3], 1 }
 0x443   :  { %3929 = vsyncpa [#allocation3 + $0x1], 1 }

</bundles_post_ra>
